<compile_context>
chip_gen: v7x
topology: tpu7x:2x2x1
jax: 0.10.0
libtpu: 0.0.40
codegen_flags: <defaults>
</compile_context>

<pallas_src>
import functools

import jax
import jax.numpy as jnp
from jax.experimental import pallas as pl
from jax.experimental.pallas import tpu as pltpu

EXPANSION = 4
BN_EPS = 1e-5
LANE = 128


def _vmem_budgets():
    cap = 64 * 1024 * 1024
    try:
        info = pltpu.get_tpu_info()
        cap = int(getattr(info, "vmem_capacity_bytes", cap)) or cap
    except Exception:
        pass
    return int(cap * 0.75), int(cap * 0.55)


VMEM_LIMIT, VMEM_TILE_BUDGET = _vmem_budgets()


def _const_spec(shape):
    # Grid-invariant operand (weights / folded-BN scale+bias): constant index
    # map, single-buffered so resident weights are not double-buffered
    # (matters most on v7x's 64 MiB VMEM).  Falls back to the default spec if
    # this Pallas build rejects pipeline_mode at construction time.
    idx = lambda *_: (0,) * len(shape)
    try:
        return pl.BlockSpec(shape, idx, pipeline_mode=pl.Buffered(1))
    except Exception:
        return pl.BlockSpec(shape, idx)


# ----------------------------- Pallas kernels ------------------------------

def _mm_affine_kernel(x_ref, w_ref, s_ref, b_ref, o_ref, *, relu):
    # (TM, K) @ (K, N) on the MXU (bf16 in, f32 acc), folded-BN affine, ReLU.
    acc = jnp.dot(x_ref[...], w_ref[...], preferred_element_type=jnp.float32)
    acc = acc * s_ref[...] + b_ref[...]
    if relu:
        acc = jnp.maximum(acc, 0.0)
    o_ref[...] = acc.astype(o_ref.dtype)


def _conv12_kernel(x_ref, w1_ref, s1_ref, b1_ref, w2_ref, s2_ref, b2_ref,
                   o_ref, hp_ref, *, H, W, C, TH):
    # Fused conv1(1x1)+bn1+relu -> conv2(3x3, stride 1, pad 1)+bn2+relu.
    # grid = (N, H//TH); x is the full image, resident across the row axis.
    t = pl.program_id(1)
    cin = x_ref.shape[-1]

    @pl.when(t == 0)
    def _():
        # conv1 for the whole image, written into the zero-padded h1 scratch
        # (the pad-1 border stays exactly 0, matching F.conv2d padding of h1).
        hp_ref[...] = jnp.zeros_like(hp_ref)
        x2d = x_ref[...].reshape(H * W, cin)
        h1 = jnp.dot(x2d, w1_ref[...], preferred_element_type=jnp.float32)
        h1 = jnp.maximum(h1 * s1_ref[...] + b1_ref[...], 0.0)
        hp_ref[pl.ds(1, H), pl.ds(1, W), :] = (
            h1.reshape(H, W, C).astype(hp_ref.dtype))

    # conv2: TH output rows per step, 9 tap matmuls, f32 accumulation.
    row0 = pl.multiple_of(t * TH, TH)
    acc = jnp.zeros((TH * W, C), jnp.float32)
    for dy in range(3):                       # static unroll over the 9 taps
        for dx in range(3):
            lhs = hp_ref[pl.ds(row0 + dy, TH), pl.ds(dx, W), :]
            acc = acc + jnp.dot(lhs.reshape(TH * W, C), w2_ref[dy, dx],
                                preferred_element_type=jnp.float32)
    r = jnp.maximum(acc * s2_ref[...] + b2_ref[...], 0.0)
    o_ref[...] = r.reshape(1, TH, W, C).astype(o_ref.dtype)


def _conv3_sc_kernel(h_ref, w_ref, s_ref, b_ref, xs_ref, ws_ref, o_ref):
    # conv3 (1x1) + bn3 fused with the projection-shortcut 1x1 conv + add + relu.
    acc = jnp.dot(h_ref[...], w_ref[...], preferred_element_type=jnp.float32)
    acc = acc * s_ref[...] + b_ref[...]
    acc = acc + jnp.dot(xs_ref[...], ws_ref[...],
                        preferred_element_type=jnp.float32)
    o_ref[...] = jnp.maximum(acc, 0.0).astype(o_ref.dtype)


def _conv3_id_kernel(h_ref, w_ref, s_ref, b_ref, xs_ref, o_ref):
    # conv3 (1x1) + bn3 fused with the identity shortcut (plain add).
    acc = jnp.dot(h_ref[...], w_ref[...], preferred_element_type=jnp.float32)
    acc = acc * s_ref[...] + b_ref[...]
    acc = acc + xs_ref[...].astype(jnp.float32)
    o_ref[...] = jnp.maximum(acc, 0.0).astype(o_ref.dtype)


# --------------------------- tiling / call helpers ---------------------------

def _pick_tile(m, per_row_bytes, resident_bytes, budget=None):
    # Largest row tile that divides M and fits the VMEM budget (x2 double
    # buffering), preferring tiles that leave >= 4 (even) grid steps so both
    # v7x TensorCores get pipelined work; then >= 2 steps; then the largest.
    budget = VMEM_TILE_BUDGET if budget is None else budget
    fits = [t for t in (2048, 1024, 512, 256, 128, 64, 32, 16, 8)
            if m % t == 0 and 2 * t * per_row_bytes + resident_bytes <= budget]
    if not fits:
        return m
    for t in fits:
        if m // t >= 4 and (m // t) % 2 == 0:
            return t
    for t in fits:
        if m // t >= 2:
            return t
    return fits[0]


def _pick_row_tile(H, W, N):
    # Output-row tile for the fused conv1+conv2 kernel: keep the per-tap
    # matmul M = TH*W around a few hundred rows while leaving >= 4 grid steps.
    divisors = [d for d in range(H, 0, -1) if H % d == 0]
    cand = next((d for d in divisors if d * W <= 1024), 1)
    for d in divisors:
        if d <= cand and N * (H // d) >= 4 and d * W >= 128:
            return d
    return cand


def matmul_affine(x, w, scale, bias, relu=True, out_dtype=None):
    """relu_opt((x @ w) * scale + bias); bf16 operands, f32 accumulation."""
    M, K = x.shape
    N = w.shape[1]
    out_dtype = x.dtype if out_dtype is None else out_dtype
    ob = jnp.dtype(out_dtype).itemsize
    TM = _pick_tile(M, per_row_bytes=K * x.dtype.itemsize + N * ob,
                    resident_bytes=K * N * w.dtype.itemsize + 8 * N)
    return pl.pallas_call(
        functools.partial(_mm_affine_kernel, relu=relu),
        out_shape=jax.ShapeDtypeStruct((M, N), out_dtype),
        grid=(M // TM,),
        in_specs=[
            pl.BlockSpec((TM, K), lambda i: (i, 0)),
            _const_spec((K, N)),
            _const_spec((1, N)),
            _const_spec((1, N)),
        ],
        out_specs=pl.BlockSpec((TM, N), lambda i: (i, 0)),
        compiler_params=pltpu.CompilerParams(
            dimension_semantics=("parallel",), vmem_limit_bytes=VMEM_LIMIT),
    )(x, w, scale, bias)


def conv1_conv2_fused(x, w1, s1, b1, w2, s2, b2):
    """Fused conv1(1x1)+bn1+relu -> conv2(3x3,s=1,p=1)+bn2+relu; NHWC bf16."""
    N, H, W, Cin = x.shape
    C = w1.shape[1]
    TH = _pick_row_tile(H, W, N)
    # TODO(synk): for very large spatial sizes the full padded h1 scratch may
    # exceed VMEM; a two-level row tiling (halo re-compute) would be needed.
    return pl.pallas_call(
        functools.partial(_conv12_kernel, H=H, W=W, C=C, TH=TH),
        out_shape=jax.ShapeDtypeStruct((N, H, W, C), jnp.bfloat16),
        grid=(N, H // TH),
        in_specs=[
            pl.BlockSpec((1, H, W, Cin), lambda n, t: (n, 0, 0, 0)),
            _const_spec((Cin, C)),
            _const_spec((1, C)),
            _const_spec((1, C)),
            _const_spec((3, 3, C, C)),
            _const_spec((1, C)),
            _const_spec((1, C)),
        ],
        out_specs=pl.BlockSpec((1, TH, W, C), lambda n, t: (n, t, 0, 0)),
        scratch_shapes=[pltpu.VMEM((H + 2, W + 2, C), jnp.bfloat16)],
        compiler_params=pltpu.CompilerParams(
            dimension_semantics=("parallel", "arbitrary"),
            vmem_limit_bytes=VMEM_LIMIT),
    )(x, w1, s1, b1, w2, s2, b2)


def conv3_fused(h, w, scale, bias, xs, ws=None):
    """relu((h @ w) * scale + bias + shortcut); shortcut is xs @ ws or xs."""
    M, K = h.shape
    N = w.shape[1]
    Ks = xs.shape[1]
    resident = K * N * w.dtype.itemsize + 8 * N
    if ws is not None:
        resident += Ks * N * ws.dtype.itemsize
    TM = _pick_tile(M, per_row_bytes=2 * K + 2 * Ks + 2 * N,
                    resident_bytes=resident)
    specs = [
        pl.BlockSpec((TM, K), lambda i: (i, 0)),
        _const_spec((K, N)),
        _const_spec((1, N)),
        _const_spec((1, N)),
        pl.BlockSpec((TM, Ks), lambda i: (i, 0)),
    ]
    if ws is not None:
        kernel = _conv3_sc_kernel
        specs.append(_const_spec((Ks, N)))
        args = (h, w, scale, bias, xs, ws)
    else:
        kernel = _conv3_id_kernel
        args = (h, w, scale, bias, xs)
    return pl.pallas_call(
        kernel,
        out_shape=jax.ShapeDtypeStruct((M, N), jnp.bfloat16),
        grid=(M // TM,),
        in_specs=specs,
        out_specs=pl.BlockSpec((TM, N), lambda i: (i, 0)),
        compiler_params=pltpu.CompilerParams(
            dimension_semantics=("parallel",), vmem_limit_bytes=VMEM_LIMIT),
    )(*args)


# ------------------------------ glue / wrapper ------------------------------

def _round_up(c, m=LANE):
    return ((c + m - 1) // m) * m


def _pad_last(a, c):
    pad = c - a.shape[-1]
    if pad == 0:
        return a
    return jnp.pad(a, [(0, 0)] * (a.ndim - 1) + [(0, pad)])


def _pad_mat(w, r, c):
    return jnp.pad(w, ((0, r - w.shape[0]), (0, c - w.shape[1])))


def fold_bn_padded(bn_params, c_pad, eps=BN_EPS):
    gamma, beta, mean, var = bn_params
    scale = gamma / jnp.sqrt(var + eps)
    bias = beta - mean * scale
    # padded channels: scale 1, bias 0 -> outputs stay exactly 0 there.
    scale = jnp.pad(scale, (0, c_pad - scale.shape[0]), constant_values=1.0)
    bias = jnp.pad(bias, (0, c_pad - bias.shape[0]))
    return (scale.reshape(1, -1).astype(jnp.float32),
            bias.reshape(1, -1).astype(jnp.float32))


def init_params(key, in_planes, planes, stride=1):
    out_planes = EXPANSION * planes
    ks = jax.random.split(key, 8)

    def conv_w(k, fan_in, shape):
        bound = 1.0 / jnp.sqrt(fan_in)  # PyTorch default conv init bound
        return jax.random.uniform(k, shape, jnp.float32, -bound, bound)

    def bn_p(k, c):
        k1, k2, k3, k4 = jax.random.split(k, 4)
        gamma = jax.random.uniform(k1, (c,), jnp.float32, 0.5, 1.5)
        beta = 0.1 * jax.random.normal(k2, (c,), jnp.float32)
        mean = 0.1 * jax.random.normal(k3, (c,), jnp.float32)
        var = jax.random.uniform(k4, (c,), jnp.float32, 0.5, 1.5)
        return (gamma, beta, mean, var)

    params = {
        # conv weights stored ready for matmul: 1x1 as (Cin, Cout); 3x3 as HWIO.
        "w1": conv_w(ks[0], in_planes * 1 * 1, (in_planes, planes)),
        "w2": conv_w(ks[1], planes * 3 * 3, (3, 3, planes, planes)),
        "w3": conv_w(ks[2], planes * 1 * 1, (planes, out_planes)),
        "bn1": bn_p(ks[3], planes),
        "bn2": bn_p(ks[4], planes),
        "bn3": bn_p(ks[5], out_planes),
    }
    if stride != 1 or in_planes != out_planes:
        params["wsc"] = conv_w(ks[6], in_planes * 1 * 1, (in_planes, out_planes))
    return params


def bottleneck_forward(x_nchw, params, stride=1):
    # NCHW -> NHWC; only output-channel dims are padded to 128 lanes.
    x = jnp.transpose(x_nchw, (0, 2, 3, 1)).astype(jnp.float32)
    N, H, W, Cin = x.shape
    P = params["w1"].shape[1]
    Cout = params["w3"].shape[1]
    P_p, Cout_p = _round_up(P), _round_up(Cout)

    s1, b1 = fold_bn_padded(params["bn1"], P_p)
    s2, b2 = fold_bn_padded(params["bn2"], P_p)
    s3, b3 = fold_bn_padded(params["bn3"], Cout_p)

    w1 = _pad_mat(params["w1"], Cin, P_p).astype(jnp.bfloat16)       # (Cin, P_p)
    w2 = jnp.pad(params["w2"],
                 ((0, 0), (0, 0), (0, P_p - P), (0, P_p - P))).astype(jnp.bfloat16)
    w3 = _pad_mat(params["w3"], P_p, Cout_p).astype(jnp.bfloat16)

    xb = x.astype(jnp.bfloat16)                      # (N,H,W,Cin), K unpadded

    Ho = (H - 1) // stride + 1
    Wo = (W - 1) // stride + 1

    if stride == 1:
        # conv1 + conv2 fused in one kernel: h1 never touches HBM.
        h2 = conv1_conv2_fused(xb, w1, s1, b1, w2, s2, b2)
    else:
        # TODO(synk): strided conv2 falls back to XLA im2col + Pallas matmul; an
        # in-kernel strided-tap path (pl.ds with stride) would remove the slab.
        h1 = matmul_affine(xb.reshape(N * H * W, Cin), w1, s1, b1, relu=True,
                           out_dtype=jnp.bfloat16).reshape(N, H, W, P_p)
        hp = jnp.pad(h1, ((0, 0), (1, 1), (1, 1), (0, 0)))
        cols = [hp[:, dy:dy + (Ho - 1) * stride + 1:stride,
                   dx:dx + (Wo - 1) * stride + 1:stride, :]
                for dy in range(3) for dx in range(3)]
        patches = jnp.concatenate(cols, axis=-1).reshape(N * Ho * Wo, 9 * P_p)
        h2 = matmul_affine(patches, w2.reshape(9 * P_p, P_p), s2, b2, relu=True,
                           out_dtype=jnp.bfloat16).reshape(N, Ho, Wo, P_p)

    # conv3 (1x1) + bn3 + shortcut + add + relu, fused; bf16 output.
    h2_2d = h2.reshape(N * Ho * Wo, P_p)
    xs = xb[:, ::stride, ::stride, :].reshape(N * Ho * Wo, Cin)
    if "wsc" in params:
        wsc = _pad_mat(params["wsc"], Cin, Cout_p).astype(jnp.bfloat16)
        out2d = conv3_fused(h2_2d, w3, s3, b3, xs, wsc)
    else:
        # identity shortcut (Cin == Cout): pad xs lanes so the add is lane-aligned.
        out2d = conv3_fused(h2_2d, w3, s3, b3, _pad_last(xs, Cout_p), None)

    out = out2d.reshape(N, Ho, Wo, Cout_p)[..., :Cout]
    return jnp.transpose(out, (0, 3, 1, 2)).astype(jnp.float32)   # NCHW f32


# ---------------------------- pure-JAX reference ----------------------------

def reference_forward(x_nchw, params, stride=1):
    # Mirrors the kernel's bf16 rounding points (inputs/weights/intermediates)
    # with f32 accumulation, so the comparison is meaningful at tight tolerance.
    f32 = jnp.float32
    q = lambda a: a.astype(jnp.bfloat16).astype(f32)
    dn = ("NHWC", "HWIO", "NHWC")

    x = jnp.transpose(x_nchw, (0, 2, 3, 1)).astype(f32)
    xq = q(x)

    def conv1x1(v, w, s=1):
        return jax.lax.conv_general_dilated(
            v, q(w).reshape(1, 1, *w.shape), (s, s), "VALID", dimension_numbers=dn)

    def bn(v, p):
        g, be, m, var = p
        return (v - m) / jnp.sqrt(var + BN_EPS) * g + be

    h = q(jax.nn.relu(bn(conv1x1(xq, params["w1"]), params["bn1"])))
    h = jax.lax.conv_general_dilated(
        h, q(params["w2"]), (stride, stride), ((1, 1), (1, 1)), dimension_numbers=dn)
    h = q(jax.nn.relu(bn(h, params["bn2"])))
    h = bn(conv1x1(h, params["w3"]), params["bn3"])
    if "wsc" in params:
        sc = conv1x1(xq, params["wsc"], stride)
    else:
        sc = xq[:, ::stride, ::stride, :]
    out = jax.nn.relu(h + sc)
    return jnp.transpose(out, (0, 3, 1, 2))


if __name__ == "__main__":
    key = jax.random.PRNGKey(0)

    configs = [
        (4, 4, 1),    # projection shortcut, stride 1 -> fused conv1+conv2 kernel
        (16, 4, 1),   # identity shortcut (in_planes == 4*planes)
        (8, 4, 2),    # projection shortcut, stride 2 -> im2col fallback path
    ]
    for in_planes, planes, stride in configs:
        key, kx, kp = jax.random.split(key, 3)
        x = jax.random.normal(kx, (2, in_planes, 16, 16), jnp.float32)  # NCHW
        params = init_params(kp, in_planes, planes, stride)

        out = jax.block_until_ready(bottleneck_forward(x, params, stride))
        Ho = (16 - 1) // stride + 1
        assert out.shape == (2, EXPANSION * planes, Ho, Ho), out.shape

        ref = reference_forward(x, params, stride)
        err = float(jnp.max(jnp.abs(out - ref)))
        assert jnp.allclose(out, ref, atol=2e-2, rtol=2e-2), \
            (in_planes, planes, stride, err)

    print("KERNEL_OK")
</pallas_src>

<mosaic_0001>
module attributes {stable_mosaic.version = 11 : i64} {
  func.func @_conv12_kernel(%arg0: i32, %arg1: i32, %arg2: memref<1x16x16x4xbf16, #tpu.memory_space<vmem>>, %arg3: memref<4x128xbf16, #tpu.memory_space<vmem>>, %arg4: memref<1x128xf32, #tpu.memory_space<vmem>>, %arg5: memref<1x128xf32, #tpu.memory_space<vmem>>, %arg6: memref<3x3x128x128xbf16, #tpu.memory_space<vmem>>, %arg7: memref<1x128xf32, #tpu.memory_space<vmem>>, %arg8: memref<1x128xf32, #tpu.memory_space<vmem>>, %arg9: memref<1x8x16x128xbf16, #tpu.memory_space<vmem>>, %arg10: memref<18x18x128xbf16, #tpu.memory_space<vmem>>) attributes {dimension_semantics = [#tpu.dimension_semantics<parallel>, #tpu.dimension_semantics<arbitrary>], iteration_bounds = array<i64: 2, 2>, scalar_prefetch = 0 : i64, scratch_operands = 1 : i64, tpu.core_type = #tpu.core_type<tc>, window_params = [{transform_indices = @transform_0, window_bounds = array<i64: 1, 16, 16, 4>}, {pipeline_mode = #tpu.pipeline_mode<synchronous>, transform_indices = @transform_1, window_bounds = array<i64: 4, 128>}, {pipeline_mode = #tpu.pipeline_mode<synchronous>, transform_indices = @transform_2, window_bounds = array<i64: 1, 128>}, {pipeline_mode = #tpu.pipeline_mode<synchronous>, transform_indices = @transform_3, window_bounds = array<i64: 1, 128>}, {pipeline_mode = #tpu.pipeline_mode<synchronous>, transform_indices = @transform_4, window_bounds = array<i64: 3, 3, 128, 128>}, {pipeline_mode = #tpu.pipeline_mode<synchronous>, transform_indices = @transform_5, window_bounds = array<i64: 1, 128>}, {pipeline_mode = #tpu.pipeline_mode<synchronous>, transform_indices = @transform_6, window_bounds = array<i64: 1, 128>}, {transform_indices = @transform_7, window_bounds = array<i64: 1, 8, 16, 128>}]} {
    %c0_i32 = arith.constant 0 : i32
    %0 = arith.cmpi eq, %arg1, %c0_i32 : i32
    %1 = arith.extui %0 : i1 to i32
    %c0_i32_0 = arith.constant 0 : i32
    %2 = arith.cmpi ne, %1, %c0_i32_0 : i32
    scf.if %2 {
      %cst_77 = arith.constant 0.000000e+00 : bf16
      %89 = vector.broadcast %cst_77 : bf16 to vector<18x18x128xbf16>
      %c0_78 = arith.constant 0 : index
      %c0_79 = arith.constant 0 : index
      %c0_80 = arith.constant 0 : index
      %90 = vector.load %arg10[%c0_78, %c0_79, %c0_80] : memref<18x18x128xbf16, #tpu.memory_space<vmem>>, vector<18x18x128xbf16>
      tpu.vector_store %arg10[%c0_78, %c0_79, %c0_80], %89 {strides = array<i32>} : memref<18x18x128xbf16, #tpu.memory_space<vmem>>, vector<18x18x128xbf16>,
      %c0_81 = arith.constant 0 : index
      %c0_82 = arith.constant 0 : index
      %c0_83 = arith.constant 0 : index
      %c0_84 = arith.constant 0 : index
      %91 = vector.load %arg2[%c0_81, %c0_82, %c0_83, %c0_84] : memref<1x16x16x4xbf16, #tpu.memory_space<vmem>>, vector<1x16x16x4xbf16>
      %92 = vector.shape_cast %91 : vector<1x16x16x4xbf16> to vector<256x4xbf16>
      %c0_85 = arith.constant 0 : index
      %c0_86 = arith.constant 0 : index
      %93 = vector.load %arg3[%c0_85, %c0_86] : memref<4x128xbf16, #tpu.memory_space<vmem>>, vector<4x128xbf16>
      %cst_87 = arith.constant dense<0.000000e+00> : vector<256x128xf32>
      %94 = tpu.matmul %92, %93, %cst_87 {dimension_numbers = #tpu.dot_dimension_numbers<[1], [0], [0], [1], [0, 0, 1, 1], [], []>} : vector<256x4xbf16>, vector<4x128xbf16>, vector<256x128xf32> -> vector<256x128xf32>
      %c0_88 = arith.constant 0 : index
      %c0_89 = arith.constant 0 : index
      %95 = vector.load %arg4[%c0_88, %c0_89] : memref<1x128xf32, #tpu.memory_space<vmem>>, vector<1x128xf32>
      %96 = vector.broadcast %95 : vector<1x128xf32> to vector<256x128xf32>
      %97 = arith.mulf %94, %96 : vector<256x128xf32>
      %c0_90 = arith.constant 0 : index
      %c0_91 = arith.constant 0 : index
      %98 = vector.load %arg5[%c0_90, %c0_91] : memref<1x128xf32, #tpu.memory_space<vmem>>, vector<1x128xf32>
      %99 = vector.broadcast %98 : vector<1x128xf32> to vector<256x128xf32>
      %100 = arith.addf %97, %99 : vector<256x128xf32>
      %cst_92 = arith.constant 0.000000e+00 : f32
      %101 = vector.broadcast %cst_92 : f32 to vector<256x128xf32>
      %102 = arith.maximumf %100, %101 : vector<256x128xf32>
      %103 = vector.shape_cast %102 : vector<256x128xf32> to vector<16x16x128xf32>
      %104 = arith.truncf %103 : vector<16x16x128xf32> to vector<16x16x128xbf16>
      %c1_93 = arith.constant 1 : index
      %c1_94 = arith.constant 1 : index
      %c0_95 = arith.constant 0 : index
      %105 = vector.load %arg10[%c1_93, %c1_94, %c0_95] : memref<18x18x128xbf16, #tpu.memory_space<vmem>>, vector<16x16x128xbf16>
      tpu.vector_store %arg10[%c1_93, %c1_94, %c0_95], %104 {strides = array<i32>} : memref<18x18x128xbf16, #tpu.memory_space<vmem>>, vector<16x16x128xbf16>,
    } else {
    }
    %c8_i32 = arith.constant 8 : i32
    %3 = arith.muli %arg1, %c8_i32 : i32
    %4 = tpu.assume_multiple %3, 8 : i32
    %cst = arith.constant 0.000000e+00 : f32
    %5 = vector.broadcast %cst : f32 to vector<128x128xf32>
    %c0_i32_1 = arith.constant 0 : i32
    %6 = arith.addi %4, %c0_i32_1 : i32
    %7 = arith.index_cast %6 : i32 to index
    %c0 = arith.constant 0 : index
    %c0_2 = arith.constant 0 : index
    %8 = vector.load %arg10[%7, %c0, %c0_2] : memref<18x18x128xbf16, #tpu.memory_space<vmem>>, vector<8x16x128xbf16>
    %9 = vector.shape_cast %8 : vector<8x16x128xbf16> to vector<128x128xbf16>
    %c0_3 = arith.constant 0 : index
    %c0_4 = arith.constant 0 : index
    %c0_5 = arith.constant 0 : index
    %c0_6 = arith.constant 0 : index
    %10 = vector.load %arg6[%c0_3, %c0_4, %c0_5, %c0_6] : memref<3x3x128x128xbf16, #tpu.memory_space<vmem>>, vector<1x1x128x128xbf16>
    %11 = vector.shape_cast %10 : vector<1x1x128x128xbf16> to vector<128x128xbf16>
    %cst_7 = arith.constant dense<0.000000e+00> : vector<128x128xf32>
    %12 = tpu.matmul %9, %11, %cst_7 {dimension_numbers = #tpu.dot_dimension_numbers<[1], [0], [0], [1], [0, 0, 1, 1], [], []>} : vector<128x128xbf16>, vector<128x128xbf16>, vector<128x128xf32> -> vector<128x128xf32>
    %13 = arith.addf %5, %12 : vector<128x128xf32>
    %c0_i32_8 = arith.constant 0 : i32
    %14 = arith.addi %4, %c0_i32_8 : i32
    %15 = arith.index_cast %14 : i32 to index
    %c1 = arith.constant 1 : index
    %c0_9 = arith.constant 0 : index
    %16 = vector.load %arg10[%15, %c1, %c0_9] : memref<18x18x128xbf16, #tpu.memory_space<vmem>>, vector<8x16x128xbf16>
    %17 = vector.shape_cast %16 : vector<8x16x128xbf16> to vector<128x128xbf16>
    %c0_10 = arith.constant 0 : index
    %c1_11 = arith.constant 1 : index
    %c0_12 = arith.constant 0 : index
    %c0_13 = arith.constant 0 : index
    %18 = vector.load %arg6[%c0_10, %c1_11, %c0_12, %c0_13] : memref<3x3x128x128xbf16, #tpu.memory_space<vmem>>, vector<1x1x128x128xbf16>
    %19 = vector.shape_cast %18 : vector<1x1x128x128xbf16> to vector<128x128xbf16>
    %cst_14 = arith.constant dense<0.000000e+00> : vector<128x128xf32>
    %20 = tpu.matmul %17, %19, %cst_14 {dimension_numbers = #tpu.dot_dimension_numbers<[1], [0], [0], [1], [0, 0, 1, 1], [], []>} : vector<128x128xbf16>, vector<128x128xbf16>, vector<128x128xf32> -> vector<128x128xf32>
    %21 = arith.addf %13, %20 : vector<128x128xf32>
    %c0_i32_15 = arith.constant 0 : i32
    %22 = arith.addi %4, %c0_i32_15 : i32
    %23 = arith.index_cast %22 : i32 to index
    %c2 = arith.constant 2 : index
    %c0_16 = arith.constant 0 : index
    %24 = vector.load %arg10[%23, %c2, %c0_16] : memref<18x18x128xbf16, #tpu.memory_space<vmem>>, vector<8x16x128xbf16>
    %25 = vector.shape_cast %24 : vector<8x16x128xbf16> to vector<128x128xbf16>
    %c0_17 = arith.constant 0 : index
    %c2_18 = arith.constant 2 : index
    %c0_19 = arith.constant 0 : index
    %c0_20 = arith.constant 0 : index
    %26 = vector.load %arg6[%c0_17, %c2_18, %c0_19, %c0_20] : memref<3x3x128x128xbf16, #tpu.memory_space<vmem>>, vector<1x1x128x128xbf16>
    %27 = vector.shape_cast %26 : vector<1x1x128x128xbf16> to vector<128x128xbf16>
    %cst_21 = arith.constant dense<0.000000e+00> : vector<128x128xf32>
    %28 = tpu.matmul %25, %27, %cst_21 {dimension_numbers = #tpu.dot_dimension_numbers<[1], [0], [0], [1], [0, 0, 1, 1], [], []>} : vector<128x128xbf16>, vector<128x128xbf16>, vector<128x128xf32> -> vector<128x128xf32>
    %29 = arith.addf %21, %28 : vector<128x128xf32>
    %c1_i32 = arith.constant 1 : i32
    %30 = arith.addi %4, %c1_i32 : i32
    %31 = arith.index_cast %30 : i32 to index
    %c0_22 = arith.constant 0 : index
    %c0_23 = arith.constant 0 : index
    %32 = vector.load %arg10[%31, %c0_22, %c0_23] : memref<18x18x128xbf16, #tpu.memory_space<vmem>>, vector<8x16x128xbf16>
    %33 = vector.shape_cast %32 : vector<8x16x128xbf16> to vector<128x128xbf16>
    %c1_24 = arith.constant 1 : index
    %c0_25 = arith.constant 0 : index
    %c0_26 = arith.constant 0 : index
    %c0_27 = arith.constant 0 : index
    %34 = vector.load %arg6[%c1_24, %c0_25, %c0_26, %c0_27] : memref<3x3x128x128xbf16, #tpu.memory_space<vmem>>, vector<1x1x128x128xbf16>
    %35 = vector.shape_cast %34 : vector<1x1x128x128xbf16> to vector<128x128xbf16>
    %cst_28 = arith.constant dense<0.000000e+00> : vector<128x128xf32>
    %36 = tpu.matmul %33, %35, %cst_28 {dimension_numbers = #tpu.dot_dimension_numbers<[1], [0], [0], [1], [0, 0, 1, 1], [], []>} : vector<128x128xbf16>, vector<128x128xbf16>, vector<128x128xf32> -> vector<128x128xf32>
    %37 = arith.addf %29, %36 : vector<128x128xf32>
    %c1_i32_29 = arith.constant 1 : i32
    %38 = arith.addi %4, %c1_i32_29 : i32
    %39 = arith.index_cast %38 : i32 to index
    %c1_30 = arith.constant 1 : index
    %c0_31 = arith.constant 0 : index
    %40 = vector.load %arg10[%39, %c1_30, %c0_31] : memref<18x18x128xbf16, #tpu.memory_space<vmem>>, vector<8x16x128xbf16>
    %41 = vector.shape_cast %40 : vector<8x16x128xbf16> to vector<128x128xbf16>
    %c1_32 = arith.constant 1 : index
    %c1_33 = arith.constant 1 : index
    %c0_34 = arith.constant 0 : index
    %c0_35 = arith.constant 0 : index
    %42 = vector.load %arg6[%c1_32, %c1_33, %c0_34, %c0_35] : memref<3x3x128x128xbf16, #tpu.memory_space<vmem>>, vector<1x1x128x128xbf16>
    %43 = vector.shape_cast %42 : vector<1x1x128x128xbf16> to vector<128x128xbf16>
    %cst_36 = arith.constant dense<0.000000e+00> : vector<128x128xf32>
    %44 = tpu.matmul %41, %43, %cst_36 {dimension_numbers = #tpu.dot_dimension_numbers<[1], [0], [0], [1], [0, 0, 1, 1], [], []>} : vector<128x128xbf16>, vector<128x128xbf16>, vector<128x128xf32> -> vector<128x128xf32>
    %45 = arith.addf %37, %44 : vector<128x128xf32>
    %c1_i32_37 = arith.constant 1 : i32
    %46 = arith.addi %4, %c1_i32_37 : i32
    %47 = arith.index_cast %46 : i32 to index
    %c2_38 = arith.constant 2 : index
    %c0_39 = arith.constant 0 : index
    %48 = vector.load %arg10[%47, %c2_38, %c0_39] : memref<18x18x128xbf16, #tpu.memory_space<vmem>>, vector<8x16x128xbf16>
    %49 = vector.shape_cast %48 : vector<8x16x128xbf16> to vector<128x128xbf16>
    %c1_40 = arith.constant 1 : index
    %c2_41 = arith.constant 2 : index
    %c0_42 = arith.constant 0 : index
    %c0_43 = arith.constant 0 : index
    %50 = vector.load %arg6[%c1_40, %c2_41, %c0_42, %c0_43] : memref<3x3x128x128xbf16, #tpu.memory_space<vmem>>, vector<1x1x128x128xbf16>
    %51 = vector.shape_cast %50 : vector<1x1x128x128xbf16> to vector<128x128xbf16>
    %cst_44 = arith.constant dense<0.000000e+00> : vector<128x128xf32>
    %52 = tpu.matmul %49, %51, %cst_44 {dimension_numbers = #tpu.dot_dimension_numbers<[1], [0], [0], [1], [0, 0, 1, 1], [], []>} : vector<128x128xbf16>, vector<128x128xbf16>, vector<128x128xf32> -> vector<128x128xf32>
    %53 = arith.addf %45, %52 : vector<128x128xf32>
    %c2_i32 = arith.constant 2 : i32
    %54 = arith.addi %4, %c2_i32 : i32
    %55 = arith.index_cast %54 : i32 to index
    %c0_45 = arith.constant 0 : index
    %c0_46 = arith.constant 0 : index
    %56 = vector.load %arg10[%55, %c0_45, %c0_46] : memref<18x18x128xbf16, #tpu.memory_space<vmem>>, vector<8x16x128xbf16>
    %57 = vector.shape_cast %56 : vector<8x16x128xbf16> to vector<128x128xbf16>
    %c2_47 = arith.constant 2 : index
    %c0_48 = arith.constant 0 : index
    %c0_49 = arith.constant 0 : index
    %c0_50 = arith.constant 0 : index
    %58 = vector.load %arg6[%c2_47, %c0_48, %c0_49, %c0_50] : memref<3x3x128x128xbf16, #tpu.memory_space<vmem>>, vector<1x1x128x128xbf16>
    %59 = vector.shape_cast %58 : vector<1x1x128x128xbf16> to vector<128x128xbf16>
    %cst_51 = arith.constant dense<0.000000e+00> : vector<128x128xf32>
    %60 = tpu.matmul %57, %59, %cst_51 {dimension_numbers = #tpu.dot_dimension_numbers<[1], [0], [0], [1], [0, 0, 1, 1], [], []>} : vector<128x128xbf16>, vector<128x128xbf16>, vector<128x128xf32> -> vector<128x128xf32>
    %61 = arith.addf %53, %60 : vector<128x128xf32>
    %c2_i32_52 = arith.constant 2 : i32
    %62 = arith.addi %4, %c2_i32_52 : i32
    %63 = arith.index_cast %62 : i32 to index
    %c1_53 = arith.constant 1 : index
    %c0_54 = arith.constant 0 : index
    %64 = vector.load %arg10[%63, %c1_53, %c0_54] : memref<18x18x128xbf16, #tpu.memory_space<vmem>>, vector<8x16x128xbf16>
    %65 = vector.shape_cast %64 : vector<8x16x128xbf16> to vector<128x128xbf16>
    %c2_55 = arith.constant 2 : index
    %c1_56 = arith.constant 1 : index
    %c0_57 = arith.constant 0 : index
    %c0_58 = arith.constant 0 : index
    %66 = vector.load %arg6[%c2_55, %c1_56, %c0_57, %c0_58] : memref<3x3x128x128xbf16, #tpu.memory_space<vmem>>, vector<1x1x128x128xbf16>
    %67 = vector.shape_cast %66 : vector<1x1x128x128xbf16> to vector<128x128xbf16>
    %cst_59 = arith.constant dense<0.000000e+00> : vector<128x128xf32>
    %68 = tpu.matmul %65, %67, %cst_59 {dimension_numbers = #tpu.dot_dimension_numbers<[1], [0], [0], [1], [0, 0, 1, 1], [], []>} : vector<128x128xbf16>, vector<128x128xbf16>, vector<128x128xf32> -> vector<128x128xf32>
    %69 = arith.addf %61, %68 : vector<128x128xf32>
    %c2_i32_60 = arith.constant 2 : i32
    %70 = arith.addi %4, %c2_i32_60 : i32
    %71 = arith.index_cast %70 : i32 to index
    %c2_61 = arith.constant 2 : index
    %c0_62 = arith.constant 0 : index
    %72 = vector.load %arg10[%71, %c2_61, %c0_62] : memref<18x18x128xbf16, #tpu.memory_space<vmem>>, vector<8x16x128xbf16>
    %73 = vector.shape_cast %72 : vector<8x16x128xbf16> to vector<128x128xbf16>
    %c2_63 = arith.constant 2 : index
    %c2_64 = arith.constant 2 : index
    %c0_65 = arith.constant 0 : index
    %c0_66 = arith.constant 0 : index
    %74 = vector.load %arg6[%c2_63, %c2_64, %c0_65, %c0_66] : memref<3x3x128x128xbf16, #tpu.memory_space<vmem>>, vector<1x1x128x128xbf16>
    %75 = vector.shape_cast %74 : vector<1x1x128x128xbf16> to vector<128x128xbf16>
    %cst_67 = arith.constant dense<0.000000e+00> : vector<128x128xf32>
    %76 = tpu.matmul %73, %75, %cst_67 {dimension_numbers = #tpu.dot_dimension_numbers<[1], [0], [0], [1], [0, 0, 1, 1], [], []>} : vector<128x128xbf16>, vector<128x128xbf16>, vector<128x128xf32> -> vector<128x128xf32>
    %77 = arith.addf %69, %76 : vector<128x128xf32>
    %c0_68 = arith.constant 0 : index
    %c0_69 = arith.constant 0 : index
    %78 = vector.load %arg7[%c0_68, %c0_69] : memref<1x128xf32, #tpu.memory_space<vmem>>, vector<1x128xf32>
    %79 = vector.broadcast %78 : vector<1x128xf32> to vector<128x128xf32>
    %80 = arith.mulf %77, %79 : vector<128x128xf32>
    %c0_70 = arith.constant 0 : index
    %c0_71 = arith.constant 0 : index
    %81 = vector.load %arg8[%c0_70, %c0_71] : memref<1x128xf32, #tpu.memory_space<vmem>>, vector<1x128xf32>
    %82 = vector.broadcast %81 : vector<1x128xf32> to vector<128x128xf32>
    %83 = arith.addf %80, %82 : vector<128x128xf32>
    %cst_72 = arith.constant 0.000000e+00 : f32
    %84 = vector.broadcast %cst_72 : f32 to vector<128x128xf32>
    %85 = arith.maximumf %83, %84 : vector<128x128xf32>
    %86 = vector.shape_cast %85 : vector<128x128xf32> to vector<1x8x16x128xf32>
    %87 = arith.truncf %86 : vector<1x8x16x128xf32> to vector<1x8x16x128xbf16>
    %c0_73 = arith.constant 0 : index
    %c0_74 = arith.constant 0 : index
    %c0_75 = arith.constant 0 : index
    %c0_76 = arith.constant 0 : index
    %88 = vector.load %arg9[%c0_73, %c0_74, %c0_75, %c0_76] : memref<1x8x16x128xbf16, #tpu.memory_space<vmem>>, vector<1x8x16x128xbf16>
    tpu.vector_store %arg9[%c0_73, %c0_74, %c0_75, %c0_76], %87 {strides = array<i32>} : memref<1x8x16x128xbf16, #tpu.memory_space<vmem>>, vector<1x8x16x128xbf16>,
    return
  }
  func.func @transform_0(%arg0: i32, %arg1: i32) -> (i32, i32, i32, i32) {
    %c0_i32 = arith.constant 0 : i32
    %c0_i32_0 = arith.constant 0 : i32
    %c0_i32_1 = arith.constant 0 : i32
    %c0_i32_2 = arith.constant 0 : i32
    return %arg0, %c0_i32, %c0_i32_0, %c0_i32_1 : i32, i32, i32, i32
  }
  func.func @transform_1(%arg0: i32, %arg1: i32) -> (i32, i32) {
    %c0_i32 = arith.constant 0 : i32
    %c0_i32_0 = arith.constant 0 : i32
    %c0_i32_1 = arith.constant 0 : i32
    return %c0_i32, %c0_i32_0 : i32, i32
  }
  func.func @transform_2(%arg0: i32, %arg1: i32) -> (i32, i32) {
    %c0_i32 = arith.constant 0 : i32
    %c0_i32_0 = arith.constant 0 : i32
    %c0_i32_1 = arith.constant 0 : i32
    return %c0_i32, %c0_i32_0 : i32, i32
  }
  func.func @transform_3(%arg0: i32, %arg1: i32) -> (i32, i32) {
    %c0_i32 = arith.constant 0 : i32
    %c0_i32_0 = arith.constant 0 : i32
    %c0_i32_1 = arith.constant 0 : i32
    return %c0_i32, %c0_i32_0 : i32, i32
  }
  func.func @transform_4(%arg0: i32, %arg1: i32) -> (i32, i32, i32, i32) {
    %c0_i32 = arith.constant 0 : i32
    %c0_i32_0 = arith.constant 0 : i32
    %c0_i32_1 = arith.constant 0 : i32
    %c0_i32_2 = arith.constant 0 : i32
    %c0_i32_3 = arith.constant 0 : i32
    return %c0_i32, %c0_i32_0, %c0_i32_1, %c0_i32_2 : i32, i32, i32, i32
  }
  func.func @transform_5(%arg0: i32, %arg1: i32) -> (i32, i32) {
    %c0_i32 = arith.constant 0 : i32
    %c0_i32_0 = arith.constant 0 : i32
    %c0_i32_1 = arith.constant 0 : i32
    return %c0_i32, %c0_i32_0 : i32, i32
  }
  func.func @transform_6(%arg0: i32, %arg1: i32) -> (i32, i32) {
    %c0_i32 = arith.constant 0 : i32
    %c0_i32_0 = arith.constant 0 : i32
    %c0_i32_1 = arith.constant 0 : i32
    return %c0_i32, %c0_i32_0 : i32, i32
  }
  func.func @transform_7(%arg0: i32, %arg1: i32) -> (i32, i32, i32, i32) {
    %c0_i32 = arith.constant 0 : i32
    %c0_i32_0 = arith.constant 0 : i32
    %c0_i32_1 = arith.constant 0 : i32
    return %arg0, %arg1, %c0_i32, %c0_i32_0 : i32, i32, i32, i32
  }
}

</mosaic_0001>

<bundles_post_ra>
// kernel: tpu_custom_call.1
= control target key start
LH: loop header
LB: loop body
LE: loop exit
PB: predicated region body
PF: predicated region fallthrough
CT: control target
= control target key end

     0   :  { %12 = vsyncpa [#allocation4], 0  ;;  %s7292_s0 = inlined_call_operand.vmem [shape: bf16[2,16,16,4], index: 0, kind: input, shape index: {}]   ;;  %s7293_s1 = inlined_call_operand.vmem [shape: bf16[4,128], index: 1, kind: input, shape index: {}]   ;;  %s7294_s2 = inlined_call_operand.vmem [shape: f32[1,128], index: 2, kind: input, shape index: {}]   ;;  %s7295_s3 = inlined_call_operand.vmem [shape: f32[1,128], index: 3, kind: input, shape index: {}]   ;;  %s7296_s4 = inlined_call_operand.hbm [shape: bf16[3,3,128,128], index: 4, kind: input, shape index: {}]   ;;  %s7297_s5 = inlined_call_operand.vmem [shape: f32[1,128], index: 5, kind: input, shape index: {}]   ;;  %s7298_s6 = inlined_call_operand.vmem [shape: f32[1,128], index: 6, kind: input, shape index: {}]   ;;  %s7299_s7 = inlined_call_operand.hbm [shape: bf16[2,16,16,128], index: 7, kind: output, shape index: {}]  }
   0x1   :  { %13 = vsyncpa [#allocation5], 0 }
   0x2   :  { %15 = vsyncpa [#allocation5 + $0x1], 0  ;;  %s5936_s24 = smov 0   ;;  %s5938_s25 = smov 0  }
   0x3   :  { %s5940_s26 = smov 0   ;;  %s5942_s27 = smov 0  }
   0x4   :  { %s5944_s28 = smov 0   ;;  %s5946_s29 = smov 0  }
   0x5   :  { %s5948_s30 = smov 0   ;;  %s5950_s8 = smov 0  }
   0x6 LB: > { %s4456_s9 = sadd.s32 4294967295, %s5887_s8   ;;  %s4457_s10 = sadd.s32 4294967294, %s5887_s8   ;;  %s5887_s8 = sphi %s5950_s8, %s21_s8   ;;  %s5883_s30 = sphi %s5948_s30, %s7344_s30   ;;  %s5879_s29 = sphi %s5946_s29, %s7343_s29   ;;  %s5875_s28 = sphi %s5944_s28, %s7342_s28   ;;  %s5871_s27 = sphi %s5942_s27, %s7341_s27   ;;  %s5867_s26 = sphi %s5940_s26, %s7340_s26   ;;  %s5863_s25 = sphi %s5938_s25, %s7339_s25   ;;  %s5859_s24 = sphi %s5936_s24, %s7338_s24  }
   0x7   : > { %s30_s11 = sadd.s32 1, %s5879_s29  ;;  %s33_s12 = sadd.s32 1, %s5883_s30 }
   0x8   : > { %p31_p0 = scmp.ge.s32.totalorder %s30_s11, 2  ;;  %s194_s13 = sadd.s32 1, %s5867_s26 }
   0x9   : > { %p204_p1 = scmp.ne.s32.totalorder %s5867_s26, %s5863_s25  ;;  %p205_p2 = scmp.eq.s32.totalorder %s4456_s9, 3 }
   0xa   : > { %s7346_s11 = smov (%p31_p0, %s30_s11), 0  ;;  %s7348_s12 = smov (!%p31_p0, %s33_s12), %s5883_s30 }
   0xb   : > { %7308 = sst [smem:[#allocation9_spill]] %s7346_s11  ;;  %s190_s14 = ssub.s32 %s5879_s29, %s7346_s11 }
   0xc   : > { %p5988_p3 = por %p205_p2, %p204_p1  ;;  %p35_p4 = scmp.ge.s32.totalorder %s7348_s12, 2 }
   0xd   : > { %p210_p5 = scmp.ne.s32.totalorder %s5863_s25, %s5859_s24  ;;  %p211_p6 = scmp.eq.s32.totalorder %s4457_s10, 3 }
   0xe   : > { %s7309_s15 = scalar_select %p5988_p3, 1, 0 }
   0xf   : > { %p4458_p7 = scmp.ge.s32.totalorder %s5887_s8, 1  ;;  %s7350_s12 = smov (%p35_p4, %s7348_s12), 0 }
  0x10   : > { %7310 = sst [smem:[#allocation10_spill]] %s7350_s12  ;;  %p5997_p8 = por %p211_p6, %p210_p5 }
  0x11   : > { %p218_p9 = scmp.lt.s32.totalorder %s5887_s8, 5  ;;  %s189_s17 = ssub.s32 %s5883_s30, %s7350_s12 }
  0x12   : > { %s7311_s16 = scalar_select %p5997_p8, 1, 0 }
  0x13   : > { %s191_s18 = sor.u32 %s190_s14, %s189_s17  ;;  %p6004_p10 = pnand %p4458_p7, %p218_p9 }
  0x14   : > { %p192_p11 = scmp.eq.s32.totalorder %s191_s18, 0  ;;  %p6008_p12 = scmp.eq.s32.totalorder %s4456_s9, 0 }
  0x15   : > { %s7312_s19 = scalar_select %p6004_p10, 1, 0 }
  0x16   : > { %s7313_s20 = scalar_select %p6008_p12, 1, 0 }
  0x17   : > { %p5564_p13 = pneg %p6004_p10  ;;  %s5889_s22 = smov [#allocation3]  }
  0x18   : > { %s6015_s21 = scalar_select %p192_p11, %s5867_s26, %s194_s13  }
  0x19   : > { %s239_s23 = sshll.u32 %s5889_s22, 4  ;;  %p6019_p0 = pnand %p6008_p12, %p5564_p13  ;;  %s240_s23 = int_to_ptr.vmem [resolvable:$true] %s239_s23 }
  0x1a   : > { %s5761_s9 = scalar_lea.hbm %s7296_s4, 9216 }
  0x1b   : > { %p5762_p1 = scmp.ne.s32.totalorder %s7296_s4, %s5761_s9  ;;  %p5763_p2 = pneg %p6019_p0 }
  0x1c   : > { %p5768_p6 = scmp.lt.u32.totalorder %s5761_s9, %s7296_s4 }
  0x1d   : > { %p5764_p4 = pnand %p5763_p2, %p5762_p1 }
  0x1f   : > { %p5765_p5 = pneg %p5764_p4 }
  0x21   : > { %p5770_p7 = pnand %p5768_p6, %p5765_p5 }
  0x23   : > { %5773 = shalt.err (!%p5770_p7)
}
  0x24   : > { %s5774_s11 = scalar_lea.vmem %s240_s23, 9216  ;;  %p5782_p8 = scmp.lt.s32.totalorder %s240_s23, %s240_s23 }
  0x25   : > { %p5775_p9 = scmp.ne.s32.totalorder %s240_s23, %s5774_s11  ;;  %p5783_p3 = scmp.lt.s32.totalorder %s5774_s11, %s5774_s11 }
  0x27   : > { %p5777_p11 = pnand %p5775_p9, %p5763_p2  ;;  %p5784_p12 = por %p5783_p3, %p5782_p8 }
  0x29   : > { %p5778_p13 = pneg %p5777_p11 }
  0x2b   : > { %p5785_p10 = pnand %p5784_p12, %p5778_p13 }
  0x2d   : > { %5788 = shalt.err (!%p5785_p10)
}
  0x2e   : > { %s5890_s12 = smov 64   ;;  %s5891_s14 = smov 4  }
  0x2f   : > { %5567 = dma.hbm_to_vmem [thread:$0]  (!%p6019_p0), %s7296_s4, 9216, %s240_s23, [#allocation4], %s5890_s12, %s5890_s12, %s5891_s14  }
  0x30   : > { %p7315_p1 = scmp.ne.s32.totalorder %s7312_s19, 0 }
  0x32   : > { %269 = sbr.rel (%p7315_p1) target bundleno = 811 (0x32b), region = 48 }
  0x39   : > { %p7316_p4 = scmp.ne.s32.totalorder %s7313_s20, 0 }
  0x3b   : > { %5850 = dma.done.wait (%p7316_p4), [#allocation4], 9216  }
  0x3c   : > { %5852 = vsyncadd (%p7316_p4), [#allocation4], 4294958080  ;;  %s298_s11 = sand.u32 1, %s5863_s25   ;;  %p301_p3 = scmp.lt.s32.totalorder %s5875_s28, 1 }
  0x3d   : > { %s4463_s10 = sshll.u32 %s298_s11, 6  ;;  %p4466_p8 = scmp.ne.s32.totalorder %s5871_s27, 0 }
  0x3e   : > { %s302_s9 = scalar_select %p301_p3, %s5875_s28, 1 }
  0x3f   : > { %s6055_s12 = scalar_lea.vmem [#allocation6], %s4463_s10  ;;  %311 = sbr.rel (%p4466_p8) target bundleno = 375 (0x177), region = 56  ;;  %v398_v0 = vld [vmem:[%s7293_s1] sm:$0x3] (!%p4466_p8)  ;;  %vm528_vm0 = vcmask (!%p4466_p8), 1041408   ;;  %vm479_vm1 = vcmask (!%p4466_p8), 31744  }
  0x40   : > { %s4829_s13 = sshll.u32 %s302_s9, 7  ;;  %5556 = vmatprep.subr.msk.bf16.mxu0 (!%p4466_p8), %vm528_vm0, %v398_v0  ;;  %5557 = vmatprep.subr.msk.bf16.mxu1 (!%p4466_p8), %vm528_vm0, %v398_v0  ;;  %v530_v2 = vsel (!%p4466_p8), %vm528_vm0, %v398_v0, 0  ;;  %v5892_v5 = vmov (!%p4466_p8), 0   ;;  %v6096_v19 = vld [vmem:[%s7294_s2] ss:$0 sm:$0xff] (!%p4466_p8)  ;;  %vm1223_vm2 = vcmask (!%p4466_p8), 1043456  }
  0x41   : > { %s6053_s19 = scalar_lea.vmem %s7292_s0, %s4829_s13  ;;  %5089 = vmatpush3.bf16.msra.mxu0 (!%p4466_p8), %v530_v2  ;;  %5411 = vmatpush3.bf16.msra.mxu1 (!%p4466_p8), %v530_v2  ;;  %312 = vst [vmem:[#allocation2] sm:$0xf] (!%p4466_p8), %v5892_v5  ;;  %313 = vst [vmem:[#allocation2 + $0x4] sm:$0xf] (!%p4466_p8), %v5892_v5  ;;  %v6101_v21 = vld [vmem:[%s7295_s3] ss:$0 sm:$0xff] (!%p4466_p8) }
  0x42   : > { %v5645_v1 = vld [vmem:[%s6053_s19] sm:$0xff] (!%p4466_p8)   ;;  %v5647_v4 = vld [vmem:[%s6053_s19 + $0x8] sm:$0xff] (!%p4466_p8)   ;;  %314 = vst [vmem:[#allocation2 + $0x8] sm:$0x1] (!%p4466_p8), %v5892_v5  ;;  %318 = vst [vmem:[#allocation2 + $0x18] sm:$0xf] (!%p4466_p8), %v5892_v5 }
  0x43   : > { %v5646_v3 = vld [vmem:[%s6053_s19 + $0x40] sm:$0xff] (!%p4466_p8)   ;;  %5090 = vmatprep.mubr.msk.bf16.mxu0 (!%p4466_p8), %vm479_vm1, %v5645_v1  ;;  %363 = vst [vmem:[#allocation2 + $0xcc] sm:$0xf] (!%p4466_p8), %v5892_v5  ;;  %364 = vst [vmem:[#allocation2 + $0xd0] sm:$0xf] (!%p4466_p8), %v5892_v5  ;;  %v5648_v6 = vld [vmem:[%s6053_s19 + $0x48] sm:$0xff] (!%p4466_p8)  }
  0x44   : > { %365 = vst [vmem:[#allocation2 + $0xd4] sm:$0x1] (!%p4466_p8), %v5892_v5  ;;  %315 = vst [vmem:[#allocation2 + $0xc] sm:$0xf] (!%p4466_p8), %v5892_v5  ;;  %5106 = vmatprep.mubr.msk.bf16.mxu1 (!%p4466_p8), %vm479_vm1, %v5646_v3  ;;  %5091 = vmatmul.mubr.msk.bf16.vlgmr.msra.gmra.mrb[0].mxu0 (!%p4466_p8), %vm479_vm1, %v5647_v4  ;;  %v5649_v7 = vld [vmem:[%s6053_s19 + $0x10] sm:$0xff] (!%p4466_p8)   ;;  %v5651_v9 = vld [vmem:[%s6053_s19 + $0x18] sm:$0xff] (!%p4466_p8)  }
  0x45   : > { %316 = vst [vmem:[#allocation2 + $0x10] sm:$0xf] (!%p4466_p8), %v5892_v5  ;;  %317 = vst [vmem:[#allocation2 + $0x14] sm:$0x1] (!%p4466_p8), %v5892_v5  ;;  %5107 = vmatmul.mubr.msk.bf16.vlgmr.msra.gmra.mrb[0].mxu1 (!%p4466_p8), %vm479_vm1, %v5648_v6  ;;  %v5650_v8 = vld [vmem:[%s6053_s19 + $0x50] sm:$0xff] (!%p4466_p8)   ;;  %5094 = vmatprep.mubr.msk.bf16.mxu0 (!%p4466_p8), %vm479_vm1, %v5649_v7  ;;  %v5652_v10 = vld [vmem:[%s6053_s19 + $0x58] sm:$0xff] (!%p4466_p8)  }
  0x46   : > { %319 = vst [vmem:[#allocation2 + $0x1c] sm:$0xf] %v5892_v5  ;;  %320 = vst [vmem:[#allocation2 + $0x20] sm:$0x1] %v5892_v5  ;;  %5110 = vmatprep.mubr.msk.bf16.mxu1 %vm479_vm1, %v5650_v8  ;;  %v5653_v11 = vld [vmem:[%s6053_s19 + $0x20] sm:$0xff]   ;;  %v5655_v13 = vld [vmem:[%s6053_s19 + $0x28] sm:$0xff]  }
  0x47   : > { %321 = vst [vmem:[#allocation2 + $0x24] sm:$0xf] %v5892_v5  ;;  %322 = vst [vmem:[#allocation2 + $0x28] sm:$0xf] %v5892_v5  ;;  %v5654_v12 = vld [vmem:[%s6053_s19 + $0x60] sm:$0xff]   ;;  %v5656_v14 = vld [vmem:[%s6053_s19 + $0x68] sm:$0xff]  }
  0x48   : > { %323 = vst [vmem:[#allocation2 + $0x2c] sm:$0x1] %v5892_v5  ;;  %324 = vst [vmem:[#allocation2 + $0x30] sm:$0xf] %v5892_v5  ;;  %v5657_v15 = vld [vmem:[%s6053_s19 + $0x30] sm:$0xff]   ;;  %v5659_v17 = vld [vmem:[%s6053_s19 + $0x38] sm:$0xff]  }
  0x49   : > { %325 = vst [vmem:[#allocation2 + $0x34] sm:$0xf] %v5892_v5  ;;  %326 = vst [vmem:[#allocation2 + $0x38] sm:$0x1] %v5892_v5  ;;  %v5658_v16 = vld [vmem:[%s6053_s19 + $0x70] sm:$0xff]   ;;  %v5660_v18 = vld [vmem:[%s6053_s19 + $0x78] sm:$0xff]  }
  0x4a   : > { %327 = vst [vmem:[#allocation2 + $0x3c] sm:$0xf] %v5892_v5  ;;  %328 = vst [vmem:[#allocation2 + $0x40] sm:$0xf] %v5892_v5  ;;  %vm1224_vm3 = vsmask.f32 7938 }
  0x4b   : > { %329 = vst [vmem:[#allocation2 + $0x44] sm:$0x1] %v5892_v5  ;;  %330 = vst [vmem:[#allocation2 + $0x48] sm:$0xf] %v5892_v5  ;;  %vm899_vm4 = vsmask.f32 256 }
  0x4c   : > { %331 = vst [vmem:[#allocation2 + $0x4c] sm:$0xf] %v5892_v5  ;;  %332 = vst [vmem:[#allocation2 + $0x50] sm:$0x1] %v5892_v5  ;;  %5095 = vmatmul.mubr.msk.bf16.gmra.mrb[4].mxu0 %vm479_vm1, %v5651_v9  ;;  %vm900_vm5 = vsmask.f32 4368 }
  0x4d   : > { %333 = vst [vmem:[#allocation2 + $0x54] sm:$0xf] %v5892_v5  ;;  %334 = vst [vmem:[#allocation2 + $0x58] sm:$0xf] %v5892_v5  ;;  %5111 = vmatmul.mubr.msk.bf16.gmra.mrb[4].mxu1 %vm479_vm1, %v5652_v10  ;;  %5098 = vmatprep.mubr.msk.bf16.mxu0 %vm479_vm1, %v5653_v11  ;;  %vm1230_vm6 = vcmask 1040384  }
  0x4e   : > { %335 = vst [vmem:[#allocation2 + $0x5c] sm:$0x1] %v5892_v5  ;;  %336 = vst [vmem:[#allocation2 + $0x60] sm:$0xf] %v5892_v5  ;;  %5114 = vmatprep.mubr.msk.bf16.mxu1 %vm479_vm1, %v5654_v12  ;;  %v1235_v62 = vld [vmem:[#allocation2 + $0x18] sm:$0xf] }
  0x4f   : > { %337 = vst [vmem:[#allocation2 + $0x64] sm:$0xf] %v5892_v5  ;;  %338 = vst [vmem:[#allocation2 + $0x68] sm:$0x1] %v5892_v5 }
  0x50   : > { %339 = vst [vmem:[#allocation2 + $0x6c] sm:$0xf] %v5892_v5  ;;  %340 = vst [vmem:[#allocation2 + $0x70] sm:$0xf] %v5892_v5 }
  0x51   : > { %341 = vst [vmem:[#allocation2 + $0x74] sm:$0x1] %v5892_v5  ;;  %342 = vst [vmem:[#allocation2 + $0x78] sm:$0xf] %v5892_v5 }
  0x52   : > { %343 = vst [vmem:[#allocation2 + $0x7c] sm:$0xf] %v5892_v5  ;;  %344 = vst [vmem:[#allocation2 + $0x80] sm:$0x1] %v5892_v5 }
  0x53   : > { %345 = vst [vmem:[#allocation2 + $0x84] sm:$0xf] %v5892_v5  ;;  %346 = vst [vmem:[#allocation2 + $0x88] sm:$0xf] %v5892_v5 }
  0x54   : > { %347 = vst [vmem:[#allocation2 + $0x8c] sm:$0x1] %v5892_v5  ;;  %348 = vst [vmem:[#allocation2 + $0x90] sm:$0xf] %v5892_v5  ;;  %5099 = vmatmul.mubr.msk.bf16.gmra.mrb[8].mxu0 %vm479_vm1, %v5655_v13 }
  0x55   : > { %349 = vst [vmem:[#allocation2 + $0x94] sm:$0xf] %v5892_v5  ;;  %350 = vst [vmem:[#allocation2 + $0x98] sm:$0x1] %v5892_v5  ;;  %5115 = vmatmul.mubr.msk.bf16.gmra.mrb[8].mxu1 %vm479_vm1, %v5656_v14  ;;  %5102 = vmatprep.mubr.msk.bf16.mxu0 %vm479_vm1, %v5657_v15 }
  0x56   : > { %351 = vst [vmem:[#allocation2 + $0x9c] sm:$0xf] %v5892_v5  ;;  %352 = vst [vmem:[#allocation2 + $0xa0] sm:$0xf] %v5892_v5  ;;  %5118 = vmatprep.mubr.msk.bf16.mxu1 %vm479_vm1, %v5658_v16 }
  0x57   : > { %353 = vst [vmem:[#allocation2 + $0xa4] sm:$0x1] %v5892_v5  ;;  %354 = vst [vmem:[#allocation2 + $0xa8] sm:$0xf] %v5892_v5 }
  0x58   : > { %355 = vst [vmem:[#allocation2 + $0xac] sm:$0xf] %v5892_v5  ;;  %356 = vst [vmem:[#allocation2 + $0xb0] sm:$0x1] %v5892_v5  ;;  %v1291_v13 = vld [vmem:[#allocation2 + $0x78] sm:$0xf] }
  0x59   : > { %357 = vst [vmem:[#allocation2 + $0xb4] sm:$0xf] %v5892_v5  ;;  %358 = vst [vmem:[#allocation2 + $0xb8] sm:$0xf] %v5892_v5 }
  0x5a   : > { %359 = vst [vmem:[#allocation2 + $0xbc] sm:$0x1] %v5892_v5  ;;  %360 = vst [vmem:[#allocation2 + $0xc0] sm:$0xf] %v5892_v5 }
  0x5b   : > { %361 = vst [vmem:[#allocation2 + $0xc4] sm:$0xf] %v5892_v5  ;;  %362 = vst [vmem:[#allocation2 + $0xc8] sm:$0x1] %v5892_v5 }
  0x5c   : > { %5103 = vmatmul.mubr.msk.bf16.gmra.mrb[12].mxu0 %vm479_vm1, %v5659_v17  ;;  %vm6140_vm7 = vmand %vm1223_vm2, %vm1224_vm3 }
  0x5d   : > { %5119 = vmatmul.mubr.msk.bf16.gmra.mrb[12].mxu1 %vm479_vm1, %v5660_v18  ;;  %vm6158_vm8 = vmor %vm899_vm4, %vm900_vm5 }
  0x5e   : > { %vm6168_vm9 = vmand %vm1230_vm6, %vm899_vm4 }
 0x117   : > { %v5092_v20 = vpop.f32.mrb[0].mxu0 }
 0x118   : > { %v702_v22 = vmul.f32 %v5092_v20, %v6096_v19  ;;  %v5108_v23 = vpop.f32.mrb[0].mxu1  ;;  %v566_v24 = vpop.f32.mrb[1].mxu0 }
 0x119   : > { %v718_v25 = vmul.f32 %v5108_v23, %v6096_v19  ;;  %v700_v26 = vmul.f32 %v6096_v19, %v566_v24  ;;  %v630_v27 = vpop.f32.mrb[1].mxu1  ;;  %v5093_v28 = vpop.f32.mrb[2].mxu0 }
 0x11a   : > { %v741_v29 = vadd.f32 %v6101_v21, %v702_v22  ;;  %v716_v30 = vmul.f32 %v6096_v19, %v630_v27  ;;  %v703_v31 = vmul.f32 %v5093_v28, %v6096_v19  ;;  %v5109_v32 = vpop.f32.mrb[2].mxu1  ;;  %v569_v33 = vpop.f32.mrb[3].mxu0  ;;  %v1226_v22 = vld [vmem:[#allocation2 + $0xc] sm:$0xf] }
 0x11b   : > { %v757_v34 = vadd.f32 %v6101_v21, %v718_v25  ;;  %v739_v35 = vadd.f32 %v6101_v21, %v700_v26  ;;  %v719_v36 = vmul.f32 %v5109_v32, %v6096_v19  ;;  %v701_v37 = vmul.f32 %v6096_v19, %v569_v33  ;;  %v633_v38 = vpop.f32.mrb[3].mxu1 }
 0x11c   : > { %v773_v39 = vmax.f32 %v741_v29, 0.0  ;;  %v755_v40 = vadd.f32 %v6101_v21, %v716_v30  ;;  %v742_v41 = vadd.f32 %v6101_v21, %v703_v31  ;;  %v717_v42 = vmul.f32 %v6096_v19, %v633_v38  ;;  %v1284_v29 = vld [vmem:[#allocation2 + $0x6c] sm:$0xf] }
 0x11d   : > { %v789_v43 = vmax.f32 %v757_v34, 0.0  ;;  %v771_v44 = vmax.f32 %v739_v35, 0.0  ;;  %v758_v45 = vadd.f32 %v6101_v21, %v719_v36  ;;  %v6118_v46 = vadd.f32 %v6101_v21, %v701_v37  ;;  %v1239_v36 = vld [vmem:[#allocation2 + $0x20] sm:$0x1] }
 0x11e   : > { %v4832_v47 = vpack.c.bf16 %v773_v39, %v773_v39  ;;  %v787_v48 = vmax.f32 %v755_v40, 0.0  ;;  %v774_v49 = vmax.f32 %v742_v41, 0.0  ;;  %v6121_v50 = vadd.f32 %v6101_v21, %v717_v42 }
 0x11f   : > { %v4848_v51 = vpack.c.bf16 %v789_v43, %v789_v43  ;;  %v4830_v52 = vpack.c.bf16 %v771_v44, %v771_v44  ;;  %v790_v53 = vmax.f32 %v758_v45, 0.0  ;;  %v772_v54 = vmax.f32 %v6118_v46, 0.0  ;;  %v6124_v55 = vpop.f32.mrb[4].mxu0 }
 0x120   : > { %v920_v56 = vshrl.u32 %v4832_v47, 16  ;;  %v923_v57 = vshll.u32 %v4832_v47, 16  ;;  %v4846_v58 = vpack.c.bf16 %v787_v48, %v787_v48  ;;  %v4833_v59 = vpack.c.bf16 %v774_v49, %v774_v49  ;;  %v6126_v60 = vpop.f32.mrb[4].mxu1  ;;  %v6128_v61 = vpop.f32.mrb[5].mxu0 }
 0x121   : > { %v1056_v63 = vshrl.u32 %v4848_v51, 16  ;;  %v1059_v0 = vshll.u32 %v4848_v51, 16  ;;  %v903_v1 = vshrl.u32 %v4830_v52, 16  ;;  %v906_v2 = vshll.u32 %v4830_v52, 16  ;;  %v6130_v3 = vpop.f32.mrb[5].mxu1  ;;  %v6132_v4 = vpop.f32.mrb[6].mxu0 }
 0x122   : > { %v922_v5 = vrot.slane %v920_v56, 7  ;;  %v1039_v6 = vshrl.u32 %v4846_v58, 16  ;;  %v1042_v7 = vshll.u32 %v4846_v58, 16  ;;  %v928_v8 = vshrl.u32 %v4833_v59, 16  ;;  %v6134_v9 = vpop.f32.mrb[6].mxu1  ;;  %v6136_v10 = vpop.f32.mrb[7].mxu0 }
 0x123   : > { %v6144_v12 = vrot.slane %v1056_v63, 7  ;;  %v6146_v14 = vrot.slane %v903_v1, 7  ;;  %v931_v15 = vshll.u32 %v4833_v59, 16  ;;  %v4849_v16 = vpack.c.bf16 %v790_v53, %v790_v53  ;;  %v6148_v17 = vpop.f32.mrb[7].mxu1 }
 0x124   : > { %v925_v18 = vor.u32 %v923_v57, %v922_v5  ;;  %v926_v20 = vrot.slane %v922_v5, 4  ;;  %v6150_v23 = vrot.slane %v1039_v6, 7  ;;  %v930_v24 = vrot.slane %v928_v8, 7 }
 0x125   : > { %v1061_v25 = vor.u32 %v1059_v0, %v6144_v12  ;;  %v1062_v26 = vrot.slane %v6144_v12, 4  ;;  %v908_v27 = vor.u32 %v906_v2, %v6146_v14  ;;  %v909_v28 = vrot.slane %v6146_v14, 4 }
 0x126   : > { %v1236_v31 = vsel %vm6140_vm7, %v925_v18, %v1235_v62  ;;  %v1044_v32 = vor.u32 %v1042_v7, %v6150_v23  ;;  %v1045_v33 = vrot.slane %v6150_v23, 4  ;;  %v933_v34 = vor.u32 %v931_v15, %v930_v24  ;;  %v1249_v23 = vld [vmem:[#allocation2 + $0x30] sm:$0xf] }
 0x127   : > { %1237 = vst [vmem:[#allocation2 + $0x18] sm:$0xf] %v1236_v31  ;;  %v1292_v37 = vsel %vm6140_vm7, %v1061_v25, %v1291_v13  ;;  %v1227_v38 = vsel %vm6140_vm7, %v908_v27, %v1226_v22  ;;  %v935_v39 = vrot.slane %v930_v24, 4  ;;  %v1064_v40 = vshrl.u32 %v4849_v16, 16  ;;  %v6176_v41 = vpop.f32.mrb[8].mxu0 }
 0x128   : > { %1293 = vst [vmem:[#allocation2 + $0x78] sm:$0xf] %v1292_v37  ;;  %1228 = vst [vmem:[#allocation2 + $0xc] sm:$0xf] %v1227_v38  ;;  %v1285_v42 = vsel %vm6140_vm7, %v1044_v32, %v1284_v29  ;;  %v934_v43 = vsel %vm6158_vm8, %v926_v20, %v933_v34  ;;  %v1067_v44 = vshll.u32 %v4849_v16, 16  ;;  %v4831_v45 = vpack.c.bf16 %v772_v54, %v772_v54  ;;  %v6182_v46 = vpop.f32.mrb[8].mxu1 }
 0x129   : > { %v6184_v47 = vpop.f32.mrb[9].mxu0  ;;  %1286 = vst [vmem:[#allocation2 + $0x6c] sm:$0xf] %v1285_v42  ;;  %1238 = vst [vmem:[#allocation2 + $0x1c] sm:$0xf] %v934_v43  ;;  %v1240_v48 = vsel %vm6168_vm9, %v935_v39, %v1239_v36  ;;  %v1066_v49 = vrot.slane %v1064_v40, 7  ;;  %v706_v52 = vmul.f32 %v6124_v55, %v6096_v19  ;;  %v722_v59 = vmul.f32 %v6126_v60, %v6096_v19 }
 0x12a   : > { %v788_v51 = vmax.f32 %v6121_v50, 0.0  ;;  %v6191_v53 = vpop.f32.mrb[9].mxu1  ;;  %v6193_v56 = vpop.f32.mrb[10].mxu0  ;;  %1241 = vst [vmem:[#allocation2 + $0x20] sm:$0x1] %v1240_v48  ;;  %v911_v57 = vshrl.u32 %v4831_v45, 16  ;;  %v704_v62 = vmul.f32 %v6096_v19, %v6128_v61  ;;  %v720_v60 = vmul.f32 %v6096_v19, %v6130_v3 }
 0x12b   : > { %v1295_v54 = vld [vmem:[#allocation2 + $0x80] sm:$0x1]  ;;  %v914_v58 = vshll.u32 %v4831_v45, 16  ;;  %v6199_v63 = vpop.f32.mrb[10].mxu1  ;;  %v6201_v50 = vpop.f32.mrb[11].mxu0  ;;  %v1069_v0 = vor.u32 %v1067_v44, %v1066_v49  ;;  %v1071_v55 = vrot.slane %v1066_v49, 4  ;;  %v745_v2 = vadd.f32 %v6101_v21, %v706_v52 }
 0x12c   : > { %v4847_v1 = vpack.c.bf16 %v788_v51, %v788_v51  ;;  %v6204_v5 = vpop.f32.mrb[11].mxu1  ;;  %v913_v6 = vrot.slane %v911_v57, 7  ;;  %v761_v7 = vadd.f32 %v6101_v21, %v722_v59  ;;  %v743_v8 = vadd.f32 %v6101_v21, %v704_v62  ;;  %v1232_v13 = vld [vmem:[#allocation2 + $0x14] sm:$0x1] }
 0x12d   : > { %v1070_v61 = vsel %vm6158_vm8, %v1062_v26, %v1069_v0  ;;  %v1296_v12 = vsel %vm6168_vm9, %v1071_v55, %v1295_v54  ;;  %v777_v22 = vmax.f32 %v745_v2, 0.0  ;;  %v759_v29 = vadd.f32 %v6101_v21, %v720_v60  ;;  %v1288_v34 = vld [vmem:[#allocation2 + $0x74] sm:$0x1] }
 0x12e   : > { %v1047_v15 = vshrl.u32 %v4847_v1, 16  ;;  %v1050_v16 = vshll.u32 %v4847_v1, 16  ;;  %1294 = vst [vmem:[#allocation2 + $0x7c] sm:$0xf] %v1070_v61  ;;  %1297 = vst [vmem:[#allocation2 + $0x80] sm:$0x1] %v1296_v12  ;;  %v916_v18 = vor.u32 %v914_v58, %v913_v6  ;;  %v707_v3 = vmul.f32 %v6132_v4, %v6096_v19 }
 0x12f   : > { %v918_v20 = vrot.slane %v913_v6, 4  ;;  %v793_v24 = vmax.f32 %v761_v7, 0.0  ;;  %v775_v27 = vmax.f32 %v743_v8, 0.0  ;;  %v6217_v26 = vpop.f32.mrb[12].mxu0  ;;  %v4836_v36 = vpack.c.bf16 %v777_v22, %v777_v22  ;;  %v1305_v6 = vld [vmem:[#allocation2 + $0x90] sm:$0xf] }
 0x130   : > { %v1049_v25 = vrot.slane %v1047_v15, 7  ;;  %v917_v31 = vsel %vm6158_vm8, %v909_v28, %v916_v18  ;;  %v6225_v38 = vpop.f32.mrb[12].mxu1  ;;  %v6227_v39 = vpop.f32.mrb[13].mxu0  ;;  %v791_v43 = vmax.f32 %v759_v29, 0.0  ;;  %v746_v2 = vadd.f32 %v6101_v21, %v707_v3 }
 0x131   : > { %v1233_v32 = vsel %vm6168_vm9, %v918_v20, %v1232_v13  ;;  %v4852_v37 = vpack.c.bf16 %v793_v24, %v793_v24  ;;  %1229 = vst [vmem:[#allocation2 + $0x10] sm:$0xf] %v917_v31  ;;  %v4834_v42 = vpack.c.bf16 %v775_v27, %v775_v27  ;;  %v6229_v14 = vpop.f32.mrb[13].mxu1  ;;  %v6231_v44 = vpop.f32.mrb[14].mxu0  ;;  %v954_v28 = vshrl.u32 %v4836_v36, 16 }
 0x132   : > { %1234 = vst [vmem:[#allocation2 + $0x14] sm:$0x1] %v1233_v32  ;;  %v1052_v4 = vor.u32 %v1050_v16, %v1049_v25  ;;  %v1054_v40 = vrot.slane %v1049_v25, 4  ;;  %v957_v45 = vshll.u32 %v4836_v36, 16  ;;  %v6233_v51 = vpop.f32.mrb[14].mxu1  ;;  %v6235_v52 = vpop.f32.mrb[15].mxu0  ;;  %v4850_v1 = vpack.c.bf16 %v791_v43, %v791_v43 }
 0x133   : > { %v1090_v48 = vshrl.u32 %v4852_v37, 16  ;;  %v1093_v49 = vshll.u32 %v4852_v37, 16  ;;  %v937_v58 = vshrl.u32 %v4834_v42, 16  ;;  %v940_v59 = vshll.u32 %v4834_v42, 16  ;;  %v6243_v62 = vpop.f32.mrb[15].mxu1 }
 0x134   : > { %v1053_v54 = vsel %vm6158_vm8, %v1045_v33, %v1052_v4  ;;  %v1289_v57 = vsel %vm6168_vm9, %v1054_v40, %v1288_v34  ;;  %v6245_v0 = vrot.slane %v954_v28, 7  ;;  %v723_v33 = vmul.f32 %v6134_v9, %v6096_v19  ;;  %v1242_v16 = vld [vmem:[#allocation2 + $0x24] sm:$0xf] }
 0x135   : > { %1287 = vst [vmem:[#allocation2 + $0x70] sm:$0xf] %v1053_v54  ;;  %1290 = vst [vmem:[#allocation2 + $0x74] sm:$0x1] %v1289_v57  ;;  %v6247_v55 = vrot.slane %v1090_v48, 7  ;;  %v6250_v7 = vrot.slane %v937_v58, 7  ;;  %v705_v8 = vmul.f32 %v6096_v19, %v6136_v10  ;;  %v721_v60 = vmul.f32 %v6096_v19, %v6148_v17 }
 0x136   : > { %v959_v61 = vor.u32 %v957_v45, %v6245_v0  ;;  %v960_v12 = vrot.slane %v6245_v0, 4  ;;  %v1073_v9 = vshrl.u32 %v4850_v1, 16  ;;  %v1076_v22 = vshll.u32 %v4850_v1, 16  ;;  %v1298_v32 = vld [vmem:[#allocation2 + $0x84] sm:$0xf] }
 0x137   : > { %v1095_v13 = vor.u32 %v1093_v49, %v6247_v55  ;;  %v1096_v15 = vrot.slane %v6247_v55, 4  ;;  %v942_v18 = vor.u32 %v940_v59, %v6250_v7  ;;  %v943_v20 = vrot.slane %v6250_v7, 4 }
 0x138   : > { %v1250_v10 = vsel %vm6140_vm7, %v959_v61, %v1249_v23  ;;  %v778_v24 = vmax.f32 %v746_v2, 0.0  ;;  %v762_v25 = vadd.f32 %v6101_v21, %v723_v33  ;;  %v1075_v29 = vrot.slane %v1073_v9, 7  ;;  %v1253_v23 = vld [vmem:[#allocation2 + $0x38] sm:$0x1] }
 0x139   : > { %v1306_v17 = vsel %vm6140_vm7, %v1095_v13, %v1305_v6  ;;  %1251 = vst [vmem:[#allocation2 + $0x30] sm:$0xf] %v1250_v10  ;;  %v1243_v27 = vsel %vm6140_vm7, %v942_v18, %v1242_v16  ;;  %v744_v3 = vadd.f32 %v6101_v21, %v705_v8  ;;  %v760_v31 = vadd.f32 %v6101_v21, %v721_v60  ;;  %v1309_v9 = vld [vmem:[#allocation2 + $0x98] sm:$0x1] }
 0x13a   : > { %1307 = vst [vmem:[#allocation2 + $0x90] sm:$0xf] %v1306_v17  ;;  %1244 = vst [vmem:[#allocation2 + $0x24] sm:$0xf] %v1243_v27  ;;  %v4837_v34 = vpack.c.bf16 %v778_v24, %v778_v24  ;;  %v794_v36 = vmax.f32 %v762_v25, 0.0  ;;  %v710_v37 = vmul.f32 %v6176_v41, %v6096_v19  ;;  %v726_v4 = vmul.f32 %v6182_v46, %v6096_v19 }
 0x13b   : > { %v1078_v40 = vor.u32 %v1076_v22, %v1075_v29  ;;  %v1079_v42 = vrot.slane %v1075_v29, 4  ;;  %v776_v43 = vmax.f32 %v744_v3, 0.0  ;;  %v792_v28 = vmax.f32 %v760_v31, 0.0  ;;  %v1246_v31 = vld [vmem:[#allocation2 + $0x2c] sm:$0x1] }
 0x13c   : > { %v962_v45 = vshrl.u32 %v4837_v34, 16  ;;  %v965_v48 = vshll.u32 %v4837_v34, 16  ;;  %v4853_v49 = vpack.c.bf16 %v794_v36, %v794_v36  ;;  %v749_v54 = vadd.f32 %v6101_v21, %v710_v37 }
 0x13d   : > { %v1299_v57 = vsel %vm6140_vm7, %v1078_v40, %v1298_v32  ;;  %v4835_v58 = vpack.c.bf16 %v776_v43, %v776_v43  ;;  %v4851_v59 = vpack.c.bf16 %v792_v28, %v792_v28  ;;  %v765_v0 = vadd.f32 %v6101_v21, %v726_v4  ;;  %v1302_v32 = vld [vmem:[#allocation2 + $0x8c] sm:$0x1] }
 0x13e   : > { %1300 = vst [vmem:[#allocation2 + $0x84] sm:$0xf] %v1299_v57  ;;  %v964_v41 = vrot.slane %v962_v45, 7  ;;  %v1098_v1 = vshrl.u32 %v4853_v49, 16  ;;  %v1101_v46 = vshll.u32 %v4853_v49, 16  ;;  %v781_v2 = vmax.f32 %v749_v54, 0.0 }
 0x13f   : > { %v945_v6 = vshrl.u32 %v4835_v58, 16  ;;  %v948_v33 = vshll.u32 %v4835_v58, 16  ;;  %v1081_v8 = vshrl.u32 %v4851_v59, 16  ;;  %v1084_v60 = vshll.u32 %v4851_v59, 16  ;;  %v1263_v54 = vld [vmem:[#allocation2 + $0x48] sm:$0xf] }
 0x140   : > { %v967_v61 = vor.u32 %v965_v48, %v964_v41  ;;  %v969_v13 = vrot.slane %v964_v41, 4  ;;  %v1100_v16 = vrot.slane %v1098_v1, 7  ;;  %v4840_v18 = vpack.c.bf16 %v781_v2, %v781_v2 }
 0x141   : > { %v947_v22 = vrot.slane %v945_v6, 7  ;;  %v1083_v10 = vrot.slane %v1081_v8, 7  ;;  %v797_v17 = vmax.f32 %v765_v0, 0.0  ;;  %v708_v24 = vmul.f32 %v6096_v19, %v6184_v47 }
 0x142   : > { %v968_v25 = vsel %vm6158_vm8, %v960_v12, %v967_v61  ;;  %v1254_v27 = vsel %vm6168_vm9, %v969_v13, %v1253_v23  ;;  %v1103_v29 = vor.u32 %v1101_v46, %v1100_v16  ;;  %v1105_v3 = vrot.slane %v1100_v16, 4 }
 0x143   : > { %1252 = vst [vmem:[#allocation2 + $0x34] sm:$0xf] %v968_v25  ;;  %1255 = vst [vmem:[#allocation2 + $0x38] sm:$0x1] %v1254_v27  ;;  %v950_v34 = vor.u32 %v948_v33, %v947_v22  ;;  %v952_v36 = vrot.slane %v947_v22, 4  ;;  %v1086_v37 = vor.u32 %v1084_v60, %v1083_v10  ;;  %v1088_v4 = vrot.slane %v1083_v10, 4 }
 0x144   : > { %v1104_v47 = vsel %vm6158_vm8, %v1096_v15, %v1103_v29  ;;  %v1310_v12 = vsel %vm6168_vm9, %v1105_v3, %v1309_v9  ;;  %v988_v40 = vshrl.u32 %v4840_v18, 16  ;;  %v991_v43 = vshll.u32 %v4840_v18, 16  ;;  %v1319_v33 = vld [vmem:[#allocation2 + $0xa8] sm:$0xf] }
 0x145   : > { %1308 = vst [vmem:[#allocation2 + $0x94] sm:$0xf] %v1104_v47  ;;  %1311 = vst [vmem:[#allocation2 + $0x98] sm:$0x1] %v1310_v12  ;;  %v951_v28 = vsel %vm6158_vm8, %v943_v20, %v950_v34  ;;  %v1247_v45 = vsel %vm6168_vm9, %v952_v36, %v1246_v31  ;;  %v1087_v55 = vsel %vm6158_vm8, %v1079_v42, %v1086_v37 }
 0x146   : > { %v1303_v15 = vsel %vm6168_vm9, %v1088_v4, %v1302_v32  ;;  %1245 = vst [vmem:[#allocation2 + $0x28] sm:$0xf] %v951_v28  ;;  %1248 = vst [vmem:[#allocation2 + $0x2c] sm:$0x1] %v1247_v45  ;;  %v6303_v48 = vrot.slane %v988_v40, 7  ;;  %v4856_v49 = vpack.c.bf16 %v797_v17, %v797_v17  ;;  %v747_v7 = vadd.f32 %v6101_v21, %v708_v24 }
 0x147   : > { %1301 = vst [vmem:[#allocation2 + $0x88] sm:$0xf] %v1087_v55  ;;  %1304 = vst [vmem:[#allocation2 + $0x8c] sm:$0x1] %v1303_v15  ;;  %v724_v20 = vmul.f32 %v6096_v19, %v6191_v53  ;;  %v711_v57 = vmul.f32 %v6193_v56, %v6096_v19  ;;  %v727_v42 = vmul.f32 %v6199_v63, %v6096_v19  ;;  %v1256_v4 = vld [vmem:[#allocation2 + $0x3c] sm:$0xf] }
 0x148   : > { %v709_v58 = vmul.f32 %v6096_v19, %v6201_v50  ;;  %v725_v59 = vmul.f32 %v6096_v19, %v6204_v5  ;;  %v993_v0 = vor.u32 %v991_v43, %v6303_v48  ;;  %v994_v41 = vrot.slane %v6303_v48, 4  ;;  %v1312_v48 = vld [vmem:[#allocation2 + $0x9c] sm:$0xf] }
 0x149   : > { %v1124_v1 = vshrl.u32 %v4856_v49, 16  ;;  %v1127_v46 = vshll.u32 %v4856_v49, 16  ;;  %v779_v53 = vmax.f32 %v747_v7, 0.0  ;;  %v763_v2 = vadd.f32 %v6101_v21, %v724_v20 }
 0x14a   : > { %v750_v56 = vadd.f32 %v6101_v21, %v711_v57  ;;  %v766_v23 = vadd.f32 %v6101_v21, %v727_v42  ;;  %v1264_v63 = vsel %vm6140_vm7, %v993_v0, %v1263_v54  ;;  %v748_v6 = vadd.f32 %v6101_v21, %v709_v58  ;;  %v1267_v0 = vld [vmem:[#allocation2 + $0x50] sm:$0x1] }
 0x14b   : > { %v1126_v50 = vrot.slane %v1124_v1, 7  ;;  %v764_v5 = vadd.f32 %v6101_v21, %v725_v59  ;;  %1265 = vst [vmem:[#allocation2 + $0x48] sm:$0xf] %v1264_v63  ;;  %v4838_v8 = vpack.c.bf16 %v779_v53, %v779_v53  ;;  %v795_v60 = vmax.f32 %v763_v2, 0.0  ;;  %v1323_v1 = vld [vmem:[#allocation2 + $0xb0] sm:$0x1] }
 0x14c   : > { %v782_v61 = vmax.f32 %v750_v56, 0.0  ;;  %v798_v13 = vmax.f32 %v766_v23, 0.0  ;;  %v780_v9 = vmax.f32 %v748_v6, 0.0  ;;  %v1260_v23 = vld [vmem:[#allocation2 + $0x44] sm:$0x1] }
 0x14d   : > { %v1129_v16 = vor.u32 %v1127_v46, %v1126_v50  ;;  %v1130_v18 = vrot.slane %v1126_v50, 4  ;;  %v796_v22 = vmax.f32 %v764_v5, 0.0  ;;  %v971_v10 = vshrl.u32 %v4838_v8, 16 }
 0x14e   : > { %v974_v17 = vshll.u32 %v4838_v8, 16  ;;  %v4854_v24 = vpack.c.bf16 %v795_v60, %v795_v60  ;;  %v4841_v25 = vpack.c.bf16 %v782_v61, %v782_v61  ;;  %v4857_v29 = vpack.c.bf16 %v798_v13, %v798_v13  ;;  %v1316_v13 = vld [vmem:[#allocation2 + $0xa4] sm:$0x1] }
 0x14f   : > { %v1320_v27 = vsel %vm6140_vm7, %v1129_v16, %v1319_v33  ;;  %v4839_v3 = vpack.c.bf16 %v780_v9, %v780_v9  ;;  %v4855_v31 = vpack.c.bf16 %v796_v22, %v796_v22  ;;  %v973_v32 = vrot.slane %v971_v10, 7 }
 0x150   : > { %1321 = vst [vmem:[#allocation2 + $0xa8] sm:$0xf] %v1320_v27  ;;  %v1107_v34 = vshrl.u32 %v4854_v24, 16  ;;  %v1110_v36 = vshll.u32 %v4854_v24, 16  ;;  %v996_v37 = vshrl.u32 %v4841_v25, 16  ;;  %v999_v47 = vshll.u32 %v4841_v25, 16 }
 0x151   : > { %v1132_v12 = vshrl.u32 %v4857_v29, 16  ;;  %v1135_v40 = vshll.u32 %v4857_v29, 16  ;;  %v979_v43 = vshrl.u32 %v4839_v3, 16  ;;  %v976_v28 = vor.u32 %v974_v17, %v973_v32 }
 0x152   : > { %v977_v45 = vrot.slane %v973_v32, 4  ;;  %v1109_v55 = vrot.slane %v1107_v34, 7  ;;  %v998_v15 = vrot.slane %v996_v37, 7  ;;  %v982_v20 = vshll.u32 %v4839_v3, 16 }
 0x153   : > { %v1134_v49 = vrot.slane %v1132_v12, 7  ;;  %v981_v7 = vrot.slane %v979_v43, 7  ;;  %v1115_v54 = vshrl.u32 %v4855_v31, 16  ;;  %v1257_v57 = vsel %vm6140_vm7, %v976_v28, %v1256_v4 }
 0x154   : > { %v1112_v42 = vor.u32 %v1110_v36, %v1109_v55  ;;  %v1113_v58 = vrot.slane %v1109_v55, 4  ;;  %v1001_v59 = vor.u32 %v999_v47, %v998_v15  ;;  %1258 = vst [vmem:[#allocation2 + $0x3c] sm:$0xf] %v1257_v57  ;;  %v1003_v46 = vrot.slane %v998_v15, 4 }
 0x155   : > { %v1137_v53 = vor.u32 %v1135_v40, %v1134_v49  ;;  %v1139_v2 = vrot.slane %v1134_v49, 4  ;;  %v984_v56 = vor.u32 %v982_v20, %v981_v7  ;;  %v986_v6 = vrot.slane %v981_v7, 4 }
 0x156   : > { %v1313_v63 = vsel %vm6140_vm7, %v1112_v42, %v1312_v48  ;;  %v1002_v50 = vsel %vm6158_vm8, %v994_v41, %v1001_v59  ;;  %v1117_v5 = vrot.slane %v1115_v54, 7  ;;  %v1268_v33 = vsel %vm6168_vm9, %v1003_v46, %v1267_v0  ;;  %v1277_v42 = vld [vmem:[#allocation2 + $0x60] sm:$0xf] }
 0x157   : > { %1314 = vst [vmem:[#allocation2 + $0x9c] sm:$0xf] %v1313_v63  ;;  %1266 = vst [vmem:[#allocation2 + $0x4c] sm:$0xf] %v1002_v50  ;;  %v1138_v8 = vsel %vm6158_vm8, %v1130_v18, %v1137_v53  ;;  %v1324_v60 = vsel %vm6168_vm9, %v1139_v2, %v1323_v1  ;;  %v985_v61 = vsel %vm6158_vm8, %v977_v45, %v984_v56  ;;  %v1118_v16 = vshll.u32 %v4855_v31, 16 }
 0x158   : > { %1269 = vst [vmem:[#allocation2 + $0x50] sm:$0x1] %v1268_v33  ;;  %1322 = vst [vmem:[#allocation2 + $0xac] sm:$0xf] %v1138_v8  ;;  %v1261_v41 = vsel %vm6168_vm9, %v986_v6, %v1260_v23  ;;  %v1122_v9 = vrot.slane %v1117_v5, 4  ;;  %v714_v22 = vmul.f32 %v6217_v26, %v6096_v19  ;;  %v730_v18 = vmul.f32 %v6225_v38, %v6096_v19 }
 0x159   : > { %1325 = vst [vmem:[#allocation2 + $0xb0] sm:$0x1] %v1324_v60  ;;  %1259 = vst [vmem:[#allocation2 + $0x40] sm:$0xf] %v985_v61  ;;  %v712_v10 = vmul.f32 %v6096_v19, %v6227_v39  ;;  %v728_v17 = vmul.f32 %v6096_v19, %v6229_v14  ;;  %v715_v24 = vmul.f32 %v6231_v44, %v6096_v19  ;;  %v1333_v46 = vld [vmem:[#allocation2 + $0xc0] sm:$0xf] }
 0x15a   : > { %1262 = vst [vmem:[#allocation2 + $0x44] sm:$0x1] %v1261_v41  ;;  %v1120_v25 = vor.u32 %v1118_v16, %v1117_v5  ;;  %v1317_v27 = vsel %vm6168_vm9, %v1122_v9, %v1316_v13  ;;  %v753_v29 = vadd.f32 %v6101_v21, %v714_v22  ;;  %v731_v26 = vmul.f32 %v6233_v51, %v6096_v19  ;;  %v1270_v63 = vld [vmem:[#allocation2 + $0x54] sm:$0xf]  ;;  %v1281_v22 = vld [vmem:[#allocation2 + $0x68] sm:$0x1] }
 0x15b   : > { %1318 = vst [vmem:[#allocation2 + $0xa4] sm:$0x1] %v1317_v27  ;;  %v769_v38 = vadd.f32 %v6101_v21, %v730_v18  ;;  %v751_v39 = vadd.f32 %v6101_v21, %v712_v10  ;;  %v767_v3 = vadd.f32 %v6101_v21, %v728_v17  ;;  %v754_v14 = vadd.f32 %v6101_v21, %v715_v24  ;;  %v1326_v60 = vld [vmem:[#allocation2 + $0xb4] sm:$0xf]  ;;  %v1337_v27 = vld [vmem:[#allocation2 + $0xc8] sm:$0x1] }
 0x15c   : > { %v1121_v44 = vsel %vm6158_vm8, %v1113_v58, %v1120_v25  ;;  %v785_v31 = vmax.f32 %v753_v29, 0.0  ;;  %v770_v32 = vadd.f32 %v6101_v21, %v731_v26  ;;  %v713_v34 = vmul.f32 %v6096_v19, %v6235_v52 }
 0x15d   : > { %1315 = vst [vmem:[#allocation2 + $0xa0] sm:$0xf] %v1121_v44  ;;  %v801_v51 = vmax.f32 %v769_v38, 0.0  ;;  %v783_v36 = vmax.f32 %v751_v39, 0.0  ;;  %v799_v37 = vmax.f32 %v767_v3, 0.0  ;;  %v786_v4 = vmax.f32 %v754_v14, 0.0 }
 0x15e   : > { %v4844_v47 = vpack.c.bf16 %v785_v31, %v785_v31  ;;  %v802_v12 = vmax.f32 %v770_v32, 0.0  ;;  %v752_v40 = vadd.f32 %v6101_v21, %v713_v34  ;;  %v729_v61 = vmul.f32 %v6096_v19, %v6243_v62 }
 0x15f   : > { %v4860_v43 = vpack.c.bf16 %v801_v51, %v801_v51  ;;  %v4842_v28 = vpack.c.bf16 %v783_v36, %v783_v36  ;;  %v4858_v45 = vpack.c.bf16 %v799_v37, %v799_v37  ;;  %v4845_v55 = vpack.c.bf16 %v786_v4, %v786_v4  ;;  %v1274_v36 = vld [vmem:[#allocation2 + $0x5c] sm:$0x1] }
 0x160   : > { %v1022_v15 = vshrl.u32 %v4844_v47, 16  ;;  %v1025_v48 = vshll.u32 %v4844_v47, 16  ;;  %v4861_v49 = vpack.c.bf16 %v802_v12, %v802_v12  ;;  %v784_v52 = vmax.f32 %v752_v40, 0.0 }
 0x161   : > { %v1158_v7 = vshrl.u32 %v4860_v43, 16  ;;  %v1161_v20 = vshll.u32 %v4860_v43, 16  ;;  %v1005_v54 = vshrl.u32 %v4842_v28, 16  ;;  %v1008_v58 = vshll.u32 %v4842_v28, 16 }
 0x162   : > { %v1024_v57 = vrot.slane %v1022_v15, 7  ;;  %v1141_v59 = vshrl.u32 %v4858_v45, 16  ;;  %v1030_v0 = vshrl.u32 %v4845_v55, 16  ;;  %v1144_v2 = vshll.u32 %v4858_v45, 16 }
 0x163   : > { %v1160_v1 = vrot.slane %v1158_v7, 7  ;;  %v1007_v53 = vrot.slane %v1005_v54, 7  ;;  %v1166_v56 = vshrl.u32 %v4861_v49, 16  ;;  %v1033_v5 = vshll.u32 %v4845_v55, 16  ;;  %v1330_v55 = vld [vmem:[#allocation2 + $0xbc] sm:$0x1] }
 0x164   : > { %v1027_v23 = vor.u32 %v1025_v48, %v1024_v57  ;;  %v1143_v50 = vrot.slane %v1141_v59, 7  ;;  %v1032_v6 = vrot.slane %v1030_v0, 7  ;;  %v1028_v13 = vrot.slane %v1024_v57, 4 }
 0x165   : > { %v1163_v33 = vor.u32 %v1161_v20, %v1160_v1  ;;  %v1010_v8 = vor.u32 %v1008_v58, %v1007_v53  ;;  %v1168_v24 = vrot.slane %v1166_v56, 7  ;;  %v1169_v25 = vshll.u32 %v4861_v49, 16 }
 0x166   : > { %v1278_v41 = vsel %vm6140_vm7, %v1027_v23, %v1277_v42  ;;  %v1146_v16 = vor.u32 %v1144_v2, %v1143_v50  ;;  %v1035_v9 = vor.u32 %v1033_v5, %v1032_v6  ;;  %v1037_v17 = vrot.slane %v1032_v6, 4 }
 0x167   : > { %1279 = vst [vmem:[#allocation2 + $0x60] sm:$0xf] %v1278_v41  ;;  %v1334_v18 = vsel %vm6140_vm7, %v1163_v33, %v1333_v46  ;;  %v1271_v10 = vsel %vm6140_vm7, %v1010_v8, %v1270_v63  ;;  %v4843_v29 = vpack.c.bf16 %v784_v52, %v784_v52  ;;  %v1173_v38 = vrot.slane %v1168_v24, 4 }
 0x168   : > { %1335 = vst [vmem:[#allocation2 + $0xc0] sm:$0xf] %v1334_v18  ;;  %1272 = vst [vmem:[#allocation2 + $0x54] sm:$0xf] %v1271_v10  ;;  %v1327_v19 = vsel %vm6140_vm7, %v1146_v16, %v1326_v60  ;;  %v1036_v62 = vsel %vm6158_vm8, %v1028_v13, %v1035_v9  ;;  %v1282_v26 = vsel %vm6168_vm9, %v1037_v17, %v1281_v22  ;;  %v1164_v3 = vrot.slane %v1160_v1, 4 }
 0x169   : > { %1328 = vst [vmem:[#allocation2 + $0xb4] sm:$0xf] %v1327_v19  ;;  %1280 = vst [vmem:[#allocation2 + $0x64] sm:$0xf] %v1036_v62  ;;  %v768_v39 = vadd.f32 %v6101_v21, %v729_v61  ;;  %v1171_v14 = vor.u32 %v1169_v25, %v1168_v24  ;;  %v1013_v44 = vshrl.u32 %v4843_v29, 16  ;;  %v1338_v11 = vsel %vm6168_vm9, %v1173_v38, %v1337_v27 }
 0x16a   : > { %1283 = vst [vmem:[#allocation2 + $0x68] sm:$0x1] %v1282_v26  ;;  %1339 = vst [vmem:[#allocation2 + $0xc8] sm:$0x1] %v1338_v11  ;;  %v1016_v51 = vshll.u32 %v4843_v29, 16  ;;  %v1011_v4 = vrot.slane %v1007_v53, 4 }
 0x16b   : > { %v800_v31 = vmax.f32 %v768_v39, 0.0  ;;  %v1172_v32 = vsel %vm6158_vm8, %v1164_v3, %v1171_v14  ;;  %v1015_v34 = vrot.slane %v1013_v44, 7  ;;  %v1147_v15 = vrot.slane %v1143_v50, 4 }
 0x16c   : > { %1336 = vst [vmem:[#allocation2 + $0xc4] sm:$0xf] %v1172_v32 }
 0x16d   : > { %v4859_v37 = vpack.c.bf16 %v800_v31, %v800_v31  ;;  %v1018_v47 = vor.u32 %v1016_v51, %v1015_v34  ;;  %v1020_v21 = vrot.slane %v1015_v34, 4 }
 0x16f   : > { %v1149_v12 = vshrl.u32 %v4859_v37, 16  ;;  %v1019_v40 = vsel %vm6158_vm8, %v1011_v4, %v1018_v47  ;;  %v1275_v43 = vsel %vm6168_vm9, %v1020_v21, %v1274_v36  ;;  %v1152_v45 = vshll.u32 %v4859_v37, 16 }
 0x170   : > { %1273 = vst [vmem:[#allocation2 + $0x58] sm:$0xf] %v1019_v40  ;;  %1276 = vst [vmem:[#allocation2 + $0x5c] sm:$0x1] %v1275_v43 }
 0x171   : > { %v1151_v28 = vrot.slane %v1149_v12, 7 }
 0x173   : > { %v1154_v48 = vor.u32 %v1152_v45, %v1151_v28  ;;  %v1156_v49 = vrot.slane %v1151_v28, 4 }
 0x175   : > { %v1155_v7 = vsel %vm6158_vm8, %v1147_v15, %v1154_v48  ;;  %v1331_v20 = vsel %vm6168_vm9, %v1156_v49, %v1330_v55 }
 0x176   : > { %1329 = vst [vmem:[#allocation2 + $0xb8] sm:$0xf] %v1155_v7  ;;  %1332 = vst [vmem:[#allocation2 + $0xbc] sm:$0x1] %v1331_v20 }
 0x177 PF: > { %v5661_v54 = vld [vmem:[#allocation3 + $0x40] sm:$0xff]   ;;  %v5663_v57 = vld [vmem:[#allocation3 + $0x48] sm:$0xff]   ;;  %v5665_v58 = vld [vmem:[#allocation3 + $0x50] sm:$0xff]   ;;  %s4862_s13 = smul.u32 96, %s5871_s27  ;;  %vm1384_vm10 = vsmask.f32 3328 }
 0x178   : > { %v5662_v52 = vld [vmem:[#allocation3 + $0x100] sm:$0xff]   ;;  %5122 = vmatprep.subr.bf16.mxu1 %v5661_v54  ;;  %v5664_v42 = vld [vmem:[#allocation3 + $0x108] sm:$0xff]   ;;  %v5666_v30 = vld [vmem:[#allocation3 + $0x110] sm:$0xff]   ;;  %vm1385_vm11 = vsmask.f32 7440  ;;  %vm1990_vm13 = vcmask 1042432  }
 0x179   : > { %5250 = vmatprep.subr.bf16.mxu0 %v5662_v52  ;;  %5123 = vmatpush3.bf16.msra.mxu1 %v5661_v54  ;;  %v5667_v35 = vld [vmem:[#allocation3 + $0x58] sm:$0xff]   ;;  %v5669_v0 = vld [vmem:[#allocation3 + $0x60] sm:$0xff]   ;;  %v5671_v46 = vld [vmem:[#allocation3 + $0x68] sm:$0xff]   ;;  %s6396_s23 = scalar_lea.vmem [#allocation2], %s4862_s13  ;;  %vm1991_vm14 = vcmask 1046532   ;;  %s4879_s17 = sshll.u32 %s5871_s27, 4 }
 0x17a   : > { %5251 = vmatpush3.bf16.msra.mxu0 %v5662_v52  ;;  %5124 = vmatprep.subr.bf16.mxu1 %v5663_v57  ;;  %v5668_v59 = vld [vmem:[#allocation3 + $0x118] sm:$0xff]   ;;  %v5670_v1 = vld [vmem:[#allocation3 + $0x120] sm:$0xff]   ;;  %v5672_v53 = vld [vmem:[#allocation3 + $0x128] sm:$0xff]   ;;  %s4825_s18 = sshll.u32 %s5875_s28, 5  ;;  %s4358_s10 = sshll.u32 %s6055_s12, 4  ;;  %s7233_s10 = int_to_ptr.vmem [resolvable:$true] %s4358_s10 }
 0x17b   : > { %5252 = vmatprep.subr.bf16.mxu0 %v5664_v42  ;;  %v5673_v16 = vld [vmem:[#allocation3 + $0x70] sm:$0xff]   ;;  %v5675_v27 = vld [vmem:[#allocation3 + $0x78] sm:$0xff]   ;;  %vm6426_vm12 = vmor %vm1384_vm10, %vm1385_vm11  ;;  %s4355_s27 = sadd.s32 %s4879_s17, %s4825_s18  ;;  %s7240_s22 = scalar_lea.sflag [#allocation5], %s298_s11 }
 0x17c   : > { %v5674_v10 = vld [vmem:[#allocation3 + $0x130] sm:$0xff]   ;;  %v5676_v4 = vld [vmem:[#allocation3 + $0x138] sm:$0xff]   ;;  %vm6666_vm15 = vmor %vm1990_vm13, %vm1991_vm14  ;;  %s4826_s28 = sshll.u32 %s4355_s27, 6  ;;  %s5789_s19 = scalar_lea.vmem %s7233_s10, 1024 }
 0x17d   : > { %5125 = vmatpush3.bf16.msra.mxu1 %v5663_v57  ;;  %v6399_v2 = vld [vmem:[%s6396_s23] sm:$0xf]  ;;  %v6402_v56 = vld [vmem:[%s6396_s23 + $0x4] sm:$0xf]  ;;  %v6405_v23 = vld [vmem:[%s6396_s23 + $0x8] sm:$0x1]  ;;  %p5790_p10 = scmp.ne.s32.totalorder %s7233_s10, %s5789_s19 }
 0x17e   : > { %5253 = vmatpush3.bf16.msra.mxu0 %v5664_v42  ;;  %5126 = vmatprep.subr.bf16.mxu1 %v5665_v58  ;;  %v1388_v63 = vshrl.u32 %v6399_v2, 16  ;;  %v1391_v50 = vshll.u32 %v6399_v2, 16  ;;  %v1397_v6 = vshll.u32 %v6402_v56, 16  ;;  %v1401_v5 = vshrl.u32 %v6402_v56, 16  ;;  %v4626_v8 = vld [vmem:[%s6396_s23 + $0xc] sm:$0xf] }
 0x17f   : > { %5254 = vmatprep.subr.bf16.mxu0 %v5666_v30  ;;  %v1407_v33 = vshll.u32 %v6405_v23, 16  ;;  %v6414_v13 = vld [vmem:[%s6396_s23 + $0x10] sm:$0xf]  ;;  %v6417_v41 = vld [vmem:[%s6396_s23 + $0x14] sm:$0x1]  ;;  %v2530_v18 = vshrl.u32 %v4626_v8, 16 }
 0x180   : > { %v1390_v60 = vrot.slane %v1388_v63, 4  ;;  %v1393_v61 = vrot.slane %v1391_v50, 5  ;;  %v1399_v9 = vrot.slane %v1397_v6, 5  ;;  %v1403_v22 = vrot.slane %v1401_v5, 4  ;;  %v6422_v25 = vld [vmem:[%s6396_s23 + $0xc] sm:$0xf] }
 0x181   : > { %5127 = vmatpush3.bf16.msra.mxu1 %v5665_v58  ;;  %v2533_v24 = vshll.u32 %v4626_v8, 16  ;;  %v2539_v19 = vshll.u32 %v6414_v13, 16  ;;  %v2543_v62 = vshrl.u32 %v6414_v13, 16  ;;  %v1409_v38 = vrot.slane %v1407_v33, 5  ;;  %v6432_v14 = vld [vmem:[%s6396_s23 + $0x10] sm:$0xf] }
 0x182   : > { %5255 = vmatpush3.bf16.msra.mxu0 %v5666_v30  ;;  %5128 = vmatprep.subr.bf16.mxu1 %v5667_v35  ;;  %v1394_v17 = vor.u32 %v1393_v61, %v1390_v60  ;;  %v1404_v26 = vor.u32 %v1403_v22, %v1399_v9  ;;  %v2532_v39 = vrot.slane %v2530_v18, 4  ;;  %v2549_v3 = vshll.u32 %v6417_v41, 16  ;;  %v6439_v40 = vld [vmem:[%s6396_s23 + $0x14] sm:$0x1]  ;;  %v4629_v28 = vld [vmem:[%s6396_s23 + $0x18] sm:$0xf] }
 0x183   : > { %5256 = vmatprep.subr.bf16.mxu0 %v5668_v59  ;;  %v2535_v11 = vrot.slane %v2533_v24, 5  ;;  %v2541_v31 = vrot.slane %v2539_v19, 5  ;;  %v2545_v32 = vrot.slane %v2543_v62, 4  ;;  %v1412_v36 = vshrl.u32 %v6422_v25, 16  ;;  %v6447_v49 = vld [vmem:[%s6396_s23 + $0x1c] sm:$0xf] }
 0x184   : > { %v1395_v44 = vrot.slane %v1394_v17, 4  ;;  %v1405_v34 = vrot.slane %v1404_v26, 4  ;;  %v2551_v51 = vrot.slane %v2549_v3, 5  ;;  %v1415_v37 = vshll.u32 %v6422_v25, 16  ;;  %v5677_v57 = vld [vmem:[#allocation3] sm:$0xff]   ;;  %p7334_p12 = scmp.ne.s32.totalorder %s7309_s15, 0 }
 0x185   : > { %5129 = vmatpush3.bf16.msra.mxu1 %v5667_v35  ;;  %v2536_v21 = vor.u32 %v2535_v11, %v2532_v39  ;;  %v2546_v12 = vor.u32 %v2545_v32, %v2541_v31  ;;  %v1421_v43 = vshll.u32 %v6432_v14, 16  ;;  %v1414_v55 = vrot.slane %v1412_v36, 4  ;;  %v6449_v42 = vld [vmem:[#allocation3 + $0x140] sm:$0xff]   ;;  %s5893_s20 = smov [#allocation6]  }
 0x186   : > { %5257 = vmatpush3.bf16.msra.mxu0 %v5668_v59  ;;  %5130 = vmatprep.subr.bf16.mxu1 %v5669_v0  ;;  %v1400_v47 = vsel %vm6426_vm12, %v1395_v44, %v1399_v9  ;;  %v1410_v45 = vsel %vm6426_vm12, %v1405_v34, %v1409_v38  ;;  %v1417_v15 = vrot.slane %v1415_v37, 5  ;;  %v1425_v48 = vshrl.u32 %v6432_v14, 16  ;;  %v6453_v59 = vld [vmem:[%s6396_s23 + $0x20] sm:$0x1]  ;;  %v6470_v62 = vld [vmem:[%s6396_s23 + $0x1c] sm:$0xf]  ;;  %p5791_p0 = pnand %p5790_p10, %p7334_p12 }
 0x187   : > { %5258 = vmatprep.subr.bf16.mxu0 %v5670_v1  ;;  %v4536_v7 = vcombine.low %v1400_v47, %v1410_v45  ;;  %v2537_v20 = vrot.slane %v2536_v21, 4  ;;  %v2547_v54 = vrot.slane %v2546_v12, 4  ;;  %v1423_v52 = vrot.slane %v1421_v43, 5  ;;  %v4632_v44 = vld [vmem:[%s6396_s23 + $0x24] sm:$0xf]  ;;  %s5793_s14 = sshll.u32 %s5893_s20, 4  ;;  %s5794_s14 = int_to_ptr.vmem [resolvable:$false] %s5793_s14 }
 0x188   : > { %v1418_v58 = vor.u32 %v1417_v15, %v1414_v55  ;;  %v1427_v30 = vrot.slane %v1425_v48, 4  ;;  %v1431_v35 = vshll.u32 %v6439_v40, 16  ;;  %v2563_v60 = vshll.u32 %v6447_v49, 16  ;;  %v5679_v34 = vld [vmem:[#allocation3 + $0x8] sm:$0xff]   ;;  %v6482_v21 = vld [vmem:[%s6396_s23 + $0x28] sm:$0xf]  ;;  %p5792_p2 = pneg %p5791_p0  ;;  %p5796_p5 = scmp.lt.s32.totalorder %s7233_s10, %s5794_s14 }
 0x189   : > { %5131 = vmatpush3.bf16.msra.mxu1 %v5669_v0  ;;  %5138 = vmatprep.mubr.bf16.mxu1 %v4536_v7  ;;  %v2542_v0 = vsel %vm6426_vm12, %v2537_v20, %v2541_v31  ;;  %v2567_v61 = vshrl.u32 %v6447_v49, 16  ;;  %v1445_v37 = vshll.u32 %v6470_v62, 16  ;;  %v6487_v45 = vld [vmem:[%s6396_s23 + $0x2c] sm:$0x1]  ;;  %v2578_v55 = vshrl.u32 %v4632_v44, 16  ;;  %v5680_v48 = vld [vmem:[#allocation3 + $0x148] sm:$0xff]  }
 0x18a   : > { %5259 = vmatpush3.bf16.msra.mxu0 %v5670_v1  ;;  %5132 = vmatprep.subr.bf16.mxu1 %v5671_v46  ;;  %v2552_v1 = vsel %vm6426_vm12, %v2547_v54, %v2551_v51  ;;  %v1419_v50 = vrot.slane %v1418_v58, 4  ;;  %v1428_v6 = vor.u32 %v1427_v30, %v1423_v52  ;;  %v1433_v5 = vrot.slane %v1431_v35, 5  ;;  %v5681_v15 = vld [vmem:[#allocation3 + $0x10] sm:$0xff]   ;;  %v6490_v58 = vld [vmem:[%s6396_s23 + $0x24] sm:$0xf]  ;;  %s5795_s17 = scalar_lea.vmem %s5794_s14, 2048 }
 0x18b   : > { %5260 = vmatprep.subr.bf16.mxu0 %v5672_v53  ;;  %v4650_v63 = vcombine.low %v2542_v0, %v2552_v1  ;;  %v2565_v24 = vrot.slane %v2563_v60, 5  ;;  %v2569_v19 = vrot.slane %v2567_v61, 4  ;;  %v1447_v7 = vrot.slane %v1445_v37, 5  ;;  %v4635_v61 = vld [vmem:[%s6396_s23 + $0x30] sm:$0xf]  ;;  %p5797_p6 = scmp.lt.s32.totalorder %s5795_s17, %s5789_s19 }
 0x18c   : > { %v1424_v22 = vsel %vm6426_vm12, %v1419_v50, %v1423_v52  ;;  %v1429_v18 = vrot.slane %v1428_v6, 4  ;;  %v2581_v52 = vshll.u32 %v4632_v44, 16  ;;  %v2580_v0 = vrot.slane %v2578_v55, 4  ;;  %v6497_v50 = vld [vmem:[%s6396_s23 + $0x28] sm:$0xf]  ;;  %v5683_v44 = vld [vmem:[#allocation3 + $0x18] sm:$0xff]  }
 0x18d   : > { %5133 = vmatpush3.bf16.msra.mxu1 %v5671_v46  ;;  %v2554_v46 = vshrl.u32 %v4629_v28, 16  ;;  %5266 = vmatprep.mubr.bf16.mxu0 %v4650_v63  ;;  %v2570_v32 = vor.u32 %v2569_v19, %v2565_v24  ;;  %v2587_v1 = vshll.u32 %v6482_v21, 16  ;;  %v2591_v63 = vshrl.u32 %v6482_v21, 16  ;;  %v6500_v6 = vld [vmem:[%s6396_s23 + $0x2c] sm:$0x1]  ;;  %v5684_v55 = vld [vmem:[#allocation3 + $0x158] sm:$0xff]   ;;  %p5798_p7 = por %p5797_p6, %p5796_p5 }
 0x18e   : > { %5261 = vmatpush3.bf16.msra.mxu0 %v5672_v53  ;;  %5134 = vmatprep.subr.bf16.mxu1 %v5673_v16  ;;  %v2557_v53 = vshll.u32 %v4629_v28, 16  ;;  %v1434_v26 = vsel %vm6426_vm12, %v1429_v18, %v1433_v5  ;;  %v1460_v60 = vshrl.u32 %v6490_v58, 16  ;;  %v5682_v19 = vld [vmem:[#allocation3 + $0x150] sm:$0xff]   ;;  %v1479_v37 = vshll.u32 %v6500_v6, 16 }
 0x18f   : > { %5262 = vmatprep.subr.bf16.mxu0 %v5674_v10  ;;  %v2556_v33 = vrot.slane %v2554_v46, 4  ;;  %v4537_v11 = vcombine.low %v1424_v22, %v1434_v26  ;;  %v2571_v43 = vrot.slane %v2570_v32, 4  ;;  %p5799_p9 = pnand %p5798_p7, %p5792_p2 }
 0x190   : > { %v2559_v8 = vrot.slane %v2557_v53, 5  ;;  %v2583_v53 = vrot.slane %v2581_v52, 5 }
 0x191   : > { %5135 = vmatpush3.bf16.msra.mxu1 %v5673_v16  ;;  %v6462_v16 = vld [vmem:[%s6396_s23 + $0x18] sm:$0xf] }
 0x192   : > { %5263 = vmatpush3.bf16.msra.mxu0 %v5674_v10  ;;  %5136 = vmatprep.subr.bf16.mxu1 %v5675_v27  ;;  %v2573_v10 = vshll.u32 %v6453_v59, 16  ;;  %v2560_v17 = vor.u32 %v2559_v8, %v2556_v33  ;;  %v1436_v3 = vshrl.u32 %v6462_v16, 16  ;;  %v1439_v51 = vshll.u32 %v6462_v16, 16 }
 0x193   : > { %5264 = vmatprep.subr.bf16.mxu0 %v5676_v4  ;;  %v2589_v33 = vrot.slane %v2587_v1, 5  ;;  %v2597_v8 = vshll.u32 %v6487_v45, 16  ;;  %v2584_v18 = vor.u32 %v2583_v53, %v2580_v0 }
 0x194   : > { %v2575_v38 = vrot.slane %v2573_v10, 5  ;;  %v2561_v31 = vrot.slane %v2560_v17, 4  ;;  %v1438_v36 = vrot.slane %v1436_v3, 4  ;;  %v1441_v28 = vrot.slane %v1439_v51, 5 }
 0x195   : > { %5137 = vmatpush3.bf16.msra.mxu1 %v5675_v27  ;;  %v1378_v27 = vld [vmem:[%s6396_s23 + $0x20] sm:$0x1]  ;;  %v2593_v10 = vrot.slane %v2591_v63, 4  ;;  %v1463_v17 = vshll.u32 %v6490_v58, 16  ;;  %v2599_v26 = vrot.slane %v2597_v8, 5  ;;  %v1469_v3 = vshll.u32 %v6497_v50, 16 }
 0x196   : > { %5265 = vmatpush3.bf16.msra.mxu0 %v5676_v4  ;;  %5154 = vmatprep.subr.bf16.mxu1 %v5677_v57  ;;  %v1449_v4 = vshrl.u32 %v6470_v62, 16  ;;  %v1455_v47 = vshll.u32 %v1378_v27, 16  ;;  %v2566_v12 = vsel %vm6426_vm12, %v2561_v31, %v2565_v24  ;;  %v2576_v30 = vsel %vm6426_vm12, %v2571_v43, %v2575_v38  ;;  %v6507_v24 = vld [vmem:[%s6396_s23 + $0x34] sm:$0xf]  ;;  %v6520_v43 = vld [vmem:[%s6396_s23 + $0x38] sm:$0x1] }
 0x197   : > { %5282 = vmatprep.subr.bf16.mxu0 %v6449_v42  ;;  %v1442_v35 = vor.u32 %v1441_v28, %v1438_v36  ;;  %v4651_v46 = vcombine.low %v2566_v12, %v2576_v30  ;;  %v1462_v38 = vrot.slane %v1460_v60, 4  ;;  %v2585_v31 = vrot.slane %v2584_v18, 4  ;;  %v6524_v30 = vld [vmem:[%s6396_s23 + $0x30] sm:$0xf] }
 0x198   : > { %5139 = vmatmul.mubr.bf16.vlgmr.msra.gmra.mrb[0].mxu1 %v4537_v11  ;;  %v1451_v20 = vrot.slane %v1449_v4, 4  ;;  %v1457_v54 = vrot.slane %v1455_v47, 5  ;;  %v2594_v32 = vor.u32 %v2593_v10, %v2589_v33  ;;  %v1471_v36 = vrot.slane %v1469_v3, 5  ;;  %v6537_v10 = vld [vmem:[%s6396_s23 + $0x38] sm:$0x1] }
 0x199   : > { %5155 = vmatpush3.bf16.msra.mxu1 %v5677_v57  ;;  %v1443_v5 = vrot.slane %v1442_v35, 4  ;;  %5267 = vmatmul.mubr.bf16.vlgmr.msra.gmra.mrb[0].mxu0 %v4651_v46  ;;  %v2590_v4 = vsel %vm6426_vm12, %v2585_v31, %v2589_v33  ;;  %v2602_v28 = vshrl.u32 %v4635_v61, 16  ;;  %v2611_v52 = vshll.u32 %v6507_v24, 16  ;;  %v4638_v31 = vld [vmem:[%s6396_s23 + $0x3c] sm:$0xf] }
 0x19a   : > { %5156 = vmatprep.subr.bf16.mxu1 %v5679_v34  ;;  %v1452_v57 = vor.u32 %v1451_v20, %v1447_v7  ;;  %5283 = vmatpush3.bf16.msra.mxu0 %v6449_v42  ;;  %v1473_v42 = vshrl.u32 %v6497_v50, 16  ;;  %v2595_v47 = vrot.slane %v2594_v32, 4  ;;  %v1481_v20 = vrot.slane %v1479_v37, 5  ;;  %v5686_v32 = vld [vmem:[#allocation3 + $0x160] sm:$0xff]  }
 0x19b   : > { %v1448_v27 = vsel %vm6426_vm12, %v1443_v5, %v1447_v7  ;;  %5284 = vmatprep.subr.bf16.mxu0 %v5680_v48  ;;  %v2604_v1 = vrot.slane %v2602_v28, 4  ;;  %v2615_v46 = vshrl.u32 %v6507_v24, 16  ;;  %v2613_v5 = vrot.slane %v2611_v52, 5  ;;  %v5689_v28 = vld [vmem:[#allocation3 + $0x30] sm:$0xff]  }
 0x19c   : > { %v1453_v22 = vrot.slane %v1452_v57, 4  ;;  %v1475_v7 = vrot.slane %v1473_v42, 4  ;;  %v2600_v35 = vsel %vm6426_vm12, %v2595_v47, %v2599_v26  ;;  %v2621_v60 = vshll.u32 %v6520_v43, 16  ;;  %v5687_v26 = vld [vmem:[#allocation3 + $0x28] sm:$0xff]  }
 0x19d   : > { %5157 = vmatpush3.bf16.msra.mxu1 %v5679_v34  ;;  %v1465_v34 = vrot.slane %v1463_v17, 5  ;;  %v4652_v57 = vcombine.low %v2590_v4, %v2600_v35  ;;  %v2617_v8 = vrot.slane %v2615_v46, 4  ;;  %v1487_v17 = vshll.u32 %v6524_v30, 16  ;;  %v6546_v42 = vld [vmem:[%s6396_s23 + $0x40] sm:$0xf] }
 0x19e   : > { %5158 = vmatprep.subr.bf16.mxu1 %v5681_v15  ;;  %v1458_v11 = vsel %vm6426_vm12, %v1453_v22, %v1457_v54  ;;  %5285 = vmatpush3.bf16.msra.mxu0 %v5680_v48  ;;  %v2605_v54 = vshll.u32 %v4635_v61, 16  ;;  %v5685_v48 = vld [vmem:[#allocation3 + $0x20] sm:$0xff]   ;;  %v1476_v53 = vor.u32 %v1475_v7, %v1471_v36  ;;  %v1484_v61 = vshrl.u32 %v6524_v30, 16 }
 0x19f   : > { %v4538_v51 = vcombine.low %v1448_v27, %v1458_v11  ;;  %v1466_v12 = vor.u32 %v1465_v34, %v1462_v38  ;;  %5286 = vmatprep.subr.bf16.mxu0 %v5682_v19  ;;  %5270 = vmatprep.mubr.bf16.mxu0 %v4652_v57  ;;  %v2618_v38 = vor.u32 %v2617_v8, %v2613_v5  ;;  %v2623_v3 = vrot.slane %v2621_v60, 5  ;;  %v6564_v60 = vld [vmem:[%s6396_s23 + $0x44] sm:$0x1] }
 0x1a0   : > { %v2607_v63 = vrot.slane %v2605_v54, 5  ;;  %v1477_v22 = vrot.slane %v1476_v53, 4  ;;  %v1486_v11 = vrot.slane %v1484_v61, 4  ;;  %v2626_v52 = vshrl.u32 %v4638_v31, 16  ;;  %v6558_v53 = vld [vmem:[%s6396_s23 + $0x3c] sm:$0xf] }
 0x1a1   : > { %5159 = vmatpush3.bf16.msra.mxu1 %v5681_v15  ;;  %5142 = vmatprep.mubr.bf16.mxu1 %v4538_v51  ;;  %v1467_v0 = vrot.slane %v1466_v12, 4  ;;  %v6530_v15 = vld [vmem:[%s6396_s23 + $0x34] sm:$0xf]  ;;  %v1489_v51 = vrot.slane %v1487_v17, 5  ;;  %v2619_v4 = vrot.slane %v2618_v38, 4  ;;  %v1503_v12 = vshll.u32 %v6537_v10, 16 }
 0x1a2   : > { %5160 = vmatprep.subr.bf16.mxu1 %v5683_v44  ;;  %v2608_v18 = vor.u32 %v2607_v63, %v2604_v1  ;;  %5287 = vmatpush3.bf16.msra.mxu0 %v5682_v19  ;;  %v1493_v27 = vshll.u32 %v6530_v15, 16  ;;  %v1482_v19 = vsel %vm6426_vm12, %v1477_v22, %v1481_v20  ;;  %v6552_v20 = vld [vmem:[%s6396_s23 + $0x44] sm:$0x1]  ;;  %v2629_v35 = vshll.u32 %v4638_v31, 16  ;;  %7325 = vst [vmem:[#allocation11_spill] sm:$0xff] %v6564_v60  ;;  %v5691_v61 = vld [vmem:[#allocation3 + $0x38] sm:$0xff]  }
 0x1a3   : > { %v1472_v33 = vsel %vm6426_vm12, %v1467_v0, %v1471_v36  ;;  %5288 = vmatprep.subr.bf16.mxu0 %v5684_v55  ;;  %v1490_v54 = vor.u32 %v1489_v51, %v1486_v11  ;;  %v5688_v0 = vld [vmem:[#allocation3 + $0x168] sm:$0xff]   ;;  %v2624_v1 = vsel %vm6426_vm12, %v2619_v4, %v2623_v3  ;;  %v2635_v57 = vshll.u32 %v6546_v42, 16  ;;  %v4641_v38 = vld [vmem:[%s6396_s23 + $0x48] sm:$0xf] }
 0x1a4   : > { %v2609_v34 = vrot.slane %v2608_v18, 4  ;;  %v1495_v36 = vrot.slane %v1493_v27, 5  ;;  %v4539_v37 = vcombine.low %v1472_v33, %v1482_v19  ;;  %v2628_v33 = vrot.slane %v2626_v52, 4  ;;  %v6574_v19 = vld [vmem:[%s6396_s23 + $0x4c] sm:$0xf] }
 0x1a5   : > { %5161 = vmatpush3.bf16.msra.mxu1 %v5683_v44  ;;  %v1497_v44 = vshrl.u32 %v6530_v15, 16  ;;  %v2631_v8 = vrot.slane %v2629_v35, 5  ;;  %v2637_v18 = vrot.slane %v2635_v57, 5  ;;  %v2639_v17 = vshrl.u32 %v6546_v42, 16 }
 0x1a6   : > { %5162 = vmatprep.subr.bf16.mxu1 %v5685_v48  ;;  %v2614_v7 = vsel %vm6426_vm12, %v2609_v34, %v2613_v5  ;;  %5289 = vmatpush3.bf16.msra.mxu0 %v5684_v55  ;;  %v6561_v55 = vld [vmem:[%s6396_s23 + $0x40] sm:$0xf]  ;;  %v1491_v5 = vrot.slane %v1490_v54, 4  ;;  %v2645_v27 = vshll.u32 %v6552_v20, 16  ;;  %v1511_v31 = vshll.u32 %v6558_v53, 16 }
 0x1a7   : > { %v1499_v47 = vrot.slane %v1497_v44, 4  ;;  %5143 = vmatmul.mubr.bf16.gmra.mrb[4].mxu1 %v4539_v37  ;;  %5290 = vmatprep.subr.bf16.mxu0 %v5686_v32  ;;  %v4653_v63 = vcombine.low %v2614_v7, %v2624_v1  ;;  %v2632_v11 = vor.u32 %v2631_v8, %v2628_v33  ;;  %v1508_v44 = vshrl.u32 %v6558_v53, 16  ;;  %v5690_v7 = vld [vmem:[#allocation3 + $0x170] sm:$0xff]  }
 0x1a8   : > { %v1496_v3 = vsel %vm6426_vm12, %v1491_v5, %v1495_v36  ;;  %v2641_v51 = vrot.slane %v2639_v17, 4  ;;  %v2647_v37 = vrot.slane %v2645_v27, 5  ;;  %v1517_v4 = vshll.u32 %v6561_v55, 16  ;;  %v6586_v5 = vld [vmem:[#allocation3 + $0x80] sm:$0xff]  }
 0x1a9   : > { %5163 = vmatpush3.bf16.msra.mxu1 %v5685_v48  ;;  %v1500_v46 = vor.u32 %v1499_v47, %v1495_v36  ;;  %v1505_v48 = vrot.slane %v1503_v12, 5  ;;  %5271 = vmatmul.mubr.bf16.gmra.mrb[4].mxu0 %v4653_v63  ;;  %v2633_v47 = vrot.slane %v2632_v11, 4  ;;  %v1510_v36 = vrot.slane %v1508_v44, 4  ;;  %v6591_v44 = vld [vmem:[%s6396_s23 + $0x48] sm:$0xf] }
 0x1aa   : > { %5164 = vmatprep.subr.bf16.mxu1 %v5687_v26  ;;  %5291 = vmatpush3.bf16.msra.mxu0 %v5686_v32  ;;  %v1513_v12 = vrot.slane %v1511_v31, 5  ;;  %v2642_v54 = vor.u32 %v2641_v51, %v2637_v18  ;;  %v1519_v52 = vrot.slane %v1517_v4, 5  ;;  %v1521_v35 = vshrl.u32 %v6561_v55, 16  ;;  %v6584_v32 = vld [vmem:[%s6396_s23 + $0x50] sm:$0x1] }
 0x1ab   : > { %v1501_v22 = vrot.slane %v1500_v46, 4  ;;  %5292 = vmatprep.subr.bf16.mxu0 %v5688_v0  ;;  %v1527_v1 = vshll.u32 %v6564_v60, 16  ;;  %v2638_v46 = vsel %vm6426_vm12, %v2633_v47, %v2637_v18  ;;  %v2650_v57 = vshrl.u32 %v4641_v38, 16  ;;  %v6597_v4 = vld [vmem:[%s6396_s23 + $0x4c] sm:$0xf] }
 0x1ac   : > { %v2653_v63 = vshll.u32 %v4641_v38, 16  ;;  %v2643_v33 = vrot.slane %v2642_v54, 4  ;;  %v1523_v8 = vrot.slane %v1521_v35, 4  ;;  %v2659_v17 = vshll.u32 %v6574_v19, 16  ;;  %v4644_v54 = vld [vmem:[%s6396_s23 + $0x54] sm:$0xf] }
 0x1ad   : > { %5165 = vmatpush3.bf16.msra.mxu1 %v5687_v26  ;;  %v1506_v34 = vsel %vm6426_vm12, %v1501_v22, %v1505_v48  ;;  %v1514_v48 = vor.u32 %v1513_v12, %v1510_v36  ;;  %v1529_v22 = vrot.slane %v1527_v1, 5  ;;  %v2652_v18 = vrot.slane %v2650_v57, 4  ;;  %v6602_v12 = vld [vmem:[%s6396_s23 + $0x50] sm:$0x1] }
 0x1ae   : > { %5166 = vmatprep.subr.bf16.mxu1 %v5689_v28  ;;  %v4540_v26 = vcombine.low %v1496_v3, %v1506_v34  ;;  %5293 = vmatpush3.bf16.msra.mxu0 %v5688_v0  ;;  %v2655_v3 = vrot.slane %v2653_v63, 5  ;;  %v2663_v11 = vshrl.u32 %v6574_v19, 16  ;;  %v2648_v38 = vsel %vm6426_vm12, %v2643_v33, %v2647_v37  ;;  %7326 = vst [vmem:[#allocation12_spill] sm:$0xff] %v6602_v12  ;;  %v6610_v63 = vld [vmem:[#allocation3 + $0x180] sm:$0xff]  }
 0x1af   : > { %v1515_v27 = vrot.slane %v1514_v48, 4  ;;  %5294 = vmatprep.subr.bf16.mxu0 %v5690_v7  ;;  %v1524_v31 = vor.u32 %v1523_v8, %v1519_v52  ;;  %v2661_v34 = vrot.slane %v2659_v17, 5  ;;  %v2669_v51 = vshll.u32 %v6584_v32, 16 }
 0x1b0   : > { %5146 = vmatprep.mubr.bf16.mxu1 %v4540_v26  ;;  %v4654_v0 = vcombine.low %v2638_v46, %v2648_v38  ;;  %v2656_v47 = vor.u32 %v2655_v3, %v2652_v18  ;;  %v2665_v36 = vrot.slane %v2663_v11, 4  ;;  %v1532_v1 = vshrl.u32 %v6591_v44, 16 }
 0x1b1   : > { %5167 = vmatpush3.bf16.msra.mxu1 %v5689_v28  ;;  %v5692_v28 = vld [vmem:[#allocation3 + $0x178] sm:$0xff]   ;;  %v1520_v26 = vsel %vm6426_vm12, %v1515_v27, %v1519_v52  ;;  %v1525_v35 = vrot.slane %v1524_v31, 4  ;;  %v2671_v37 = vrot.slane %v2669_v51, 5  ;;  %v1535_v48 = vshll.u32 %v6591_v44, 16  ;;  %v6616_v27 = vld [vmem:[%s6396_s23 + $0x58] sm:$0xf] }
 0x1b2   : > { %5168 = vmatprep.subr.bf16.mxu1 %v5691_v61  ;;  %5295 = vmatpush3.bf16.msra.mxu0 %v5690_v7  ;;  %v2666_v52 = vor.u32 %v2665_v36, %v2661_v34  ;;  %v1541_v46 = vshll.u32 %v6597_v4, 16  ;;  %v1545_v57 = vshrl.u32 %v6597_v4, 16  ;;  %v1534_v8 = vrot.slane %v1532_v1, 4  ;;  %v6621_v31 = vld [vmem:[%s6396_s23 + $0x5c] sm:$0x1] }
 0x1b3   : > { %5274 = vmatprep.mubr.bf16.mxu0 %v4654_v0  ;;  %5296 = vmatprep.subr.bf16.mxu0 %v5692_v28  ;;  %v1530_v33 = vsel %vm6426_vm12, %v1525_v35, %v1529_v22  ;;  %v1537_v17 = vrot.slane %v1535_v48, 5  ;;  %v1551_v7 = vshll.u32 %v6602_v12, 16  ;;  %v6624_v51 = vld [vmem:[%s6396_s23 + $0x54] sm:$0xf]  ;;  %v2674_v22 = vshrl.u32 %v4644_v54, 16 }
 0x1b4   : > { %v4541_v18 = vcombine.low %v1520_v26, %v1530_v33  ;;  %v2667_v11 = vrot.slane %v2666_v52, 4  ;;  %v1543_v38 = vrot.slane %v1541_v46, 5  ;;  %v6627_v35 = vld [vmem:[%s6396_s23 + $0x58] sm:$0xf]  ;;  %v2683_v1 = vshll.u32 %v6616_v27, 16 }
 0x1b5   : > { %5169 = vmatpush3.bf16.msra.mxu1 %v5691_v61  ;;  %v2657_v61 = vrot.slane %v2656_v47, 4  ;;  %v1538_v0 = vor.u32 %v1537_v17, %v1534_v8  ;;  %v1547_v47 = vrot.slane %v1545_v57, 4  ;;  %v1553_v36 = vrot.slane %v1551_v7, 5  ;;  %v6636_v17 = vld [vmem:[%s6396_s23 + $0x5c] sm:$0x1] }
 0x1b6   : > { %5186 = vmatprep.subr.bf16.mxu1 %v6586_v5  ;;  %5297 = vmatpush3.bf16.msra.mxu0 %v5692_v28  ;;  %v2672_v26 = vsel %vm6426_vm12, %v2667_v11, %v2671_v37  ;;  %v2687_v48 = vshrl.u32 %v6616_v27, 16  ;;  %v2676_v57 = vrot.slane %v2674_v22, 4  ;;  %v2685_v33 = vrot.slane %v2683_v1, 5  ;;  %v6651_v12 = vld [vmem:[%s6396_s23 + $0x68] sm:$0x1] }
 0x1b7   : > { %v2662_v3 = vsel %vm6426_vm12, %v2657_v61, %v2661_v34  ;;  %5147 = vmatmul.mubr.bf16.gmra.mrb[8].mxu1 %v4541_v18  ;;  %v2677_v34 = vshll.u32 %v4644_v54, 16  ;;  %5314 = vmatprep.subr.bf16.mxu0 %v6610_v63  ;;  %v1539_v52 = vrot.slane %v1538_v0, 4  ;;  %v1548_v46 = vor.u32 %v1547_v47, %v1543_v38  ;;  %v4647_v54 = vld [vmem:[%s6396_s23 + $0x60] sm:$0xf] }
 0x1b8   : > { %v4655_v61 = vcombine.low %v2662_v3, %v2672_v26  ;;  %v2689_v8 = vrot.slane %v2687_v48, 4  ;;  %v2693_v37 = vshll.u32 %v6621_v31, 16  ;;  %v1556_v3 = vshrl.u32 %v6624_v51, 16 }
 0x1b9   : > { %v2679_v28 = vrot.slane %v2677_v34, 5  ;;  %v1544_v7 = vsel %vm6426_vm12, %v1539_v52, %v1543_v38  ;;  %v1549_v18 = vrot.slane %v1548_v46, 4  ;;  %v1559_v11 = vshll.u32 %v6624_v51, 16  ;;  %v6645_v34 = vld [vmem:[%s6396_s23 + $0x64] sm:$0xf] }
 0x1ba   : > { %5275 = vmatmul.mubr.bf16.gmra.mrb[8].mxu0 %v4655_v61  ;;  %v2690_v47 = vor.u32 %v2689_v8, %v2685_v33  ;;  %v2695_v22 = vrot.slane %v2693_v37, 5  ;;  %v1565_v26 = vshll.u32 %v6627_v35, 16  ;;  %v1558_v48 = vrot.slane %v1556_v3, 4 }
 0x1bb   : > { %v2680_v0 = vor.u32 %v2679_v28, %v2676_v57  ;;  %v1554_v1 = vsel %vm6426_vm12, %v1549_v18, %v1553_v36  ;;  %v1561_v61 = vrot.slane %v1559_v11, 5  ;;  %v1569_v38 = vshrl.u32 %v6627_v35, 16  ;;  %v4666_v57 = vld [vmem:[%s6396_s23 + $0xc] sm:$0xe] }
 0x1bc   : > { %v4542_v52 = vcombine.low %v1544_v7, %v1554_v1  ;;  %v2691_v9 = vrot.slane %v2690_v47, 4  ;;  %v1567_v39 = vrot.slane %v1565_v26, 5  ;;  %v1575_v37 = vshll.u32 %v6636_v17, 16 }
 0x1bd   : > { %v2681_v46 = vrot.slane %v2680_v0, 4  ;;  %v1562_v28 = vor.u32 %v1561_v61, %v1558_v48  ;;  %v1571_v8 = vrot.slane %v1569_v38, 4  ;;  %v2698_v60 = vshrl.u32 %v4647_v54, 16 }
 0x1be   : > { %5150 = vmatprep.mubr.bf16.mxu1 %v4542_v52  ;;  %v2696_v18 = vsel %vm6426_vm12, %v2691_v9, %v2695_v22  ;;  %v2701_v3 = vshll.u32 %v4647_v54, 16  ;;  %v2707_v7 = vshll.u32 %v6645_v34, 16  ;;  %v1577_v26 = vrot.slane %v1575_v37, 5  ;;  %v4667_v37 = vld [vmem:[%s6396_s23 + $0x18] sm:$0xe] }
 0x1bf   : > { %v2686_v36 = vsel %vm6426_vm12, %v2681_v46, %v2685_v33  ;;  %v1563_v0 = vrot.slane %v1562_v28, 4  ;;  %v1572_v47 = vor.u32 %v1571_v8, %v1567_v39  ;;  %v2700_v1 = vrot.slane %v2698_v60, 4 }
 0x1c0   : > { %v4656_v11 = vcombine.low %v2686_v36, %v2696_v18  ;;  %v2703_v48 = vrot.slane %v2701_v3, 5  ;;  %v2709_v61 = vrot.slane %v2707_v7, 5  ;;  %v2711_v38 = vshrl.u32 %v6645_v34, 16  ;;  %v4668_v36 = vld [vmem:[%s6396_s23 + $0x24] sm:$0xe] }
 0x1c1   : > { %v1568_v33 = vsel %vm6426_vm12, %v1563_v0, %v1567_v39  ;;  %v1573_v52 = vrot.slane %v1572_v47, 4  ;;  %v2717_v9 = vshll.u32 %v6651_v12, 16  ;;  %v4674_v54 = vrot.slane %v4666_v57, 9 }
 0x1c2   : > { %5278 = vmatprep.mubr.bf16.mxu0 %v4656_v11  ;;  %v2704_v22 = vor.u32 %v2703_v48, %v2700_v1  ;;  %v2713_v46 = vrot.slane %v2711_v38, 4  ;;  %v2965_v60 = vrot.slane %v6414_v13, 5  ;;  %v4552_v39 = vcombine.low %v6399_v2, %v6402_v56 }
 0x1c3   : > { %v1578_v8 = vsel %vm6426_vm12, %v1573_v52, %v1577_v26  ;;  %v2719_v7 = vrot.slane %v2717_v9, 5  ;;  %v2979_v26 = vrot.slane %v6482_v21, 5  ;;  %v7329_v2 = vrot.slane %v6447_v49, 5 }
 0x1c4   : > { %v4543_v18 = vcombine.low %v1568_v33, %v1578_v8  ;;  %v2705_v57 = vrot.slane %v2704_v22, 4  ;;  %v2714_v3 = vor.u32 %v2713_v46, %v2709_v61  ;;  %v2966_v11 = vsel %vm6666_vm15, %v4674_v54, %v2965_v60  ;;  %v4669_v54 = vld [vmem:[%s6396_s23 + $0x30] sm:$0xe] }
 0x1c5   : > { %v2967_v0 = vrot.slane %v2965_v60, 4  ;;  %v2974_v56 = vrot.slane %v7329_v2, 4  ;;  %v2975_v1 = vrot.slane %v6453_v59, 5  ;;  %v7330_v48 = vrot.slane %v6417_v41, 5 }
 0x1c6   : > { %5151 = vmatmul.mubr.bf16.gmra.mrb[12].mxu1 %v4543_v18  ;;  %v2710_v13 = vsel %vm6426_vm12, %v2705_v57, %v2709_v61  ;;  %v2715_v47 = vrot.slane %v2714_v3, 4  ;;  %v4675_v61 = vrot.slane %v4667_v37, 9  ;;  %v4676_v9 = vrot.slane %v4668_v36, 9  ;;  %v4670_v37 = vld [vmem:[%s6396_s23 + $0x3c] sm:$0xe]  ;;  %v5697_v18 = vld [vmem:[#allocation3 + $0x88] sm:$0xff]  }
 0x1c7   : > { %5170 = vmatprep.mubr.bf16.mxu1 %v4552_v39  ;;  %v2969_v38 = vsel %vm6666_vm15, %v2967_v0, %v7330_v48  ;;  %v2981_v22 = vrot.slane %v2979_v26, 4  ;;  %v2982_v46 = vrot.slane %v6487_v45, 5  ;;  %v1998_v59 = vrot.slane %v6405_v23, 5 }
 0x1c8   : > { %v2720_v33 = vsel %vm6426_vm12, %v2715_v47, %v2719_v7  ;;  %v4682_v52 = vcombine.low %v2966_v11, %v2969_v38  ;;  %v2005_v41 = vrot.slane %v6439_v40, 5  ;;  %v4553_v60 = vcombine.low %v6422_v25, %v6432_v14  ;;  %v5703_v38 = vld [vmem:[#allocation3 + $0x98] sm:$0xff]  }
 0x1c9   : > { %v4657_v21 = vcombine.low %v2710_v13, %v2720_v33  ;;  %v2976_v8 = vsel %vm6666_vm15, %v2974_v56, %v2975_v1  ;;  %v4554_v39 = vcombine.low %v6462_v16, %v6470_v62  ;;  %v7331_v36 = vmov %v7329_v2  ;;  %v6713_v62 = vld [vmem:[%s6396_s23 + $0x48] sm:$0xe]  ;;  %v6720_v13 = vld [vmem:[%s6396_s23 + $0x54] sm:$0xe]  ;;  %v6723_v56 = vld [vmem:[%s6396_s23 + $0x60] sm:$0xe] }
 0x1ca   : > { %v2973_v45 = vsel %vm6666_vm15, %v4675_v61, %v7331_v36  ;;  %v4677_v57 = vrot.slane %v4669_v54, 9  ;;  %v2986_v3 = vrot.slane %v6507_v24, 5  ;;  %v2993_v25 = vrot.slane %v6546_v42, 5  ;;  %v5698_v42 = vld [vmem:[#allocation3 + $0x188] sm:$0xff]  }
 0x1cb   : > { %5279 = vmatmul.mubr.bf16.gmra.mrb[12].mxu0 %v4657_v21  ;;  %v2980_v14 = vsel %vm6666_vm15, %v4676_v9, %v2979_v26  ;;  %v2983_v16 = vsel %vm6666_vm15, %v2981_v22, %v2982_v46  ;;  %v2989_v49 = vrot.slane %v6520_v43, 5  ;;  %v4678_v7 = vrot.slane %v4670_v37, 9  ;;  %v5702_v9 = vld [vmem:[#allocation3 + $0x190] sm:$0xff]   ;;  %v6741_v22 = vld [vmem:[%s6396_s23 + $0x4] sm:$0xf]  ;;  %v5707_v37 = vld [vmem:[#allocation3 + $0xa0] sm:$0xff]  }
 0x1cc   : > { %5298 = vmatprep.mubr.bf16.mxu0 %v4682_v52  ;;  %v2996_v11 = vrot.slane %v6552_v20, 5  ;;  %v3000_v0 = vrot.slane %v6574_v19, 5  ;;  %v4683_v24 = vcombine.low %v2973_v45, %v2976_v8  ;;  %v4684_v47 = vcombine.low %v2980_v14, %v2983_v16  ;;  %v5701_v20 = vld [vmem:[#allocation3 + $0x90] sm:$0xff]  }
 0x1cd   : > { %v2988_v26 = vrot.slane %v2986_v3, 4  ;;  %v2995_v2 = vrot.slane %v2993_v25, 4  ;;  %v4555_v43 = vcombine.low %v6490_v58, %v6497_v50  ;;  %v2987_v1 = vsel %vm6666_vm15, %v4677_v57, %v2986_v3  ;;  %v6758_v3 = vld [vmem:[%s6396_s23 + $0x10] sm:$0xf] }
 0x1ce   : > { %5171 = vmatmul.mubr.bf16.vlgmr.msra.gmra.mrb[0].mxu1 %v4553_v60  ;;  %v4679_v48 = vrot.slane %v6713_v62, 9  ;;  %v3002_v33 = vrot.slane %v3000_v0, 4  ;;  %v3003_v52 = vrot.slane %v6584_v32, 5  ;;  %v4680_v61 = vrot.slane %v6720_v13, 9  ;;  %v1966_v60 = vld [vmem:[%s6396_s23] sm:$0xe] }
 0x1cf   : > { %5187 = vmatpush3.bf16.msra.mxu1 %v6586_v5  ;;  %5174 = vmatprep.mubr.bf16.mxu1 %v4554_v39  ;;  %v4556_v5 = vcombine.low %v6524_v30, %v6530_v15  ;;  %v3007_v58 = vrot.slane %v6616_v27, 5  ;;  %v3010_v54 = vrot.slane %v6621_v31, 5  ;;  %v4681_v30 = vrot.slane %v6723_v56, 9  ;;  %v5704_v39 = vld [vmem:[#allocation3 + $0x198] sm:$0xff]   ;;  %v1969_v62 = vld [vmem:[%s6396_s23 + $0x24] sm:$0xe] }
 0x1d0   : > { %5188 = vmatprep.subr.bf16.mxu1 %v5697_v18  ;;  %v3014_v21 = vrot.slane %v6645_v34, 5  ;;  %v1995_v46 = vrot.slane %v6741_v22, 5  ;;  %v2990_v32 = vsel %vm6666_vm15, %v2988_v26, %v2989_v49  ;;  %v2994_v27 = vsel %vm6666_vm15, %v4678_v7, %v2993_v25  ;;  %v5708_v26 = vld [vmem:[#allocation3 + $0x1a0] sm:$0xff]  }
 0x1d1   : > { %v2997_v31 = vsel %vm6666_vm15, %v2995_v2, %v2996_v11  ;;  %v4685_v8 = vcombine.low %v2987_v1, %v2990_v32  ;;  %v3009_v36 = vrot.slane %v3007_v58, 4  ;;  %v3017_v45 = vrot.slane %v6651_v12, 5  ;;  %v5709_v11 = vld [vmem:[#allocation3 + $0xa8] sm:$0xff]   ;;  %v6784_v2 = vld [vmem:[%s6396_s23 + $0x18] sm:$0xe]  ;;  %v5714_v12 = vld [vmem:[#allocation3 + $0x1b0] sm:$0xff]  }
 0x1d2   : > { %v4568_v57 = vrot.slane %v1966_v60, 9  ;;  %v2002_v25 = vrot.slane %v6758_v3, 5  ;;  %v2016_v14 = vrot.slane %v6497_v50, 5  ;;  %v1997_v16 = vrot.slane %v1995_v46, 4  ;;  %v5759_v32 = vld [vmem:[%s6396_s23 + $0x1c] sm:$0xf] }
 0x1d3   : > { %5299 = vmatmul.mubr.bf16.vlgmr.msra.gmra.mrb[0].mxu0 %v4683_v24  ;;  %5189 = vmatpush3.bf16.msra.mxu1 %v5697_v18  ;;  %v6755_v18 = vrot.slane %v3014_v21, 4  ;;  %v2019_v49 = vrot.slane %v6500_v6, 5  ;;  %v4557_v7 = vcombine.low %v6558_v53, %v6561_v55  ;;  %v4558_v24 = vcombine.low %v6591_v44, %v6597_v4  ;;  %v7332_v22 = vld [vmem:[#allocation11_spill] sm:$0xff] }
 0x1d4   : > { %5315 = vmatpush3.bf16.msra.mxu0 %v6610_v63  ;;  %5302 = vmatprep.mubr.bf16.mxu0 %v4684_v47  ;;  %v4686_v63 = vcombine.low %v2994_v27, %v2997_v31  ;;  %v4571_v13 = vrot.slane %v1969_v62, 9  ;;  %v2018_v47 = vrot.slane %v2016_v14, 4  ;;  %v3001_v50 = vsel %vm6666_vm15, %v4679_v48, %v3000_v0  ;;  %v1971_v31 = vld [vmem:[%s6396_s23 + $0x3c] sm:$0xe] }
 0x1d5   : > { %5316 = vmatprep.subr.bf16.mxu0 %v5698_v42  ;;  %5190 = vmatprep.subr.bf16.mxu1 %v5701_v20  ;;  %v3004_v6 = vsel %vm6666_vm15, %v3002_v33, %v3003_v52  ;;  %v3008_v53 = vsel %vm6666_vm15, %v4680_v61, %v3007_v58  ;;  %v3011_v44 = vsel %vm6666_vm15, %v3009_v36, %v3010_v54  ;;  %v2023_v1 = vrot.slane %v6530_v15, 5  ;;  %v1970_v33 = vld [vmem:[%s6396_s23 + $0x30] sm:$0xe]  ;;  %v5710_v61 = vld [vmem:[#allocation3 + $0x1a8] sm:$0xff]  }
 0x1d6   : > { %5175 = vmatmul.mubr.bf16.gmra.mrb[4].mxu1 %v4555_v43  ;;  %v6788_v19 = vsel %vm6666_vm15, %v4571_v13, %v2016_v14  ;;  %v6792_v0 = vsel %vm6666_vm15, %v2018_v47, %v2019_v49  ;;  %v4559_v48 = vcombine.low %v6624_v51, %v6627_v35  ;;  %v2026_v52 = vrot.slane %v6537_v10, 5  ;;  %v5713_v51 = vld [vmem:[#allocation3 + $0xb0] sm:$0xff]   ;;  %v7333_v49 = vld [vmem:[#allocation12_spill] sm:$0xff]  ;;  %v5716_v13 = vld [vmem:[#allocation3 + $0x1b8] sm:$0xff]  }
 0x1d7   : > { %5191 = vmatpush3.bf16.msra.mxu1 %v5701_v20  ;;  %5178 = vmatprep.mubr.bf16.mxu1 %v4556_v5  ;;  %v4579_v20 = vcombine.low %v6788_v19, %v6792_v0  ;;  %v4687_v5 = vcombine.low %v3001_v50, %v3004_v6  ;;  %v4688_v58 = vcombine.low %v3008_v53, %v3011_v44  ;;  %v2025_v54 = vrot.slane %v2023_v1, 4  ;;  %v1973_v6 = vld [vmem:[%s6396_s23 + $0x54] sm:$0xe]  ;;  %v5730_v19 = vld [vmem:[#allocation3 + $0xe0] sm:$0xff]  }
 0x1d8   : > { %5317 = vmatpush3.bf16.msra.mxu0 %v5698_v42  ;;  %5192 = vmatprep.subr.bf16.mxu1 %v5703_v38  ;;  %v6771_v42 = vld [vmem:[%s6396_s23 + $0xc] sm:$0xe]  ;;  %v1996_v15 = vsel %vm6666_vm15, %v4568_v57, %v1995_v46  ;;  %v1999_v10 = vsel %vm6666_vm15, %v1997_v16, %v1998_v59  ;;  %v2009_v27 = vrot.slane %v5759_v32, 5  ;;  %v2030_v60 = vrot.slane %v6561_v55, 5  ;;  %v5715_v59 = vld [vmem:[#allocation3 + $0xb8] sm:$0xff]  }
 0x1d9   : > { %5318 = vmatprep.subr.bf16.mxu0 %v5702_v9  ;;  %v4569_v43 = vrot.slane %v6771_v42, 9  ;;  %v4570_v46 = vrot.slane %v6784_v2, 9  ;;  %v6823_v23 = vsel %vm6666_vm15, %v2025_v54, %v2026_v52  ;;  %v3015_v55 = vsel %vm6666_vm15, %v4681_v30, %v3014_v21  ;;  %v5718_v2 = vld [vmem:[#allocation3 + $0xc0] sm:$0xff]   ;;  %v5719_v54 = vld [vmem:[%s6396_s23 + $0x24] sm:$0xff]  }
 0x1da   : > { %v2032_v14 = vrot.slane %v2030_v60, 4  ;;  %v3018_v34 = vsel %vm6666_vm15, %v6755_v18, %v3017_v45  ;;  %v4576_v56 = vcombine.low %v1996_v15, %v1999_v10  ;;  %v2011_v21 = vrot.slane %v2009_v27, 4  ;;  %v1972_v18 = vld [vmem:[%s6396_s23 + $0x48] sm:$0xe]  ;;  %v5720_v52 = vld [vmem:[#allocation3 + $0x1c0] sm:$0xff]  }
 0x1db   : > { %5303 = vmatmul.mubr.bf16.gmra.mrb[4].mxu0 %v4685_v8  ;;  %5193 = vmatpush3.bf16.msra.mxu1 %v5703_v38  ;;  %v2004_v38 = vrot.slane %v2002_v25, 4  ;;  %v2033_v8 = vrot.slane %v7332_v22, 5  ;;  %v2037_v62 = vrot.slane %v6597_v4, 5  ;;  %v4574_v42 = vrot.slane %v1972_v18, 9  ;;  %v6895_v10 = vld [vmem:[%s6396_s23 + $0x20] sm:$0x1] }
 0x1dc   : > { %5319 = vmatpush3.bf16.msra.mxu0 %v5702_v9  ;;  %5306 = vmatprep.mubr.bf16.mxu0 %v4686_v63  ;;  %v4572_v9 = vrot.slane %v1970_v33, 9  ;;  %v4573_v63 = vrot.slane %v1971_v31, 9  ;;  %v2010_v50 = vsel %vm6666_vm15, %v4570_v46, %v2009_v27  ;;  %v2047_v3 = vrot.slane %v6636_v17, 5  ;;  %v5722_v31 = vld [vmem:[#allocation3 + $0x1c8] sm:$0xff]  }
 0x1dd   : > { %5320 = vmatprep.subr.bf16.mxu0 %v5704_v39  ;;  %5194 = vmatprep.subr.bf16.mxu1 %v5707_v37  ;;  %v6845_v16 = vsel %vm6666_vm15, %v2032_v14, %v2033_v8  ;;  %v2039_v4 = vrot.slane %v2037_v62, 4  ;;  %v2006_v47 = vsel %vm6666_vm15, %v2004_v38, %v2005_v41  ;;  %v6870_v40 = vsel %vm6666_vm15, %v4574_v42, %v2037_v62  ;;  %v5721_v38 = vld [vmem:[#allocation3 + $0xc8] sm:$0xff]   ;;  %v6904_v14 = vld [vmem:[%s6396_s23 + $0x28] sm:$0xf] }
 0x1de   : > { %5179 = vmatmul.mubr.bf16.gmra.mrb[8].mxu1 %v4557_v7  ;;  %v6841_v30 = vsel %vm6666_vm15, %v4573_v63, %v2030_v60  ;;  %v2040_v7 = vrot.slane %v7333_v49, 5  ;;  %v4575_v44 = vrot.slane %v1973_v6, 9  ;;  %v5724_v60 = vld [vmem:[#allocation3 + $0xd0] sm:$0xff]   ;;  %v4735_v46 = vld [vmem:[%s6396_s23 + $0x24] sm:$0xf]  ;;  %v5725_v18 = vld [vmem:[%s6396_s23 + $0x3c] sm:$0xff]  }
 0x1df   : > { %5195 = vmatpush3.bf16.msra.mxu1 %v5707_v37  ;;  %5182 = vmatprep.mubr.bf16.mxu1 %v4558_v24  ;;  %v5760_v37 = vld [vmem:[%s6396_s23 + $0x20] sm:$0x1]  ;;  %v4581_v45 = vcombine.low %v6841_v30, %v6845_v16  ;;  %v2003_v24 = vsel %vm6666_vm15, %v4569_v43, %v2002_v25  ;;  %v5717_v25 = vld [vmem:[%s6396_s23 + $0x18] sm:$0xff]   ;;  %v5726_v63 = vld [vmem:[#allocation3 + $0x1d0] sm:$0xff]  }
 0x1e0   : > { %5321 = vmatpush3.bf16.msra.mxu0 %v5704_v39  ;;  %5196 = vmatprep.subr.bf16.mxu1 %v5709_v11  ;;  %v6819_v39 = vsel %vm6666_vm15, %v4572_v9, %v2023_v1  ;;  %v2012_v36 = vrot.slane %v5760_v37, 5  ;;  %v6874_v41 = vsel %vm6666_vm15, %v2039_v4, %v2040_v7  ;;  %v4577_v43 = vcombine.low %v2003_v24, %v2006_v47  ;;  %v5728_v49 = vld [vmem:[#allocation3 + $0x1d8] sm:$0xff]   ;;  %v5729_v42 = vld [vmem:[%s6396_s23 + $0x48] sm:$0xff]  }
 0x1e1   : > { %5322 = vmatprep.subr.bf16.mxu0 %v5708_v26  ;;  %v4580_v57 = vcombine.low %v6819_v39, %v6823_v23  ;;  %v3533_v7 = vshll.u32 %v6904_v14, 16  ;;  %v6920_v24 = vld [vmem:[%s6396_s23 + $0x34] sm:$0xf] }
 0x1e2   : > { %v2013_v53 = vsel %vm6666_vm15, %v2011_v21, %v2012_v36  ;;  %v3527_v21 = vshll.u32 %v4735_v46, 16  ;;  %v3557_v6 = vshll.u32 %v6920_v24, 16 }
 0x1e3   : > { %5307 = vmatmul.mubr.bf16.gmra.mrb[8].mxu0 %v4687_v5  ;;  %5197 = vmatpush3.bf16.msra.mxu1 %v5709_v11  ;;  %v4689_v11 = vcombine.low %v3015_v55, %v3018_v34  ;;  %v4578_v5 = vcombine.low %v2010_v50, %v2013_v53  ;;  %v5727_v55 = vld [vmem:[#allocation3 + $0xd8] sm:$0xff]   ;;  %v6907_v34 = vld [vmem:[%s6396_s23 + $0x2c] sm:$0x1] }
 0x1e4   : > { %5323 = vmatpush3.bf16.msra.mxu0 %v5708_v26  ;;  %5310 = vmatprep.mubr.bf16.mxu0 %v4688_v58  ;;  %v2044_v26 = vrot.slane %v6627_v35, 5  ;;  %v4582_v35 = vcombine.low %v6870_v40, %v6874_v41  ;;  %v6890_v58 = vld [vmem:[%s6396_s23 + $0x1c] sm:$0xf]  ;;  %v3529_v39 = vrot.slane %v3527_v21, 5  ;;  %v3543_v23 = vshll.u32 %v6907_v34, 16  ;;  %v5741_v21 = vld [vmem:[%s6396_s23 + $0xc] sm:$0xff]  }
 0x1e5   : > { %5324 = vmatprep.subr.bf16.mxu0 %v5710_v61  ;;  %5198 = vmatprep.subr.bf16.mxu1 %v5713_v51  ;;  %v3509_v32 = vshll.u32 %v6890_v58, 16  ;;  %v3513_v27 = vshrl.u32 %v6890_v58, 16 }
 0x1e6   : > { %5183 = vmatmul.mubr.bf16.gmra.mrb[12].mxu1 %v4559_v48  ;;  %v2046_v17 = vrot.slane %v2044_v26, 4  ;;  %v6880_v1 = vsel %vm6666_vm15, %v4575_v44, %v2044_v26  ;;  %v3561_v26 = vshrl.u32 %v6920_v24, 16  ;;  %v6934_v44 = vld [vmem:[%s6396_s23 + $0x38] sm:$0x1] }
 0x1e7   : > { %5199 = vmatpush3.bf16.msra.mxu1 %v5713_v51  ;;  %5202 = vmatprep.mubr.bf16.mxu1 %v4576_v56  ;;  %v5723_v51 = vld [vmem:[%s6396_s23 + $0x30] sm:$0xff]   ;;  %v6901_v37 = vrot.slane %v3509_v32, 5  ;;  %v3515_v36 = vrot.slane %v3513_v27, 4  ;;  %v3524_v56 = vshrl.u32 %v4735_v46, 16  ;;  %v6972_v46 = vrot.slane %v3543_v23, 5 }
 0x1e8   : > { %5325 = vmatpush3.bf16.msra.mxu0 %v5710_v61  ;;  %5200 = vmatprep.subr.bf16.mxu1 %v5715_v59  ;;  %v6884_v48 = vsel %vm6666_vm15, %v2046_v17, %v2047_v3  ;;  %v4732_v61 = vld [vmem:[%s6396_s23 + $0x18] sm:$0xf] }
 0x1e9   : > { %5326 = vmatprep.subr.bf16.mxu0 %v5714_v12  ;;  %v4583_v33 = vcombine.low %v6880_v1, %v6884_v48  ;;  %v3500_v15 = vshrl.u32 %v4732_v61, 16  ;;  %v3503_v9 = vshll.u32 %v4732_v61, 16  ;;  %v3516_v0 = vor.u32 %v3515_v36, %v6901_v37  ;;  %v5732_v3 = vld [vmem:[#allocation3 + $0x1e0] sm:$0xff]   ;;  %v5735_v61 = vld [vmem:[%s6396_s23 + $0x60] sm:$0xff]  }
 0x1eb   : > { %5311 = vmatmul.mubr.bf16.gmra.mrb[12].mxu0 %v4689_v11  ;;  %5201 = vmatpush3.bf16.msra.mxu1 %v5715_v59  ;;  %v3502_v22 = vrot.slane %v3500_v15, 4  ;;  %v3505_v8 = vrot.slane %v3503_v9, 5  ;;  %v3519_v59 = vshll.u32 %v6895_v10, 16  ;;  %v3537_v11 = vshrl.u32 %v6904_v14, 16 }
 0x1ec   : > { %5327 = vmatpush3.bf16.msra.mxu0 %v5714_v12  ;;  %5330 = vmatprep.mubr.bf16.mxu0 %v5717_v25  ;;  %v4738_v12 = vld [vmem:[%s6396_s23 + $0x30] sm:$0xf]  ;;  %v6931_v25 = vrot.slane %v3533_v7, 5  ;;  %v6949_v9 = vrot.slane %v3557_v6, 5  ;;  %v6984_v7 = vld [vmem:[%s6396_s23 + $0x44] sm:$0x1] }
 0x1ed   : > { %5328 = vmatprep.subr.bf16.mxu0 %v5716_v13  ;;  %5218 = vmatprep.subr.bf16.mxu1 %v5718_v2  ;;  %v3506_v62 = vor.u32 %v3505_v8, %v3502_v22  ;;  %v6924_v4 = vrot.slane %v3519_v59, 5  ;;  %v3551_v50 = vshll.u32 %v4738_v12, 16  ;;  %v3539_v53 = vrot.slane %v3537_v11, 4  ;;  %v5734_v22 = vld [vmem:[#allocation3 + $0x1e8] sm:$0xff]   ;;  %v5736_v8 = vld [vmem:[#allocation3 + $0xf0] sm:$0xff]  }
 0x1ee   : > { %5203 = vmatmul.mubr.bf16.vlgmr.msra.gmra.mrb[0].mxu1 %v4577_v43  ;;  %v4741_v43 = vld [vmem:[%s6396_s23 + $0x3c] sm:$0xf] }
 0x1ef   : > { %5219 = vmatpush3.bf16.msra.mxu1 %v5718_v2  ;;  %5206 = vmatprep.mubr.bf16.mxu1 %v4578_v5  ;;  %v6927_v47 = vrot.slane %v3506_v62, 4  ;;  %v6936_v2 = vrot.slane %v3516_v0, 4  ;;  %v3553_v15 = vrot.slane %v3551_v50, 5  ;;  %v3540_v32 = vor.u32 %v3539_v53, %v6931_v25 }
 0x1f0   : > { %5329 = vmatpush3.bf16.msra.mxu0 %v5716_v13  ;;  %5220 = vmatprep.subr.bf16.mxu1 %v5721_v38  ;;  %v3526_v13 = vrot.slane %v3524_v56, 4  ;;  %v3572_v27 = vshrl.u32 %v4741_v43, 16  ;;  %v3575_v30 = vshll.u32 %v4741_v43, 16  ;;  %v5738_v56 = vld [vmem:[#allocation3 + $0x1f0] sm:$0xff]  }
 0x1f1   : > { %5346 = vmatprep.subr.bf16.mxu0 %v5720_v52  ;;  %v3512_v40 = vsel %vm6426_vm12, %v6927_v47, %v6901_v37  ;;  %v3522_v41 = vsel %vm6426_vm12, %v6936_v2, %v6924_v4  ;;  %v5739_v37 = vld [vmem:[#allocation3 + $0xf8] sm:$0xff]   ;;  %v6977_v62 = vrot.slane %v3540_v32, 4  ;;  %v7002_v2 = vld [vmem:[%s6396_s23 + $0x58] sm:$0xf]  ;;  %v4750_v32 = vld [vmem:[%s6396_s23 + $0x60] sm:$0xf] }
 0x1f2   : > { %v3530_v5 = vor.u32 %v3529_v39, %v3526_v13  ;;  %v3574_v11 = vrot.slane %v3572_v27, 4  ;;  %v6990_v4 = vld [vmem:[%s6396_s23 + $0x50] sm:$0x1]  ;;  %v4756_v50 = vcombine.low %v3512_v40, %v3522_v41  ;;  %v7016_v27 = vld [vmem:[%s6396_s23 + $0x64] sm:$0xf] }
 0x1f3   : > { %5331 = vmatmul.mubr.bf16.vlgmr.msra.gmra.mrb[0].mxu0 %v5719_v54  ;;  %5221 = vmatpush3.bf16.msra.mxu1 %v5721_v38  ;;  %v6942_v38 = vld [vmem:[%s6396_s23 + $0x40] sm:$0xf]  ;;  %v3563_v54 = vrot.slane %v3561_v26, 4  ;;  %v5740_v47 = vld [vmem:[#allocation3 + $0x1f8] sm:$0xff]   ;;  %v3591_v26 = vshll.u32 %v6984_v7, 16  ;;  %v3615_v53 = vshll.u32 %v6990_v4, 16 }
 0x1f4   : > { %5347 = vmatpush3.bf16.msra.mxu0 %v5720_v52  ;;  %5334 = vmatprep.mubr.bf16.mxu0 %v5723_v51  ;;  %v5731_v52 = vld [vmem:[%s6396_s23 + $0x54] sm:$0xff]   ;;  %v3567_v51 = vshll.u32 %v6934_v44, 16  ;;  %v3581_v16 = vshll.u32 %v6942_v38, 16 }
 0x1f5   : > { %5348 = vmatprep.subr.bf16.mxu0 %v5722_v31  ;;  %5222 = vmatprep.subr.bf16.mxu1 %v5724_v60 }
 0x1f6   : > { %5207 = vmatmul.mubr.bf16.gmra.mrb[4].mxu1 %v4579_v20  ;;  %v3548_v20 = vshrl.u32 %v4738_v12, 16 }
 0x1f7   : > { %5223 = vmatpush3.bf16.msra.mxu1 %v5724_v60  ;;  %5210 = vmatprep.mubr.bf16.mxu1 %v4580_v57  ;;  %v5733_v57 = vld [vmem:[#allocation3 + $0xe8] sm:$0xff]   ;;  %v6960_v60 = vld [vmem:[%s6396_s23 + $0x4c] sm:$0xf] }
 0x1f8   : > { %5349 = vmatpush3.bf16.msra.mxu0 %v5722_v31  ;;  %5224 = vmatprep.subr.bf16.mxu1 %v5727_v55  ;;  %v6938_v17 = vrot.slane %v3548_v20, 4  ;;  %v4744_v31 = vld [vmem:[%s6396_s23 + $0x48] sm:$0xf]  ;;  %v3605_v59 = vshll.u32 %v6960_v60, 16  ;;  %v3609_v36 = vshrl.u32 %v6960_v60, 16  ;;  %v5737_v20 = vld [vmem:[%s6396_s23 + $0x6c] sm:$0xff]  }
 0x1f9   : > { %5350 = vmatprep.subr.bf16.mxu0 %v5726_v63 }
 0x1fa   : > { %v3554_v12 = vor.u32 %v3553_v15, %v6938_v17  ;;  %v6995_v23 = vrot.slane %v3605_v59, 5  ;;  %v5742_v17 = vld [vmem:[%s6396_s23 + $0x18] sm:$0xff]  }
 0x1fb   : > { %5335 = vmatmul.mubr.bf16.gmra.mrb[4].mxu0 %v5725_v18  ;;  %5225 = vmatpush3.bf16.msra.mxu1 %v5727_v55  ;;  %v3599_v55 = vshll.u32 %v4744_v31, 16  ;;  %v3564_v18 = vor.u32 %v3563_v54, %v6949_v9 }
 0x1fc   : > { %5351 = vmatpush3.bf16.msra.mxu0 %v5726_v63  ;;  %5338 = vmatprep.mubr.bf16.mxu0 %v5729_v42  ;;  %v3596_v63 = vshrl.u32 %v4744_v31, 16  ;;  %v3577_v42 = vrot.slane %v3575_v30, 5  ;;  %v3555_v6 = vrot.slane %v3554_v12, 4  ;;  %v5745_v30 = vld [vmem:[%s6396_s23 + $0x24] sm:$0xff]   ;;  %v3633_v31 = vshrl.u32 %v7002_v2, 16 }
 0x1fd   : > { %5352 = vmatprep.subr.bf16.mxu0 %v5728_v49  ;;  %5226 = vmatprep.subr.bf16.mxu1 %v5730_v19  ;;  %v3601_v39 = vrot.slane %v3599_v55, 5  ;;  %v3565_v1 = vrot.slane %v3564_v18, 4  ;;  %v3657_v55 = vshrl.u32 %v7016_v27, 16  ;;  %v7038_v12 = vld [vmem:[%s6396_s23 + $0x5c] sm:$0x1] }
 0x1fe   : > { %5211 = vmatmul.mubr.bf16.gmra.mrb[8].mxu1 %v4581_v45  ;;  %v3585_v45 = vshrl.u32 %v6942_v38, 16  ;;  %v3598_v13 = vrot.slane %v3596_v63, 4  ;;  %v3578_v48 = vor.u32 %v3577_v42, %v3574_v11  ;;  %v3653_v63 = vshll.u32 %v7016_v27, 16  ;;  %v4753_v42 = vld [vmem:[%s6396_s23 + $0x6c] sm:$0xf] }
 0x1ff   : > { %5227 = vmatpush3.bf16.msra.mxu1 %v5730_v19  ;;  %5214 = vmatprep.mubr.bf16.mxu1 %v4582_v35  ;;  %v6970_v35 = vrot.slane %v3530_v5, 4  ;;  %v6986_v19 = vrot.slane %v3581_v16, 5  ;;  %v3546_v5 = vsel %vm6426_vm12, %v6977_v62, %v6972_v46  ;;  %v7022_v16 = vrot.slane %v3591_v26, 5  ;;  %v7035_v62 = vld [vmem:[#allocation3 + $0x210] sm:$0xff]  }
 0x200   : > { %5353 = vmatpush3.bf16.msra.mxu0 %v5728_v49  ;;  %5228 = vmatprep.subr.bf16.mxu1 %v5733_v57  ;;  %v6981_v49 = vrot.slane %v3567_v51, 5  ;;  %v3587_v0 = vrot.slane %v3585_v45, 4  ;;  %v3629_v45 = vshll.u32 %v7002_v2, 16  ;;  %v3579_v40 = vrot.slane %v3578_v48, 4 }
 0x201   : > { %5354 = vmatprep.subr.bf16.mxu0 %v5732_v3  ;;  %v3536_v43 = vsel %vm6426_vm12, %v6970_v35, %v6931_v25  ;;  %v3560_v25 = vsel %vm6426_vm12, %v3555_v6, %v6949_v9  ;;  %v7031_v35 = vrot.slane %v3615_v53, 5  ;;  %v3644_v9 = vshrl.u32 %v4750_v32, 16 }
 0x202   : > { %v3647_v46 = vshll.u32 %v4750_v32, 16  ;;  %v7040_v18 = vrot.slane %v3629_v45, 5  ;;  %v3584_v6 = vsel %vm6426_vm12, %v3579_v40, %v6986_v19  ;;  %v3668_v48 = vshrl.u32 %v4753_v42, 16 }
 0x203   : > { %5339 = vmatmul.mubr.bf16.gmra.mrb[8].mxu0 %v5731_v52  ;;  %5229 = vmatpush3.bf16.msra.mxu1 %v5733_v57  ;;  %v3611_v57 = vrot.slane %v3609_v36, 4  ;;  %v5743_v52 = vld [vmem:[#allocation3 + $0x200] sm:$0xff]  }
 0x204   : > { %5355 = vmatpush3.bf16.msra.mxu0 %v5732_v3  ;;  %5342 = vmatprep.mubr.bf16.mxu0 %v5735_v61  ;;  %v4747_v3 = vld [vmem:[%s6396_s23 + $0x54] sm:$0xf]  ;;  %v3602_v61 = vor.u32 %v3601_v39, %v3598_v13  ;;  %v3649_v13 = vrot.slane %v3647_v46, 5  ;;  %v7047_v39 = vrot.slane %v3653_v63, 5 }
 0x205   : > { %5356 = vmatprep.subr.bf16.mxu0 %v5734_v22  ;;  %5230 = vmatprep.subr.bf16.mxu1 %v5736_v8  ;;  %v3612_v15 = vor.u32 %v3611_v57, %v6995_v23  ;;  %v3620_v54 = vshrl.u32 %v4747_v3, 16  ;;  %v3623_v51 = vshll.u32 %v4747_v3, 16  ;;  %v3659_v57 = vrot.slane %v3657_v55, 4  ;;  %v7057_v3 = vld [vmem:[%s6396_s23 + $0x68] sm:$0x1] }
 0x206   : > { %5215 = vmatmul.mubr.bf16.gmra.mrb[12].mxu1 %v4583_v33  ;;  %v3588_v33 = vor.u32 %v3587_v0, %v6986_v19  ;;  %v3603_v59 = vrot.slane %v3602_v61, 4  ;;  %v7045_v0 = vld [vmem:[%s6396_s23 + $0x70] sm:$0xf]  ;;  %v3639_v61 = vshll.u32 %v7038_v12, 16 }
 0x207   : > { %5231 = vmatpush3.bf16.msra.mxu1 %v5736_v8  ;;  %5234 = vmatprep.mubr.bf16.mxu1 %v5741_v21  ;;  %v3570_v8 = vsel %vm6426_vm12, %v3565_v1, %v6981_v49  ;;  %v3613_v36 = vrot.slane %v3612_v15, 4  ;;  %v4757_v21 = vcombine.low %v3536_v43, %v3546_v5  ;;  %v3635_v49 = vrot.slane %v3633_v31, 4  ;;  %v5749_v1 = vld [vmem:[%s6396_s23 + $0x3c] sm:$0xff]   ;;  %v7063_v19 = vld [vmem:[#allocation3 + $0x218] sm:$0xff]  }
 0x208   : > { %5357 = vmatpush3.bf16.msra.mxu0 %v5734_v22  ;;  %5232 = vmatprep.subr.bf16.mxu1 %v5739_v37  ;;  %v7026_v22 = vld [vmem:[#allocation3 + $0x208] sm:$0xff]   ;;  %v3589_v41 = vrot.slane %v3588_v33, 4  ;;  %v4758_v11 = vcombine.low %v3560_v25, %v3570_v8  ;;  %v3671_v33 = vshll.u32 %v4753_v42, 16  ;;  %v3677_v53 = vshll.u32 %v7045_v0, 16 }
 0x209   : > { %5358 = vmatprep.subr.bf16.mxu0 %v5738_v56  ;;  %v3608_v43 = vsel %vm6426_vm12, %v3603_v59, %v6995_v23  ;;  %v3636_v5 = vor.u32 %v3635_v49, %v7040_v18  ;;  %v3618_v15 = vsel %vm6426_vm12, %v3613_v36, %v7031_v35  ;;  %v3641_v40 = vrot.slane %v3639_v61, 5  ;;  %v4776_v59 = vld [vmem:[%s6396_s23 + $0x48] sm:$0xe]  ;;  %v5752_v42 = vld [vmem:[#allocation3 + $0x228] sm:$0xff]  }
 0x20a   : > { %v3673_v25 = vrot.slane %v3671_v33, 5  ;;  %v4760_v31 = vcombine.low %v3608_v43, %v3618_v15  ;;  %v3963_v35 = vrot.slane %v6960_v60, 5  ;;  %v5750_v36 = vld [vmem:[%s6396_s23 + $0x48] sm:$0xff]   ;;  %v3973_v15 = vrot.slane %v7038_v12, 5 }
 0x20b   : > { %5343 = vmatmul.mubr.bf16.gmra.mrb[12].mxu0 %v5737_v20  ;;  %5233 = vmatpush3.bf16.msra.mxu1 %v5739_v37  ;;  %v3625_v37 = vrot.slane %v3623_v51, 5  ;;  %v3646_v20 = vrot.slane %v3644_v9, 4  ;;  %v3663_v51 = vshll.u32 %v7057_v3, 16  ;;  %v3637_v8 = vrot.slane %v3636_v5, 4  ;;  %v5751_v9 = vld [vmem:[#allocation3 + $0x220] sm:$0xff]   ;;  %v5755_v43 = vld [vmem:[#allocation3 + $0x230] sm:$0xff]  }
 0x20c   : > { %5359 = vmatpush3.bf16.msra.mxu0 %v5738_v56  ;;  %5362 = vmatprep.mubr.bf16.mxu0 %v4756_v50  ;;  %v3622_v56 = vrot.slane %v3620_v54, 4  ;;  %v5746_v50 = vld [vmem:[%s6396_s23 + $0x30] sm:$0xff]   ;;  %v3660_v54 = vor.u32 %v3659_v57, %v7047_v39  ;;  %v3966_v57 = vrot.slane %v6990_v4, 5  ;;  %v4778_v5 = vld [vmem:[%s6396_s23 + $0x60] sm:$0xe] }
 0x20d   : > { %5360 = vmatprep.subr.bf16.mxu0 %v5740_v47  ;;  %5412 = vmatprep.subr.bf16.mxu1 %v5743_v52  ;;  %v3665_v55 = vrot.slane %v3663_v51, 5 }
 0x20e   : > { %5235 = vmatmul.mubr.bf16.vlgmr.msra.gmra.mrb[0].mxu1 %v5742_v17  ;;  %v3626_v26 = vor.u32 %v3625_v37, %v3622_v56  ;;  %v3681_v17 = vshrl.u32 %v7045_v0, 16  ;;  %v3661_v63 = vrot.slane %v3660_v54, 4  ;;  %v5753_v37 = vld [vmem:[%s6396_s23 + $0x54] sm:$0xff]  }
 0x20f   : > { %5420 = vmatpush3.bf16.msra.mxu1 %v5743_v52  ;;  %5238 = vmatprep.mubr.bf16.mxu1 %v5745_v30  ;;  %v3670_v30 = vrot.slane %v3668_v48, 4 }
 0x210   : > { %5361 = vmatpush3.bf16.msra.mxu0 %v5740_v47  ;;  %5413 = vmatprep.subr.bf16.mxu1 %v7026_v22  ;;  %v3594_v47 = vsel %vm6426_vm12, %v3589_v41, %v7022_v16  ;;  %v3627_v32 = vrot.slane %v3626_v26, 4  ;;  %v7078_v16 = vrot.slane %v3677_v53, 5  ;;  %v3683_v45 = vrot.slane %v3681_v17, 4  ;;  %v7083_v41 = vld [vmem:[%s6396_s23 + $0x74] sm:$0x1] }
 0x211   : > { %5378 = vmatprep.subr.bf16.mxu0 %v5743_v52  ;;  %v4759_v23 = vcombine.low %v3584_v6, %v3594_v47  ;;  %v3674_v60 = vor.u32 %v3673_v25, %v3670_v30  ;;  %v3687_v49 = vshll.u32 %v7083_v41, 16  ;;  %v3938_v26 = vrot.slane %v6895_v10, 5  ;;  %v4777_v10 = vld [vmem:[%s6396_s23 + $0x54] sm:$0xe] }
 0x212   : > { %v3632_v56 = vsel %vm6426_vm12, %v3627_v32, %v7040_v18  ;;  %v3977_v17 = vrot.slane %v7016_v27, 5  ;;  %v4773_v32 = vld [vmem:[%s6396_s23 + $0x24] sm:$0xe]  ;;  %v4785_v12 = vrot.slane %v4777_v10, 9  ;;  %v5756_v30 = vld [vmem:[#allocation3 + $0x238] sm:$0xff]   ;;  %v3942_v25 = vrot.slane %v6904_v14, 5 }
 0x213   : > { %5363 = vmatmul.mubr.bf16.vlgmr.msra.gmra.mrb[0].mxu0 %v4757_v21  ;;  %5421 = vmatpush3.bf16.msra.mxu1 %v7026_v22  ;;  %v3684_v21 = vor.u32 %v3683_v45, %v7078_v16  ;;  %v3689_v33 = vrot.slane %v3687_v49, 5  ;;  %v4786_v45 = vrot.slane %v4778_v5, 9  ;;  %v4781_v29 = vrot.slane %v4773_v32, 9 }
 0x214   : > { %5379 = vmatpush3.bf16.msra.mxu0 %v5743_v52  ;;  %5366 = vmatprep.mubr.bf16.mxu0 %v4758_v11  ;;  %v3650_v52 = vor.u32 %v3649_v13, %v3646_v20  ;;  %v4772_v11 = vld [vmem:[%s6396_s23 + $0x18] sm:$0xe]  ;;  %v4784_v20 = vrot.slane %v4776_v59, 9  ;;  %v3965_v13 = vrot.slane %v3963_v35, 4 }
 0x215   : > { %5380 = vmatprep.subr.bf16.mxu0 %v7026_v22  ;;  %5414 = vmatprep.subr.bf16.mxu1 %v7035_v62  ;;  %v4780_v6 = vrot.slane %v4772_v11, 9  ;;  %v3685_v48 = vrot.slane %v3684_v21, 4  ;;  %v3943_v11 = vsel %vm6666_vm15, %v4781_v29, %v3942_v25 }
 0x216   : > { %5239 = vmatmul.mubr.bf16.gmra.mrb[4].mxu1 %v5746_v50  ;;  %v3651_v46 = vrot.slane %v3650_v52, 4  ;;  %v3666_v50 = vsel %vm6426_vm12, %v3661_v63, %v3665_v55  ;;  %v3964_v53 = vsel %vm6666_vm15, %v4784_v20, %v3963_v35  ;;  %v5754_v52 = vld [vmem:[%s6396_s23 + $0x60] sm:$0xff]   ;;  %v4774_v35 = vld [vmem:[%s6396_s23 + $0x30] sm:$0xe]  ;;  %v3944_v63 = vrot.slane %v3942_v25, 4 }
 0x217   : > { %5422 = vmatpush3.bf16.msra.mxu1 %v7035_v62  ;;  %5242 = vmatprep.mubr.bf16.mxu1 %v5749_v1  ;;  %v3675_v1 = vrot.slane %v3674_v60, 4  ;;  %v3690_v27 = vsel %vm6426_vm12, %v3685_v48, %v3689_v33  ;;  %v3978_v55 = vsel %vm6666_vm15, %v4786_v45, %v3977_v17 }
 0x218   : > { %5381 = vmatpush3.bf16.msra.mxu0 %v7026_v22  ;;  %5415 = vmatprep.subr.bf16.mxu1 %v7063_v19  ;;  %v3935_v22 = vrot.slane %v6890_v58, 5  ;;  %v3642_v58 = vsel %vm6426_vm12, %v3637_v8, %v3641_v40  ;;  %v3656_v18 = vsel %vm6426_vm12, %v3651_v46, %v7047_v39  ;;  %v3980_v8 = vrot.slane %v7057_v3, 5 }
 0x219   : > { %5382 = vmatprep.subr.bf16.mxu0 %v7035_v62  ;;  %v4761_v4 = vcombine.low %v3632_v56, %v3642_v58  ;;  %v4762_v39 = vcombine.low %v3656_v18, %v3666_v50  ;;  %v3680_v51 = vsel %vm6426_vm12, %v3675_v1, %v7078_v16  ;;  %v3949_v16 = vrot.slane %v6920_v24, 5 }
 0x21a   : > { %v3937_v47 = vrot.slane %v3935_v22, 4  ;;  %v3984_v3 = vrot.slane %v7045_v0, 5  ;;  %v3945_v24 = vrot.slane %v6907_v34, 5  ;;  %v3987_v34 = vrot.slane %v7083_v41, 5 }
 0x21b   : > { %5367 = vmatmul.mubr.bf16.gmra.mrb[4].mxu0 %v4759_v23  ;;  %5423 = vmatpush3.bf16.msra.mxu1 %v7063_v19  ;;  %v3951_v56 = vrot.slane %v3949_v16, 4 }
 0x21c   : > { %5383 = vmatpush3.bf16.msra.mxu0 %v7035_v62  ;;  %5370 = vmatprep.mubr.bf16.mxu0 %v4760_v31  ;;  %v3970_v62 = vrot.slane %v7002_v2, 5  ;;  %v3967_v2 = vsel %vm6666_vm15, %v3965_v13, %v3966_v57  ;;  %v3939_v54 = vsel %vm6666_vm15, %v3937_v47, %v3938_v26  ;;  %v3979_v31 = vrot.slane %v3977_v17, 4  ;;  %v4775_v13 = vld [vmem:[%s6396_s23 + $0x3c] sm:$0xe] }
 0x21d   : > { %5384 = vmatprep.subr.bf16.mxu0 %v7063_v19  ;;  %5416 = vmatprep.subr.bf16.mxu1 %v5751_v9  ;;  %v4792_v23 = vcombine.low %v3964_v53, %v3967_v2  ;;  %v3986_v49 = vrot.slane %v3984_v3, 4  ;;  %v3946_v58 = vsel %vm6666_vm15, %v3944_v63, %v3945_v24 }
 0x21e   : > { %5243 = vmatmul.mubr.bf16.gmra.mrb[8].mxu1 %v5750_v36  ;;  %v3972_v61 = vrot.slane %v3970_v62, 4  ;;  %v3971_v14 = vsel %vm6666_vm15, %v4785_v12, %v3970_v62  ;;  %v3981_v59 = vsel %vm6666_vm15, %v3979_v31, %v3980_v8  ;;  %v4779_v36 = vld [vmem:[%s6396_s23 + $0x6c] sm:$0xe]  ;;  %v4789_v41 = vcombine.low %v3943_v11, %v3946_v58  ;;  %s7231_s23 = scalar_lea.hbm %s7299_s7, %s4826_s28 }
 0x21f   : > { %5424 = vmatpush3.bf16.msra.mxu1 %v5751_v9  ;;  %5246 = vmatprep.mubr.bf16.mxu1 %v5753_v37  ;;  %v3952_v37 = vrot.slane %v6934_v44, 5  ;;  %v4794_v0 = vcombine.low %v3978_v55, %v3981_v59  ;;  %v4787_v21 = vrot.slane %v4779_v36, 9  ;;  %v3988_v18 = vsel %vm6666_vm15, %v3986_v49, %v3987_v34  ;;  %v7182_v55 = vld [vmem:[%s7298_s6] ss:$0 sm:$0xff] }
 0x220   : > { %5385 = vmatpush3.bf16.msra.mxu0 %v7063_v19  ;;  %5417 = vmatprep.subr.bf16.mxu1 %v5752_v42  ;;  %v3936_v19 = vsel %vm6666_vm15, %v4780_v6, %v3935_v22  ;;  %v3974_v40 = vsel %vm6666_vm15, %v3972_v61, %v3973_v15  ;;  %v4782_v22 = vrot.slane %v4774_v35, 9  ;;  %v3959_v6 = vrot.slane %v6984_v7, 5 }
 0x221   : > { %5386 = vmatprep.subr.bf16.mxu0 %v5751_v9  ;;  %v4788_v46 = vcombine.low %v3936_v19, %v3939_v54  ;;  %v4793_v60 = vcombine.low %v3971_v14, %v3974_v40  ;;  %v3953_v20 = vsel %vm6666_vm15, %v3951_v56, %v3952_v37  ;;  %v3985_v57 = vsel %vm6666_vm15, %v4787_v21, %v3984_v3 }
 0x222   : > { %v3950_v44 = vsel %vm6666_vm15, %v4782_v22, %v3949_v16  ;;  %v4795_v47 = vcombine.low %v3985_v57, %v3988_v18 }
 0x223   : > { %5371 = vmatmul.mubr.bf16.gmra.mrb[8].mxu0 %v4761_v4  ;;  %5425 = vmatpush3.bf16.msra.mxu1 %v5752_v42  ;;  %v4790_v50 = vcombine.low %v3950_v44, %v3953_v20 }
 0x224   : > { %5387 = vmatpush3.bf16.msra.mxu0 %v5751_v9  ;;  %5374 = vmatprep.mubr.bf16.mxu0 %v4762_v39  ;;  %v4763_v9 = vcombine.low %v3680_v51, %v3690_v27 }
 0x225   : > { %5388 = vmatprep.subr.bf16.mxu0 %v5752_v42  ;;  %5418 = vmatprep.subr.bf16.mxu1 %v5755_v43 }
 0x226   : > { %5247 = vmatmul.mubr.bf16.gmra.mrb[12].mxu1 %v5754_v52 }
 0x227   : > { %5426 = vmatpush3.bf16.msra.mxu1 %v5755_v43  ;;  %5402 = vmatprep.mubr.bf16.mxu1 %v4792_v23 }
 0x228   : > { %5389 = vmatpush3.bf16.msra.mxu0 %v5752_v42  ;;  %5419 = vmatprep.subr.bf16.mxu1 %v5756_v30  ;;  %v3956_v42 = vrot.slane %v6942_v38, 5  ;;  %v4783_v38 = vrot.slane %v4775_v13, 9 }
 0x229   : > { %5390 = vmatprep.subr.bf16.mxu0 %v5755_v43 }
 0x22a   : > { %v3958_v62 = vrot.slane %v3956_v42, 4  ;;  %v3957_v26 = vsel %vm6666_vm15, %v4783_v38, %v3956_v42 }
 0x22b   : > { %5375 = vmatmul.mubr.bf16.gmra.mrb[12].mxu0 %v4763_v9  ;;  %5427 = vmatpush3.bf16.msra.mxu1 %v5756_v30 }
 0x22c   : > { %5391 = vmatpush3.bf16.msra.mxu0 %v5755_v43  ;;  %5394 = vmatprep.mubr.bf16.mxu0 %v4788_v46  ;;  %v3960_v4 = vsel %vm6666_vm15, %v3958_v62, %v3959_v6  ;;  %v7177_v46 = vld [vmem:[%s7297_s5] ss:$0 sm:$0xff] }
 0x22d   : > { %5392 = vmatprep.subr.bf16.mxu0 %v5756_v30  ;;  %v4791_v1 = vcombine.low %v3957_v26, %v3960_v4 }
 0x22e   : > { %5403 = vmatmul.mubr.bf16.vlgmr.msra.gmra.mrb[16].mxu1 %v4793_v60 }
 0x22f   : > { %5406 = vmatprep.mubr.bf16.mxu1 %v4794_v0 }
 0x230   : > { %5393 = vmatpush3.bf16.msra.mxu0 %v5756_v30 }
 0x233   : > { %5395 = vmatmul.mubr.bf16.vlgmr.msra.gmra.mrb[0].mxu0 %v4789_v41 }
 0x234   : > { %5398 = vmatprep.mubr.bf16.mxu0 %v4790_v50 }
 0x236   : > { %5407 = vmatmul.mubr.bf16.gmra.mrb[20].mxu1 %v4795_v47 }
 0x23b   : > { %5399 = vmatmul.mubr.bf16.gmra.mrb[4].mxu0 %v4791_v1 }
 0x2e1   : > { %v5236_v48 = vpop.f32.mrb[0].mxu1 }
 0x2e2   : > { %v2426_v33 = vpop.f32.mrb[1].mxu1 }
 0x2e3   : > { %v5237_v39 = vpop.f32.mrb[2].mxu1 }
 0x2e4   : > { %v2429_v53 = vpop.f32.mrb[3].mxu1 }
 0x2e9   : > { %v7166_v2 = vpop.f32.mrb[4].mxu1 }
 0x2ea   : > { %v7168_v10 = vpop.f32.mrb[5].mxu1 }
 0x2eb   : > { %v7170_v7 = vpop.f32.mrb[6].mxu1 }
 0x2ec   : > { %v7172_v17 = vpop.f32.mrb[7].mxu1 }
 0x2f1   : > { %v5244_v43 = vpop.f32.mrb[8].mxu1 }
 0x2f2   : > { %v2458_v5 = vpop.f32.mrb[9].mxu1 }
 0x2f3   : > { %v5245_v61 = vpop.f32.mrb[10].mxu1 }
 0x2f4   : > { %v2461_v28 = vpop.f32.mrb[11].mxu1 }
 0x2f6   : > { %v5372_v15 = vpop.f32.mrb[8].mxu0 }
 0x2f7   : > { %v5436_v52 = vadd.f32 %v5372_v15, %v5244_v43  ;;  %v3854_v19 = vpop.f32.mrb[9].mxu0 }
 0x2f8   : > { %v5438_v54 = vadd.f32 %v3854_v19, %v2458_v5  ;;  %v5373_v51 = vpop.f32.mrb[10].mxu0 }
 0x2f9   : > { %v5440_v27 = vadd.f32 %v5373_v51, %v5245_v61  ;;  %v3857_v23 = vpop.f32.mrb[11].mxu0  ;;  %v5248_v32 = vpop.f32.mrb[12].mxu1 }
 0x2fa   : > { %v5442_v12 = vadd.f32 %v3857_v23, %v2461_v28  ;;  %v2474_v30 = vpop.f32.mrb[13].mxu1 }
 0x2fb   : > { %v5249_v25 = vpop.f32.mrb[14].mxu1 }
 0x2fc   : > { %v2477_v45 = vpop.f32.mrb[15].mxu1 }
 0x2fe   : > { %v5376_v31 = vpop.f32.mrb[12].mxu0 }
 0x2ff   : > { %v5444_v8 = vadd.f32 %v5376_v31, %v5248_v32  ;;  %v3870_v16 = vpop.f32.mrb[13].mxu0 }
 0x300   : > { %v5446_v29 = vadd.f32 %v3870_v16, %v2474_v30  ;;  %v5377_v40 = vpop.f32.mrb[14].mxu0 }
 0x301   : > { %v5448_v35 = vadd.f32 %v5377_v40, %v5249_v25  ;;  %v3873_v9 = vpop.f32.mrb[15].mxu0  ;;  %v5404_v14 = vpop.f32.mrb[16].mxu1 }
 0x302   : > { %v5450_v3 = vadd.f32 %v3873_v9, %v2477_v45  ;;  %v5437_v63 = vadd.f32 %v5436_v52, %v5404_v14  ;;  %v4152_v24 = vpop.f32.mrb[17].mxu1 }
 0x303   : > { %v5439_v59 = vadd.f32 %v5438_v54, %v4152_v24  ;;  %v5405_v36 = vpop.f32.mrb[18].mxu1 }
 0x304   : > { %v4216_v22 = vmul.f32 %v5437_v63, %v7177_v46  ;;  %v5441_v56 = vadd.f32 %v5440_v27, %v5405_v36  ;;  %v4155_v37 = vpop.f32.mrb[19].mxu1 }
 0x305   : > { %v4214_v60 = vmul.f32 %v5439_v59, %v7177_v46  ;;  %v5443_v0 = vadd.f32 %v5442_v12, %v4155_v37 }
 0x306   : > { %v5396_v21 = vpop.f32.mrb[0].mxu0  ;;  %v4239_v49 = vadd.f32 %v7182_v55, %v4216_v22  ;;  %v4217_v34 = vmul.f32 %v5441_v56, %v7177_v46 }
 0x307   : > { %v5428_v11 = vadd.f32 %v5396_v21, %v5236_v48  ;;  %v4120_v58 = vpop.f32.mrb[1].mxu0  ;;  %v4237_v42 = vadd.f32 %v7182_v55, %v4214_v60  ;;  %v4215_v44 = vmul.f32 %v5443_v0, %v7177_v46 }
 0x308   : > { %v4255_v20 = vmax.f32 %v4239_v49, 0.0  ;;  %v5429_v13 = vadd.f32 %v4120_v58, %v2426_v33  ;;  %v5397_v41 = vpop.f32.mrb[2].mxu0  ;;  %v4240_v57 = vadd.f32 %v7182_v55, %v4217_v34 }
 0x309   : > { %v4208_v18 = vmul.f32 %v5428_v11, %v7177_v46  ;;  %v4253_v50 = vmax.f32 %v4237_v42, 0.0  ;;  %v5430_v38 = vadd.f32 %v5397_v41, %v5237_v39  ;;  %v4123_v62 = vpop.f32.mrb[3].mxu0  ;;  %v4238_v6 = vadd.f32 %v7182_v55, %v4215_v44  ;;  %v5408_v47 = vpop.f32.mrb[20].mxu1 }
 0x30a   : > { %v4206_v26 = vmul.f32 %v5429_v13, %v7177_v46  ;;  %v4256_v4 = vmax.f32 %v4240_v57, 0.0  ;;  %v5431_v1 = vadd.f32 %v4123_v62, %v2429_v53  ;;  %v5445_v48 = vadd.f32 %v5444_v8, %v5408_v47  ;;  %v4168_v43 = vpop.f32.mrb[21].mxu1 }
 0x30b   : > { %v4231_v33 = vadd.f32 %v7182_v55, %v4208_v18  ;;  %v4209_v5 = vmul.f32 %v5430_v38, %v7177_v46  ;;  %v4254_v61 = vmax.f32 %v4238_v6, 0.0  ;;  %v5447_v28 = vadd.f32 %v5446_v29, %v4168_v43  ;;  %v5409_v15 = vpop.f32.mrb[22].mxu1 }
 0x30c   : > { %v4229_v39 = vadd.f32 %v7182_v55, %v4206_v26  ;;  %v4908_v52 = vpack.c.bf16 %v4256_v4, %v4255_v20  ;;  %v4207_v19 = vmul.f32 %v5431_v1, %v7177_v46  ;;  %v4220_v54 = vmul.f32 %v5445_v48, %v7177_v46  ;;  %v4171_v51 = vpop.f32.mrb[23].mxu1 }
 0x30d   : > { %v4232_v53 = vadd.f32 %v7182_v55, %v4209_v5  ;;  %v4903_v27 = vpack.c.bf16 %v4254_v61, %v4253_v50  ;;  %v4247_v23 = vmax.f32 %v4231_v33, 0.0  ;;  %v4218_v30 = vmul.f32 %v5447_v28, %v7177_v46 }
 0x30e   : > { %4924 = vst [vmem:[%s6055_s12 + $0x28] sm:$0xff] %v4908_v52   ;;  %v4230_v32 = vadd.f32 %v7182_v55, %v4207_v19  ;;  %v5400_v12 = vpop.f32.mrb[4].mxu0  ;;  %v5449_v25 = vadd.f32 %v5448_v35, %v5409_v15  ;;  %v4245_v45 = vmax.f32 %v4229_v39, 0.0  ;;  %v5451_v29 = vadd.f32 %v5450_v3, %v4171_v51 }
 0x30f   : > { %v4248_v31 = vmax.f32 %v4232_v53, 0.0  ;;  %4923 = vst [vmem:[%s6055_s12 + $0x20] sm:$0xff] %v4903_v27   ;;  %v5432_v8 = vadd.f32 %v5400_v12, %v7166_v2  ;;  %v4136_v16 = vpop.f32.mrb[5].mxu0  ;;  %v4243_v9 = vadd.f32 %v7182_v55, %v4220_v54  ;;  %v4241_v60 = vadd.f32 %v7182_v55, %v4218_v30 }
 0x310   : > { %v4246_v40 = vmax.f32 %v4230_v32, 0.0  ;;  %v5433_v14 = vadd.f32 %v4136_v16, %v7168_v10  ;;  %v5401_v63 = vpop.f32.mrb[6].mxu0  ;;  %v4221_v24 = vmul.f32 %v5449_v25, %v7177_v46  ;;  %v4219_v21 = vmul.f32 %v5451_v29, %v7177_v46 }
 0x311   : > { %v4888_v35 = vpack.c.bf16 %v4248_v31, %v4247_v23  ;;  %v4212_v59 = vmul.f32 %v5432_v8, %v7177_v46  ;;  %v5434_v36 = vadd.f32 %v5401_v63, %v7170_v7  ;;  %v4139_v2 = vpop.f32.mrb[7].mxu0  ;;  %v4259_v7 = vmax.f32 %v4243_v9, 0.0 }
 0x312   : > { %v4883_v22 = vpack.c.bf16 %v4246_v40, %v4245_v45  ;;  %v4210_v3 = vmul.f32 %v5433_v14, %v7177_v46  ;;  %v4244_v56 = vadd.f32 %v7182_v55, %v4221_v24  ;;  %v5435_v37 = vadd.f32 %v4139_v2, %v7172_v17 }
 0x313   : > { %4920 = vst [vmem:[%s6055_s12 + $0x8] sm:$0xff] %v4888_v35   ;;  %v4235_v10 = vadd.f32 %v7182_v55, %v4212_v59  ;;  %v4213_v0 = vmul.f32 %v5434_v36, %v7177_v46  ;;  %v4242_v58 = vadd.f32 %v7182_v55, %v4219_v21  ;;  %v4257_v13 = vmax.f32 %v4241_v60, 0.0 }
 0x314   : > { %4884 = vst [vmem:[%s6055_s12] sm:$0xff] %v4883_v22   ;;  %v4233_v49 = vadd.f32 %v7182_v55, %v4210_v3  ;;  %v4260_v34 = vmax.f32 %v4244_v56, 0.0  ;;  %v4211_v11 = vmul.f32 %v5435_v37, %v7177_v46 }
 0x315   : > { %v4236_v17 = vadd.f32 %v7182_v55, %v4213_v0  ;;  %v4251_v20 = vmax.f32 %v4235_v10, 0.0  ;;  %v4258_v57 = vmax.f32 %v4242_v58, 0.0 }
 0x316   : > { %v4918_v42 = vpack.c.bf16 %v4260_v34, %v4259_v7  ;;  %v4234_v44 = vadd.f32 %v7182_v55, %v4211_v11  ;;  %v4249_v18 = vmax.f32 %v4233_v49, 0.0 }
 0x317   : > { %v4252_v41 = vmax.f32 %v4236_v17, 0.0  ;;  %v4913_v38 = vpack.c.bf16 %v4258_v57, %v4257_v13 }
 0x318   : > { %4926 = vst [vmem:[%s6055_s12 + $0x38] sm:$0xff] %v4918_v42   ;;  %v4250_v46 = vmax.f32 %v4234_v44, 0.0 }
 0x319   : > { %v4898_v50 = vpack.c.bf16 %v4252_v41, %v4251_v20  ;;  %4925 = vst [vmem:[%s6055_s12 + $0x30] sm:$0xff] %v4913_v38  }
 0x31a   : > { %v4893_v55 = vpack.c.bf16 %v4250_v46, %v4249_v18 }
 0x31b   : > { %4922 = vst [vmem:[%s6055_s12 + $0x18] sm:$0xff] %v4898_v50  }
 0x31c   : > { %4921 = vst [vmem:[%s6055_s12 + $0x10] sm:$0xff] %v4893_v55  }
 0x31d   : > { %5802 = shalt.err (!%p5799_p9)
}
 0x31e   : > { %s5803_s11 = scalar_lea.hbm %s7231_s23, 1024  ;;  %s5807_s27 = scalar_lea.hbm %s7299_s7, 4096 }
 0x31f   : > { %p5804_p11 = scmp.ne.s32.totalorder %s7231_s23, %s5803_s11  ;;  %p5808_p4 = scmp.lt.u32.totalorder %s7231_s23, %s7299_s7 }
 0x320   : > { %p5809_p3 = scmp.lt.u32.totalorder %s5807_s27, %s5803_s11  ;;  %p5811_p10 = scmp.lt.u32.totalorder %s5803_s11, %s7231_s23 }
 0x321   : > { %p5805_p13 = pnand %p5804_p11, %p7334_p12 }
 0x322   : > { %p5810_p8 = por %p5809_p3, %p5808_p4 }
 0x323   : > { %p5806_p1 = pneg %p5805_p13 }
 0x324   : > { %p5812_p0 = por %p5811_p10, %p5810_p8 }
 0x326   : > { %p5813_p2 = pnand %p5812_p0, %p5806_p1 }
 0x328   : > { %5816 = shalt.err (!%p5813_p2)
}
 0x329   : > { %s5894_s13 = smov 64   ;;  %s5895_s19 = smov 4  }
 0x32a   : > { %5562 = dma.vmem_to_hbm [thread:$0]  (%p7334_p12), %s7233_s10, 1024, %s7231_s23, %s7240_s22, %s5894_s13, %s5894_s13, %s5895_s19  }
 0x32b PF: > { %p5574_p5 = scmp.ge.s32.totalorder %s5887_s8, 2  ;;  %s4373_s20 = sand.u32 1, %s5859_s24  }
 0x32c   : > { %p7335_p6 = scmp.ne.s32.totalorder %s7311_s16, 0  ;;  %s4374_s14 = scalar_lea.sflag [#allocation5], %s4373_s20 }
 0x32e   : > { %p5569_p7 = pnand %p5574_p5, %p7335_p6 }
 0x330   : > { %5854 = dma.done.wait (!%p5569_p7), %s4374_s14, 1024  }
 0x331   : > { %5856 = vsyncadd (!%p5569_p7), %s4374_s14, 4294966272  ;;  %s21_s8 = sadd.s32 1, %s5887_s8   ;;  %s7336_s15 = sld [smem:[#allocation9_spill]] }
 0x332   : > { %p18_p9 = scmp.ge.s32.totalorder %s21_s8, 6   ;;  %s7337_s10 = sld [smem:[#allocation10_spill]] }
 0x333   : > { %s7338_s24 = smov %s5863_s25  ;;  %s7339_s25 = smov %s5867_s26 }
 0x334   : > { %s7340_s26 = smov %s6015_s21  ;;  %s7341_s27 = smov %s5879_s29 }
 0x335   : > { %s7342_s28 = smov %s5883_s30  ;;  %20 = sbr.rel (!%p18_p9) target bundleno = 6 (0x6), region = 104 }
 0x337   : > { %s7343_s29 = smov %s7336_s15 }
 0x338   : > { %s7344_s30 = smov %s7337_s10 }
 0x33c   :  { %4379 = vsyncpa [#allocation4], 1 }
 0x33d   :  { %4381 = vsyncpa [#allocation4 + $0x1], 1 }
 0x33e   :  { %4382 = vsyncpa [#allocation5], 1 }
 0x33f   :  { %4384 = vsyncpa [#allocation5 + $0x1], 1 }

</bundles_post_ra>
